<compile_context>
chip_gen: v5e
topology: v5e:2x2
jax: 0.10.0
libtpu: 0.0.40
codegen_flags: <defaults>
</compile_context>

<pallas_src>
import functools

import jax
import jax.numpy as jnp
from jax.experimental import pallas as pl
from jax.experimental.pallas import tpu as pltpu


# ---------------- fused gated-MLP kernel ----------------
def _fused_gated_mlp_kernel(x_ref, wg_ref, wu_ref, bg_ref, bu_ref, wd_ref, bd_ref,
                            o_ref, acc_ref):
    """One (token-tile, I-tile) grid step of the silu_and_mul MLP."""
    j = pl.program_id(1)                      # intermediate-dim (reduction) step

    @pl.when(j == 0)
    def _():
        # Fold the down-projection bias into the accumulator init (free).
        acc_ref[...] = jnp.zeros_like(acc_ref) + bd_ref[...]

    x = x_ref[...]                            # (tm, H) bf16, fed straight to the MXU
    gate = jnp.dot(x, wg_ref[...], preferred_element_type=jnp.float32) + bg_ref[...]
    up = jnp.dot(x, wu_ref[...], preferred_element_type=jnp.float32) + bu_ref[...]
    # SiLU(gate) * up in f32 (safe on v5e; logistic runs on the EUP slot).
    # TODO(synk): on v6e/v7x this block could run in bf16 for ~2x VPU throughput.
    h = gate * jax.lax.logistic(gate) * up

    acc_ref[...] += jnp.dot(h.astype(wd_ref.dtype), wd_ref[...],
                            preferred_element_type=jnp.float32)

    @pl.when(j == pl.num_programs(1) - 1)
    def _():
        o_ref[...] = acc_ref[...].astype(o_ref.dtype)


def _default_vmem_limit_bytes():
    """capacity - 8 MiB headroom, capped at 100 MiB (=> ~100 MiB v5e/v6e, 56 MiB v7x)."""
    try:
        cap = pltpu.get_tpu_info().vmem_capacity_bytes
    except Exception:
        cap = 64 * 1024 * 1024
    return int(min(max(cap - 8 * 1024 * 1024, 32 * 1024 * 1024), 100 * 1024 * 1024))


def gated_mlp(x, w_gate, w_up, b_gate, b_up, w_down, b_down, *,
              tm=256, ti=512, out_dtype=None, vmem_limit_bytes=None):
    """Fused BertWithRopeGatedMLP forward: (silu(x@Wg+bg) * (x@Wu+bu)) @ Wd + bd."""
    s, h = x.shape
    inter = w_gate.shape[1]
    out_dtype = x.dtype if out_dtype is None else out_dtype

    assert h % 128 == 0 and inter % 128 == 0, "hidden/intermediate must be lane-dense (x128)"
    assert tm % 128 == 0, "token tile must be a multiple of 128"
    ti = min(ti, inter)
    assert inter % ti == 0, "intermediate_size must be a multiple of the I-tile"

    # Keep >=2 token tiles when possible so the "parallel" axis can load-balance
    # across v7x's two TensorCores; never shrink below 128 (MXU fill on v5e).
    if pl.cdiv(s, tm) < 2 and s > 128:
        tm = max(128, pl.cdiv(s, 2) // 128 * 128)

    # Pad the token axis only when it is not tile-aligned.
    # TODO(synk): replace the pad/slice fallback with an in-kernel masked store.
    s_pad = pl.cdiv(s, tm) * tm
    x_in = jnp.pad(x, ((0, s_pad - s), (0, 0))) if s_pad != s else x

    n_tok = s_pad // tm
    n_i = inter // ti

    w_bytes = sum(int(a.size) * a.dtype.itemsize
                  for a in (w_gate, w_up, w_down, b_gate, b_up, b_down))
    cost = pl.CostEstimate(
        flops=6 * s_pad * h * inter,                # 2*T*H*2I (gate/up) + 2*T*I*H (down)
        transcendentals=s_pad * inter,              # one logistic per (token, I) element
        bytes_accessed=int(x.size) * x.dtype.itemsize
        + s_pad * h * jnp.dtype(out_dtype).itemsize
        + w_bytes * (n_tok if n_i > 1 else 1),      # weight tiles re-stream per token tile
    )

    if vmem_limit_bytes is None:
        vmem_limit_bytes = _default_vmem_limit_bytes()

    out = pl.pallas_call(
        _fused_gated_mlp_kernel,
        out_shape=jax.ShapeDtypeStruct((s_pad, h), out_dtype),
        grid_spec=pltpu.PrefetchScalarGridSpec(
            num_scalar_prefetch=0,
            grid=(n_tok, n_i),
            in_specs=[
                pl.BlockSpec((tm, h), lambda i, j: (i, 0)),   # x tile (reused across j)
                pl.BlockSpec((h, ti), lambda i, j: (0, j)),   # W_gate tile (streams)
                pl.BlockSpec((h, ti), lambda i, j: (0, j)),   # W_up tile   (streams)
                pl.BlockSpec((1, ti), lambda i, j: (0, j)),   # b_gate tile
                pl.BlockSpec((1, ti), lambda i, j: (0, j)),   # b_up tile
                pl.BlockSpec((ti, h), lambda i, j: (j, 0)),   # W_down tile (streams)
                pl.BlockSpec((1, h), lambda i, j: (0, 0)),    # b_down (tiny, resident)
            ],
            out_specs=pl.BlockSpec((tm, h), lambda i, j: (i, 0)),
            scratch_shapes=[pltpu.VMEM((tm, h), jnp.float32)],  # down-proj accumulator
        ),
        compiler_params=pltpu.CompilerParams(
            dimension_semantics=("parallel", "arbitrary"),
            vmem_limit_bytes=int(vmem_limit_bytes),
        ),
        cost_estimate=cost,
    )(x_in, w_gate, w_up,
      b_gate.reshape(1, inter), b_up.reshape(1, inter),
      w_down, b_down.reshape(1, h))
    return out if s_pad == s else out[:s]


# ---------------- deterministic parameter init ----------------
def init_params(key, hidden, inter):
    kg, ku, kd, kb = jax.random.split(key, 4)
    kbg, kbu, kbd = jax.random.split(kb, 3)

    def nrm(k, shape, scale=0.02):
        return scale * jax.random.normal(k, shape, dtype=jnp.float32)

    return {
        # MXU weights stored bf16, [in, out] layout (transpose of torch Linear.weight).
        "w_gate": nrm(kg, (hidden, inter)).astype(jnp.bfloat16),
        "w_up": nrm(ku, (hidden, inter)).astype(jnp.bfloat16),
        "w_down": nrm(kd, (inter, hidden)).astype(jnp.bfloat16),
        "b_gate": nrm(kbg, (inter,), 0.01),
        "b_up": nrm(kbu, (inter,), 0.01),
        "b_down": nrm(kbd, (hidden,), 0.01),
    }


if __name__ == "__main__":
    # Small but lane-dense dims (real BERT: hidden 768/1024, intermediate 3072/4096).
    HIDDEN = 128
    INTER = 512
    TOKENS = 512

    key = jax.random.PRNGKey(0)
    pkey, xkey = jax.random.split(key)
    params = init_params(pkey, HIDDEN, INTER)
    x = jax.random.normal(xkey, (TOKENS, HIDDEN), dtype=jnp.float32).astype(jnp.bfloat16)

    # tm=256, ti=256 -> grid (2 token tiles, 2 I tiles): exercises both the parallel
    # token axis and the accumulator/reduction path.
    fwd = jax.jit(functools.partial(gated_mlp, tm=256, ti=256))
    out = fwd(x, params["w_gate"], params["w_up"], params["b_gate"], params["b_up"],
              params["w_down"], params["b_down"])
    jax.block_until_ready(out)

    # Pure-JAX f32 reference (kernel uses bf16 MXU operands / bf16 out -> loose tolerance).
    xf = x.astype(jnp.float32)
    gate = xf @ params["w_gate"].astype(jnp.float32) + params["b_gate"]
    up = xf @ params["w_up"].astype(jnp.float32) + params["b_up"]
    ref = (gate * jax.nn.sigmoid(gate) * up) @ params["w_down"].astype(jnp.float32) \
        + params["b_down"]

    assert out.shape == (TOKENS, HIDDEN) and out.dtype == x.dtype
    outf = out.astype(jnp.float32)
    assert jnp.allclose(outf, ref, rtol=5e-2, atol=1e-2), float(jnp.max(jnp.abs(outf - ref)))
    print("KERNEL_OK")
</pallas_src>

<mosaic_0001>
module attributes {stable_mosaic.version = 11 : i64} {
  func.func @_fused_gated_mlp_kernel(%arg0: i32, %arg1: i32, %arg2: memref<256x128xbf16, #tpu.memory_space<vmem>>, %arg3: memref<128x256xbf16, #tpu.memory_space<vmem>>, %arg4: memref<128x256xbf16, #tpu.memory_space<vmem>>, %arg5: memref<1x256xf32, #tpu.memory_space<vmem>>, %arg6: memref<1x256xf32, #tpu.memory_space<vmem>>, %arg7: memref<256x128xbf16, #tpu.memory_space<vmem>>, %arg8: memref<1x128xf32, #tpu.memory_space<vmem>>, %arg9: memref<256x128xbf16, #tpu.memory_space<vmem>>, %arg10: memref<256x128xf32, #tpu.memory_space<vmem>>) attributes {dimension_semantics = [#tpu.dimension_semantics<parallel>, #tpu.dimension_semantics<arbitrary>], iteration_bounds = array<i64: 2, 2>, scalar_prefetch = 0 : i64, scratch_operands = 1 : i64, tpu.core_type = #tpu.core_type<tc>, window_params = [{transform_indices = @transform_0, window_bounds = array<i64: 256, 128>}, {transform_indices = @transform_1, window_bounds = array<i64: 128, 256>}, {transform_indices = @transform_2, window_bounds = array<i64: 128, 256>}, {transform_indices = @transform_3, window_bounds = array<i64: 1, 256>}, {transform_indices = @transform_4, window_bounds = array<i64: 1, 256>}, {transform_indices = @transform_5, window_bounds = array<i64: 256, 128>}, {pipeline_mode = #tpu.pipeline_mode<synchronous>, transform_indices = @transform_6, window_bounds = array<i64: 1, 128>}, {transform_indices = @transform_7, window_bounds = array<i64: 256, 128>}]} {
    %c0_i32 = arith.constant 0 : i32
    %0 = arith.cmpi eq, %arg1, %c0_i32 : i32
    %1 = arith.extui %0 : i1 to i32
    %c0_i32_0 = arith.constant 0 : i32
    %2 = arith.cmpi ne, %1, %c0_i32_0 : i32
    scf.if %2 {
      %cst_20 = arith.constant 0.000000e+00 : f32
      %30 = vector.broadcast %cst_20 : f32 to vector<256x128xf32>
      %c0_21 = arith.constant 0 : index
      %c0_22 = arith.constant 0 : index
      %31 = vector.load %arg8[%c0_21, %c0_22] : memref<1x128xf32, #tpu.memory_space<vmem>>, vector<1x128xf32>
      %32 = vector.broadcast %31 : vector<1x128xf32> to vector<256x128xf32>
      %33 = arith.addf %30, %32 : vector<256x128xf32>
      %c0_23 = arith.constant 0 : index
      %c0_24 = arith.constant 0 : index
      %34 = vector.load %arg10[%c0_23, %c0_24] : memref<256x128xf32, #tpu.memory_space<vmem>>, vector<256x128xf32>
      tpu.vector_store %arg10[%c0_23, %c0_24], %33 {strides = array<i32>} : memref<256x128xf32, #tpu.memory_space<vmem>>, vector<256x128xf32>,
    } else {
    }
    %c0 = arith.constant 0 : index
    %c0_1 = arith.constant 0 : index
    %3 = vector.load %arg2[%c0, %c0_1] : memref<256x128xbf16, #tpu.memory_space<vmem>>, vector<256x128xbf16>
    %c0_2 = arith.constant 0 : index
    %c0_3 = arith.constant 0 : index
    %4 = vector.load %arg3[%c0_2, %c0_3] : memref<128x256xbf16, #tpu.memory_space<vmem>>, vector<128x256xbf16>
    %cst = arith.constant dense<0.000000e+00> : vector<256x256xf32>
    %5 = tpu.matmul %3, %4, %cst {dimension_numbers = #tpu.dot_dimension_numbers<[1], [0], [0], [1], [0, 0, 1, 1], [], []>} : vector<256x128xbf16>, vector<128x256xbf16>, vector<256x256xf32> -> vector<256x256xf32>
    %c0_4 = arith.constant 0 : index
    %c0_5 = arith.constant 0 : index
    %6 = vector.load %arg5[%c0_4, %c0_5] : memref<1x256xf32, #tpu.memory_space<vmem>>, vector<1x256xf32>
    %7 = vector.broadcast %6 : vector<1x256xf32> to vector<256x256xf32>
    %8 = arith.addf %5, %7 : vector<256x256xf32>
    %c0_6 = arith.constant 0 : index
    %c0_7 = arith.constant 0 : index
    %9 = vector.load %arg4[%c0_6, %c0_7] : memref<128x256xbf16, #tpu.memory_space<vmem>>, vector<128x256xbf16>
    %cst_8 = arith.constant dense<0.000000e+00> : vector<256x256xf32>
    %10 = tpu.matmul %3, %9, %cst_8 {dimension_numbers = #tpu.dot_dimension_numbers<[1], [0], [0], [1], [0, 0, 1, 1], [], []>} : vector<256x128xbf16>, vector<128x256xbf16>, vector<256x256xf32> -> vector<256x256xf32>
    %c0_9 = arith.constant 0 : index
    %c0_10 = arith.constant 0 : index
    %11 = vector.load %arg6[%c0_9, %c0_10] : memref<1x256xf32, #tpu.memory_space<vmem>>, vector<1x256xf32>
    %12 = vector.broadcast %11 : vector<1x256xf32> to vector<256x256xf32>
    %13 = arith.addf %10, %12 : vector<256x256xf32>
    %14 = arith.negf %8 : vector<256x256xf32>
    %15 = math.exp %14 : vector<256x256xf32>
    %cst_11 = arith.constant 1.000000e+00 : f32
    %16 = vector.broadcast %cst_11 : f32 to vector<256x256xf32>
    %17 = arith.addf %16, %15 : vector<256x256xf32>
    %18 = arith.divf %16, %17 : vector<256x256xf32>
    %19 = arith.mulf %8, %18 : vector<256x256xf32>
    %20 = arith.mulf %19, %13 : vector<256x256xf32>
    %c0_12 = arith.constant 0 : index
    %c0_13 = arith.constant 0 : index
    %21 = vector.load %arg10[%c0_12, %c0_13] : memref<256x128xf32, #tpu.memory_space<vmem>>, vector<256x128xf32>
    %22 = arith.truncf %20 : vector<256x256xf32> to vector<256x256xbf16>
    %c0_14 = arith.constant 0 : index
    %c0_15 = arith.constant 0 : index
    %23 = vector.load %arg7[%c0_14, %c0_15] : memref<256x128xbf16, #tpu.memory_space<vmem>>, vector<256x128xbf16>
    %cst_16 = arith.constant dense<0.000000e+00> : vector<256x128xf32>
    %24 = tpu.matmul %22, %23, %cst_16 {dimension_numbers = #tpu.dot_dimension_numbers<[1], [0], [0], [1], [0, 0, 1, 1], [], []>} : vector<256x256xbf16>, vector<256x128xbf16>, vector<256x128xf32> -> vector<256x128xf32>
    %25 = arith.addf %21, %24 : vector<256x128xf32>
    %c0_17 = arith.constant 0 : index
    %c0_18 = arith.constant 0 : index
    %26 = vector.load %arg10[%c0_17, %c0_18] : memref<256x128xf32, #tpu.memory_space<vmem>>, vector<256x128xf32>
    tpu.vector_store %arg10[%c0_17, %c0_18], %25 {strides = array<i32>} : memref<256x128xf32, #tpu.memory_space<vmem>>, vector<256x128xf32>,
    %c1_i32 = arith.constant 1 : i32
    %27 = arith.cmpi eq, %arg1, %c1_i32 : i32
    %28 = arith.extui %27 : i1 to i32
    %c0_i32_19 = arith.constant 0 : i32
    %29 = arith.cmpi ne, %28, %c0_i32_19 : i32
    scf.if %29 {
      %c0_20 = arith.constant 0 : index
      %c0_21 = arith.constant 0 : index
      %30 = vector.load %arg10[%c0_20, %c0_21] : memref<256x128xf32, #tpu.memory_space<vmem>>, vector<256x128xf32>
      %31 = arith.truncf %30 : vector<256x128xf32> to vector<256x128xbf16>
      %c0_22 = arith.constant 0 : index
      %c0_23 = arith.constant 0 : index
      %32 = vector.load %arg9[%c0_22, %c0_23] : memref<256x128xbf16, #tpu.memory_space<vmem>>, vector<256x128xbf16>
      tpu.vector_store %arg9[%c0_22, %c0_23], %31 {strides = array<i32>} : memref<256x128xbf16, #tpu.memory_space<vmem>>, vector<256x128xbf16>,
    } else {
    }
    return
  }
  func.func @transform_0(%arg0: i32, %arg1: i32) -> (i32, i32) {
    %c0_i32 = arith.constant 0 : i32
    %c0_i32_0 = arith.constant 0 : i32
    return %arg0, %c0_i32 : i32, i32
  }
  func.func @transform_1(%arg0: i32, %arg1: i32) -> (i32, i32) {
    %c0_i32 = arith.constant 0 : i32
    %c0_i32_0 = arith.constant 0 : i32
    return %c0_i32, %arg1 : i32, i32
  }
  func.func @transform_2(%arg0: i32, %arg1: i32) -> (i32, i32) {
    %c0_i32 = arith.constant 0 : i32
    %c0_i32_0 = arith.constant 0 : i32
    return %c0_i32, %arg1 : i32, i32
  }
  func.func @transform_3(%arg0: i32, %arg1: i32) -> (i32, i32) {
    %c0_i32 = arith.constant 0 : i32
    %c0_i32_0 = arith.constant 0 : i32
    return %c0_i32, %arg1 : i32, i32
  }
  func.func @transform_4(%arg0: i32, %arg1: i32) -> (i32, i32) {
    %c0_i32 = arith.constant 0 : i32
    %c0_i32_0 = arith.constant 0 : i32
    return %c0_i32, %arg1 : i32, i32
  }
  func.func @transform_5(%arg0: i32, %arg1: i32) -> (i32, i32) {
    %c0_i32 = arith.constant 0 : i32
    %c0_i32_0 = arith.constant 0 : i32
    return %arg1, %c0_i32 : i32, i32
  }
  func.func @transform_6(%arg0: i32, %arg1: i32) -> (i32, i32) {
    %c0_i32 = arith.constant 0 : i32
    %c0_i32_0 = arith.constant 0 : i32
    %c0_i32_1 = arith.constant 0 : i32
    return %c0_i32, %c0_i32_0 : i32, i32
  }
  func.func @transform_7(%arg0: i32, %arg1: i32) -> (i32, i32) {
    %c0_i32 = arith.constant 0 : i32
    %c0_i32_0 = arith.constant 0 : i32
    return %arg0, %c0_i32 : i32, i32
  }
}

</mosaic_0001>

<bundles_post_ra>
// kernel: gated_mlp.1
= control target key start
LH: loop header
LB: loop body
LE: loop exit
PB: predicated region body
PF: predicated region fallthrough
CT: control target
= control target key end

     0   :  { %s7724_s0 = inlined_call_operand.hbm [shape: bf16[512,128], index: 0, kind: input, shape index: {}]   ;;  %s7725_s1 = inlined_call_operand.hbm [shape: bf16[128,512], index: 1, kind: input, shape index: {}]   ;;  %s7726_s2 = inlined_call_operand.hbm [shape: bf16[128,512], index: 2, kind: input, shape index: {}]   ;;  %s7727_s3 = inlined_call_operand.vmem [shape: f32[1,512], index: 3, kind: input, shape index: {}]   ;;  %s7728_s4 = inlined_call_operand.hbm [shape: f32[1,512], index: 4, kind: input, shape index: {}]   ;;  %s7729_s5 = inlined_call_operand.hbm [shape: bf16[512,128], index: 5, kind: input, shape index: {}]   ;;  %s7730_s6 = inlined_call_operand.vmem [shape: f32[1,128], index: 6, kind: input, shape index: {}]   ;;  %s7731_s7 = inlined_call_operand.hbm [shape: bf16[512,128], index: 7, kind: output, shape index: {}]  }
   0x1   :  { %7784 = sst [smem:[#allocation86_spill]] %s7724_s0 }
   0x2   :  { %7785 = sst [smem:[#allocation87_spill]] %s7725_s1 }
   0x3   :  { %7786 = sst [smem:[#allocation88_spill]] %s7726_s2 }
   0x4   :  { %7787 = sst [smem:[#allocation89_spill]] %s7727_s3 }
   0x5   :  { %7788 = sst [smem:[#allocation90_spill]] %s7728_s4 }
   0x6   :  { %7789 = sst [smem:[#allocation91_spill]] %s7730_s6 }
   0x7   :  { %7790 = sst [smem:[#allocation92_spill]] %s7731_s7 }
   0x8   :  { %12 = vsyncpa [#allocation4], 0 }
   0x9   :  { %14 = vsyncpa [#allocation4 + $0x1], 0 }
   0xa   :  { %15 = vsyncpa [#allocation7], 0 }
   0xb   :  { %17 = vsyncpa [#allocation7 + $0x1], 0 }
   0xc   :  { %18 = vsyncpa [#allocation10], 0 }
   0xd   :  { %20 = vsyncpa [#allocation10 + $0x1], 0 }
   0xe   :  { %21 = vsyncpa [#allocation5], 0 }
   0xf   :  { %23 = vsyncpa [#allocation5 + $0x1], 0  ;;  %s4548_s24 = smov 0   ;;  %s4550_s25 = smov 0  }
  0x10   :  { %s4552_s26 = smov 0   ;;  %s4554_s27 = smov 0  }
  0x11   :  { %s4556_s28 = smov 0   ;;  %s4558_s29 = smov 0  }
  0x12   :  { %s4560_s30 = smov 0   ;;  %s4562_s8 = smov 0  }
  0x13   :  { %s4564_s9 = smov 0   ;;  %s4566_s10 = smov 0  }
  0x14   :  { %s4568_s11 = smov 0  }
  0x15 LB: > { %7791 = sst [smem:[#allocation17_spill]] %s4467_s26  ;;  %p56_p0 = scmp.eq.s32.totalorder %s4499_s11, 0  ;;  %s4499_s11 = sphi %s4568_s11, %s29_s11   ;;  %s4495_s10 = sphi %s4566_s10, %s8191_s10   ;;  %s4491_s9 = sphi %s4564_s9, %s8197_s9   ;;  %s4487_s8 = sphi %s4562_s8, %s8189_s8   ;;  %s4483_s30 = sphi %s4560_s30, %s8196_s30   ;;  %s4479_s29 = sphi %s4558_s29, %s8188_s29   ;;  %s4475_s28 = sphi %s4556_s28, %s8195_s28   ;;  %s4471_s27 = sphi %s4554_s27, %s8194_s27   ;;  %s4467_s26 = sphi %s4552_s26, %s8186_s26   ;;  %s4463_s25 = sphi %s4550_s25, %s8193_s25   ;;  %s4459_s24 = sphi %s4548_s24, %s8192_s24  }
  0x16   : > { %7792 = sst [smem:[#allocation18_spill]] %s4471_s27  ;;  %p81_p1 = scmp.ne.s32.totalorder %s4467_s26, %s4463_s25 }
  0x17   : > { %7793 = sst [smem:[#allocation19_spill]] %s4479_s29  ;;  %p87_p2 = scmp.ne.s32.totalorder %s4463_s25, %s4459_s24 }
  0x18   : > { %7794 = sst [smem:[#allocation20_spill]] %s4483_s30  ;;  %p7736_p3 = scmp.lt.s32.totalorder %s4499_s11, 4 }
  0x19   : > { %7795 = sst [smem:[#allocation21_spill]] %s4487_s8  ;;  %p83_p4 = por %p81_p1, %p56_p0 }
  0x1a   : > { %7796 = sst [smem:[#allocation22_spill]] %s4495_s10  ;;  %s289_s14 = sand.u32 1, %s4467_s26  }
  0x1b   : > { %7797 = sst [smem:[#allocation23_spill]] %s4499_s11  ;;  %s4614_s15 = sshll.u32 %s289_s14, 7 }
  0x1c   : > { %s3651_s16 = sshll.u32 %s4491_s9, 3  ;;  %s7798_s1 = sld [smem:[#allocation87_spill]] }
  0x1d   : > { %s291_s21 = scalar_lea.vmem [#allocation6], %s4614_s15  ;;  %p4623_p5 = pnand %p7736_p3, %p83_p4 }
  0x1e   : > { %s299_s22 = sshll.u32 %s291_s21, 4  ;;  %s7800_s2 = sld [smem:[#allocation88_spill]]  ;;  %s300_s22 = int_to_ptr.vmem [resolvable:$true] %s299_s22 }
  0x1f   : > { %s7801_s8 = sand.u32 1, %s4499_s11   ;;  %s7733_s18 = smov 256  }
  0x20   : > { %s4632_s17 = scalar_lea.sflag [#allocation7], %s7801_s8  ;;  %s7735_s21 = smov 8  }
  0x21   : > { %p3315_p6 = scmp.ge.s32.totalorder %s4499_s11, 1  ;;  %p378_p7 = scmp.lt.s32.totalorder %s4499_s11, 5 }
  0x22   : > { %s296_s19 = scalar_lea.hbm %s7798_s1, %s3651_s16  ;;  %s3310_s8 = sshll.u32 %s289_s14, 1 }
  0x23   : > { %s297_s20 = sshll.u32 %s296_s19, 4  ;;  %s7734_s19 = smov 128   ;;  %s298_s20 = int_to_ptr.hbm [resolvable:$true] %s297_s20 }
  0x24   : > { %s318_s7 = scalar_lea.hbm %s7800_s2, %s3651_s16  ;;  %p4644_p8 = pnand %p3315_p6, %p378_p7 }
  0x25   : > { %3848 = dma.hbm_to_vmem [thread:$0]  (!%p4623_p5), %s298_s20, 2048, %s300_s22, %s4632_s17, %s7733_s18, %s7734_s19, %s7735_s21  }
  0x26   : > { %s319_s1 = sshll.u32 %s318_s7, 4  ;;  %s3311_s13 = sshll.u32 %s4491_s9, 1  ;;  %s4641_s1 = int_to_ptr.hbm [resolvable:$true] %s319_s1 }
  0x27   : > { %s343_s16 = scalar_lea.vmem [#allocation9], %s3310_s8  ;;  %s7803_s4 = sld [smem:[#allocation90_spill]] }
  0x28   : > { %s351_s7 = sshll.u32 %s343_s16, 4  ;;  %s7804_s19 = sand.u32 1, %s4499_s11   ;;  %s352_s7 = int_to_ptr.vmem [resolvable:$true] %s351_s7 }
  0x29   : > { %s4654_s21 = scalar_lea.sflag [#allocation10], %s7804_s19  ;;  %s4660_s8 = sadd.s32 4294967295, %s4499_s11  }
  0x2a   : > { %s3298_s16 = sadd.s32 4294967294, %s4499_s11   ;;  %s41_s20 = sadd.s32 1, %s4495_s10 }
  0x2b   : > { %p55_p10 = scmp.ne.s32.totalorder %s4479_s29, %s4475_s28  ;;  %p61_p11 = scmp.ne.s32.totalorder %s4475_s28, %s4471_s27 }
  0x2c   : > { %p62_p13 = scmp.eq.s32.totalorder %s4660_s8, 0  ;;  %p242_p3 = scmp.eq.s32.totalorder %s3298_s16, 3 }
  0x2d   : > { %s347_s18 = scalar_lea.hbm %s7803_s4, %s3311_s13  ;;  %s38_s13 = sadd.s32 1, %s4491_s9 }
  0x2e   : > { %s349_s14 = sshll.u32 %s347_s18, 4  ;;  %p39_p9 = scmp.ge.s32.totalorder %s38_s13, 2  ;;  %s350_s14 = int_to_ptr.hbm [resolvable:$true] %s349_s14 }
  0x2f   : > { %3854 = dma.hbm_to_vmem [thread:$0]  (!%p4623_p5), %s350_s14, 32, %s352_s7, %s4654_s21  }
  0x30   : > { %s48_s18 = sadd.s32 1, %s4479_s29  ;;  %s8199_s13 = smov (%p39_p9, %s38_s13), 0 }
  0x31   : > { %7805 = sst [smem:[#allocation24_spill]] %s8199_s13  ;;  %s8201_s20 = smov (!%p39_p9, %s41_s20), %s4495_s10 }
  0x32   : > { %p4678_p12 = por %p56_p0, %p55_p10  ;;  %p43_p1 = scmp.ge.s32.totalorder %s8201_s20, 2 }
  0x33   : > { %s71_s7 = ssub.s32 %s4491_s9, %s8199_s13  ;;  %p4688_p4 = por %p62_p13, %p61_p11 }
  0x34   : > { %p72_p6 = scmp.eq.s32.totalorder %s71_s7, 0  ;;  %s8203_s20 = smov (%p43_p1, %s8201_s20), 0 }
  0x35   : > { %7808 = sst [smem:[#allocation25_spill]] %s8203_s20  ;;  %s7809_s14 = sadd.s32 1, %s4467_s26 }
  0x36   : > { %s4697_s2 = scalar_select %p72_p6, %s4467_s26, %s7809_s14  }
  0x37   : > { %s45_s4 = ssub.s32 %s4495_s10, %s8203_s20  ;;  %p4704_p0 = por %p87_p2, %p62_p13 }
  0x38   : > { %7810 = sst [smem:[#allocation26_spill]] %s4697_s2  ;;  %p46_p7 = scmp.eq.s32.totalorder %s45_s4, 0 }
  0x39   : > { %p236_p9 = scmp.eq.s32.totalorder %s4660_s8, 3  ;;  %s265_s13 = sand.u32 1, %s4479_s29  }
  0x3a   : > { %s4711_s3 = scalar_select %p46_p7, %s4479_s29, %s48_s18  }
  0x3b   : > { %p4716_p1 = por %p236_p9, %p55_p10  ;;  %p4723_p6 = por %p242_p3, %p61_p11 }
  0x3c   : > { %7812 = sst [smem:[#allocation27_spill]] %s4711_s3  ;;  %s3301_s14 = sshll.u32 %s265_s13, 7 }
  0x3d   : > { %s7813_s7 = scalar_select %p4716_p1, 1, 0 }
  0x3e   : > { %s7815_s24 = scalar_select %p4723_p6, 1, 0 }
  0x3f   : > { %7814 = sst [smem:[#allocation28_spill]] %s7813_s7  ;;  %s3650_s20 = sshll.u32 %s4495_s10, 7 }
  0x40   : > { %7816 = sst [smem:[#allocation29_spill]] %s7815_s24  ;;  %s269_s18 = scalar_lea.vmem [#allocation3], %s3301_s14 }
  0x41   : > { %s7817_s0 = sld [smem:[#allocation86_spill]]  ;;  %s277_s3 = sshll.u32 %s269_s18, 4  ;;  %s278_s3 = int_to_ptr.vmem [resolvable:$true] %s277_s3 }
  0x42   : > { %p7818_p2 = scmp.lt.s32.totalorder %s4499_s11, 4  ;;  %s266_s26 = scalar_lea.sflag [#allocation4], %s265_s13 }
  0x43   : > { %s4504_s10 = smov 64   ;;  %s4505_s24 = smov 4  }
  0x44   : > { %p3843_p3 = pnand %p7818_p2, %p4678_p12  ;;  %s313_s2 = scalar_lea.vmem [#allocation8], %s4614_s15 }
  0x45   : > { %s321_s4 = sshll.u32 %s313_s2, 4  ;;  %s3653_s27 = sshll.u32 %s4491_s9, 7  ;;  %s322_s4 = int_to_ptr.vmem [resolvable:$true] %s321_s4 }
  0x46   : > { %s7820_s14 = smov 128   ;;  %s7821_s18 = smov 256  }
  0x47   : > { %s274_s16 = scalar_lea.hbm %s7817_s0, %s3650_s20  ;;  %s7819_s20 = smov 8  }
  0x48   : > { %s275_s29 = sshll.u32 %s274_s16, 4  ;;  %s367_s19 = scalar_lea.hbm %s7729_s5, %s3653_s27  ;;  %s276_s29 = int_to_ptr.hbm [resolvable:$true] %s275_s29 }
  0x49   : > { %3845 = dma.hbm_to_vmem [thread:$0]  (!%p3843_p3), %s276_s29, 2048, %s278_s3, %s266_s26, %s4504_s10, %s4504_s10, %s4505_s24  }
  0x4a   : > { %3851 = dma.hbm_to_vmem [thread:$0]  (!%p4623_p5), %s4641_s1, 2048, %s322_s4, %s4632_s17, %s7821_s18, %s7820_s14, %s7819_s20  }
  0x4b   : > { %s362_s11 = scalar_lea.vmem [#allocation11], %s4614_s15  ;;  %s368_s30 = sshll.u32 %s367_s19, 4  ;;  %s369_s30 = int_to_ptr.hbm [resolvable:$true] %s368_s30 }
  0x4c   : > { %s370_s7 = sshll.u32 %s362_s11, 4  ;;  %382 = sbr.rel (%p4644_p8) target bundleno = 982 (0x3d6), region = 48  ;;  %s371_s7 = int_to_ptr.vmem [resolvable:$true] %s370_s7 }
  0x4d   : > { %3857 = dma.hbm_to_vmem [thread:$0]  (!%p4623_p5), %s369_s30, 2048, %s371_s7, %s4654_s21, %s4504_s10, %s4504_s10, %s4505_s24  }
  0x51   : > { %s4754_s3 = sand.u32 1, %s4475_s28  }
  0x52   : > { %s3316_s1 = sshll.u32 %s4754_s3, 7  ;;  %s385_s26 = scalar_lea.sflag [#allocation4], %s4754_s3 }
  0x53   : > { %s4758_s0 = scalar_lea.vmem [#allocation3], %s3316_s1 }
  0x54   : > { %4442 = dma.done.wait (%p4688_p4), %s385_s26, 2048  }
  0x55   : > { %4444 = vsyncadd (%p4688_p4), %s385_s26, 4294965248  ;;  %s394_s27 = sand.u32 1, %s4660_s8   ;;  %s396_s29 = sand.u32 1, %s4463_s25  }
  0x56   : > { %s3317_s30 = sshll.u32 %s396_s29, 7  ;;  %s395_s10 = scalar_lea.sflag [#allocation7], %s394_s27 }
  0x57   : > { %s4766_s11 = scalar_lea.vmem [#allocation6], %s3317_s30 }
  0x58   : > { %4446 = dma.done.wait (%p4704_p0), %s395_s10, 4096  }
  0x59   : > { %4448 = vsyncadd (%p4704_p0), %s395_s10, 4294963200  ;;  %s4772_s15 = sshll.u32 %s396_s29, 1  ;;  %s4774_s23 = scalar_lea.vmem [#allocation8], %s3317_s30 }
  0x5a   : > { %s415_s17 = scalar_lea.sflag [#allocation10], %s394_s27  ;;  %s418_s21 = scalar_lea.vmem [#allocation9], %s4772_s15 }
  0x5b   : > { %4450 = dma.done.wait (%p4704_p0), %s415_s17, 2080  }
  0x5c   : > { %4452 = vsyncadd (%p4704_p0), %s415_s17, 4294965216  ;;  %s7822_s12 = sld [smem:[#allocation20_spill]]  ;;  %s4788_s2 = scalar_lea.vmem [#allocation11], %s3317_s30 }
  0x5d   : > { %s7823_s7 = sld [smem:[#allocation89_spill]]  ;;  %s4790_s4 = scalar_lea.vmem [#allocation12], %s3316_s1 }
  0x62   : > { %s3322_s8 = sshll.u32 %s7822_s12, 1  ;;  %p3323_p8 = scmp.ne.s32.totalorder %s7822_s12, 0 }
  0x63   : > { %p488_p5 = scmp.lt.s32.totalorder %s3322_s8, 3  ;;  %s7824_s14 = sld [smem:[#allocation91_spill]] (!%p3323_p8) }
  0x64   : > { %498 = sbr.rel (%p3323_p8) target bundleno = 138 (0x8a), region = 72 }
  0x65   : > { %s8205_s8 = smov (!%p488_p5, %s3322_s8), 3 }
  0x66   : > { %s490_s24 = scalar_lea.vmem %s7823_s7, %s8205_s8 }
  0x69   : > { %v3959_v0 = vld [vmem:[%s7824_s14] ss:$0 sm:$0xff] }
  0x6a   : > { %504 = vst [vmem:[#allocation2 + $0xb0] sm:$0xff] %v3959_v0 }
  0x6b   : > { %505 = vst [vmem:[#allocation2] sm:$0xff] %v3959_v0 }
  0x6c   : > { %506 = vst [vmem:[#allocation2 + $0xd8] sm:$0xff] %v3959_v0 }
  0x6d   : > { %507 = vst [vmem:[#allocation2 + $0x18] sm:$0xff] %v3959_v0 }
  0x6e   : > { %508 = vst [vmem:[#allocation2 + $0x50] sm:$0xff] %v3959_v0 }
  0x6f   : > { %509 = vst [vmem:[#allocation2 + $0x68] sm:$0xff] %v3959_v0 }
  0x70   : > { %510 = vst [vmem:[#allocation2 + $0x30] sm:$0xff] %v3959_v0 }
  0x71   : > { %511 = vst [vmem:[#allocation2 + $0x48] sm:$0xff] %v3959_v0 }
  0x72   : > { %512 = vst [vmem:[#allocation2 + $0x80] sm:$0xff] %v3959_v0 }
  0x73   : > { %513 = vst [vmem:[#allocation2 + $0x88] sm:$0xff] %v3959_v0 }
  0x74   : > { %514 = vst [vmem:[#allocation2 + $0xe8] sm:$0xff] %v3959_v0 }
  0x75   : > { %515 = vst [vmem:[#allocation2 + $0xb8] sm:$0xff] %v3959_v0 }
  0x76   : > { %516 = vst [vmem:[#allocation2 + $0x60] sm:$0xff] %v3959_v0 }
  0x77   : > { %517 = vst [vmem:[#allocation2 + $0xf0] sm:$0xff] %v3959_v0 }
  0x78   : > { %518 = vst [vmem:[#allocation2 + $0x8] sm:$0xff] %v3959_v0 }
  0x79   : > { %519 = vst [vmem:[#allocation2 + $0x78] sm:$0xff] %v3959_v0 }
  0x7a   : > { %520 = vst [vmem:[#allocation2 + $0x38] sm:$0xff] %v3959_v0 }
  0x7b   : > { %521 = vst [vmem:[#allocation2 + $0x58] sm:$0xff] %v3959_v0 }
  0x7c   : > { %522 = vst [vmem:[#allocation2 + $0x40] sm:$0xff] %v3959_v0 }
  0x7d   : > { %523 = vst [vmem:[#allocation2 + $0xc8] sm:$0xff] %v3959_v0 }
  0x7e   : > { %524 = vst [vmem:[#allocation2 + $0xe0] sm:$0xff] %v3959_v0 }
  0x7f   : > { %525 = vst [vmem:[#allocation2 + $0x90] sm:$0xff] %v3959_v0 }
  0x80   : > { %526 = vst [vmem:[#allocation2 + $0x70] sm:$0xff] %v3959_v0 }
  0x81   : > { %527 = vst [vmem:[#allocation2 + $0xc0] sm:$0xff] %v3959_v0 }
  0x82   : > { %528 = vst [vmem:[#allocation2 + $0xa8] sm:$0xff] %v3959_v0 }
  0x83   : > { %529 = vst [vmem:[#allocation2 + $0xd0] sm:$0xff] %v3959_v0 }
  0x84   : > { %530 = vst [vmem:[#allocation2 + $0x10] sm:$0xff] %v3959_v0 }
  0x85   : > { %531 = vst [vmem:[#allocation2 + $0x28] sm:$0xff] %v3959_v0 }
  0x86   : > { %532 = vst [vmem:[#allocation2 + $0xa0] sm:$0xff] %v3959_v0 }
  0x87   : > { %533 = vst [vmem:[#allocation2 + $0xf8] sm:$0xff] %v3959_v0 }
  0x88   : > { %534 = vst [vmem:[#allocation2 + $0x20] sm:$0xff] %v3959_v0 }
  0x89   : > { %535 = vst [vmem:[#allocation2 + $0x98] sm:$0xff] %v3959_v0 }
  0x8a PF: > { %v3446_v1 = vld [vmem:[%s4766_s11 + $0x70] sm:$0xf]  ;;  %v3685_v2 = vld [vmem:[%s4766_s11 + $0x74] sm:$0xf0]  ;;  %v3684_v3 = vld [vmem:[%s4766_s11 + $0x74] sm:$0xf] }
  0x8b   : > { %v3447_v4 = vor.u32 %v3685_v2, %v3446_v1  ;;  %v3448_v5 = vld [vmem:[%s4766_s11 + $0x78] sm:$0xf0]  ;;  %v3438_v6 = vld [vmem:[%s4766_s11 + $0x60] sm:$0xf]  ;;  %v3683_v7 = vld [vmem:[%s4766_s11 + $0x64] sm:$0xf0] }
  0x8c   : > { %v3451_v8 = vor.u32 %v3684_v3, %v3448_v5  ;;  %v3682_v9 = vld [vmem:[%s4766_s11 + $0x64] sm:$0xf]  ;;  %v3440_v10 = vld [vmem:[%s4766_s11 + $0x68] sm:$0xf0]  ;;  %v3439_v11 = vor.u32 %v3683_v7, %v3438_v6  ;;  %v3430_v13 = vld [vmem:[%s4766_s11 + $0x50] sm:$0xf] }
  0x8d   : > { %3814 = vmatpush.bf16.msra.mxu2 %v3447_v4  ;;  %766 = vmatpush.bf16.msra.mxu0 %v3447_v4  ;;  %v3443_v12 = vor.u32 %v3682_v9, %v3440_v10  ;;  %v3681_v14 = vld [vmem:[%s4766_s11 + $0x54] sm:$0xf0]  ;;  %v3680_v15 = vld [vmem:[%s4766_s11 + $0x54] sm:$0xf]  ;;  %v3432_v16 = vld [vmem:[%s4766_s11 + $0x58] sm:$0xf0] }
  0x8e   : > { %3822 = vmatpush.bf16.msra.mxu3 %v3451_v8  ;;  %855 = vmatpush.bf16.msra.mxu1 %v3451_v8  ;;  %v3431_v17 = vor.u32 %v3681_v14, %v3430_v13  ;;  %v3435_v18 = vor.u32 %v3680_v15, %v3432_v16  ;;  %v3422_v19 = vld [vmem:[%s4766_s11 + $0x40] sm:$0xf]  ;;  %v3679_v20 = vld [vmem:[%s4766_s11 + $0x44] sm:$0xf0]  ;;  %v3678_v21 = vld [vmem:[%s4766_s11 + $0x44] sm:$0xf] }
  0x8f   : > { %v3424_v22 = vld [vmem:[%s4766_s11 + $0x48] sm:$0xf0]  ;;  %v3423_v23 = vor.u32 %v3679_v20, %v3422_v19  ;;  %v3414_v25 = vld [vmem:[%s4766_s11 + $0x30] sm:$0xf]  ;;  %v3677_v26 = vld [vmem:[%s4766_s11 + $0x34] sm:$0xf0] }
  0x90   : > { %v3427_v24 = vor.u32 %v3678_v21, %v3424_v22  ;;  %v3676_v27 = vld [vmem:[%s4766_s11 + $0x34] sm:$0xf]  ;;  %v3416_v28 = vld [vmem:[%s4766_s11 + $0x38] sm:$0xf0]  ;;  %v3415_v29 = vor.u32 %v3677_v26, %v3414_v25  ;;  %v3406_v31 = vld [vmem:[%s4766_s11 + $0x20] sm:$0xf] }
  0x91   : > { %3815 = vmatpush.bf16.msra.mxu2 %v3439_v11  ;;  %767 = vmatpush.bf16.msra.mxu0 %v3439_v11  ;;  %v3419_v30 = vor.u32 %v3676_v27, %v3416_v28  ;;  %v3675_v32 = vld [vmem:[%s4766_s11 + $0x24] sm:$0xf0]  ;;  %v3674_v33 = vld [vmem:[%s4766_s11 + $0x24] sm:$0xf]  ;;  %v3408_v34 = vld [vmem:[%s4766_s11 + $0x28] sm:$0xf0] }
  0x92   : > { %3823 = vmatpush.bf16.msra.mxu3 %v3443_v12  ;;  %856 = vmatpush.bf16.msra.mxu1 %v3443_v12  ;;  %v3407_v35 = vor.u32 %v3675_v32, %v3406_v31  ;;  %v3411_v36 = vor.u32 %v3674_v33, %v3408_v34  ;;  %v3398_v37 = vld [vmem:[%s4766_s11 + $0x10] sm:$0xf]  ;;  %v3673_v38 = vld [vmem:[%s4766_s11 + $0x14] sm:$0xf0]  ;;  %v3672_v39 = vld [vmem:[%s4766_s11 + $0x14] sm:$0xf] }
  0x93   : > { %v3400_v40 = vld [vmem:[%s4766_s11 + $0x18] sm:$0xf0]  ;;  %v3399_v41 = vor.u32 %v3673_v38, %v3398_v37  ;;  %v3390_v43 = vld [vmem:[%s4766_s11] sm:$0xf]  ;;  %v3671_v44 = vld [vmem:[%s4766_s11 + $0x4] sm:$0xf0] }
  0x94   : > { %v3403_v42 = vor.u32 %v3672_v39, %v3400_v40  ;;  %v3670_v45 = vld [vmem:[%s4766_s11 + $0x4] sm:$0xf]  ;;  %v3392_v46 = vld [vmem:[%s4766_s11 + $0x8] sm:$0xf0]  ;;  %v3510_v47 = vld [vmem:[%s4774_s23 + $0x70] sm:$0xf]  ;;  %v3391_v51 = vor.u32 %v3671_v44, %v3390_v43 }
  0x95   : > { %3816 = vmatpush.bf16.msra.mxu2 %v3431_v17  ;;  %768 = vmatpush.bf16.msra.mxu0 %v3431_v17  ;;  %v3701_v48 = vld [vmem:[%s4774_s23 + $0x74] sm:$0xf0]  ;;  %v3700_v49 = vld [vmem:[%s4774_s23 + $0x74] sm:$0xf]  ;;  %v3512_v50 = vld [vmem:[%s4774_s23 + $0x78] sm:$0xf0]  ;;  %v3395_v52 = vor.u32 %v3670_v45, %v3392_v46 }
  0x96   : > { %3824 = vmatpush.bf16.msra.mxu3 %v3435_v18  ;;  %857 = vmatpush.bf16.msra.mxu1 %v3435_v18  ;;  %v3511_v53 = vor.u32 %v3701_v48, %v3510_v47  ;;  %v3515_v54 = vor.u32 %v3700_v49, %v3512_v50  ;;  %v3502_v55 = vld [vmem:[%s4774_s23 + $0x60] sm:$0xf]  ;;  %v3699_v56 = vld [vmem:[%s4774_s23 + $0x64] sm:$0xf0]  ;;  %v3698_v58 = vld [vmem:[%s4774_s23 + $0x64] sm:$0xf] }
  0x97   : > { %v4835_v57 = vld [vmem:[%s4758_s0 + $0x40] sm:$0xff]  ;;  %v3504_v59 = vld [vmem:[%s4774_s23 + $0x68] sm:$0xf0]  ;;  %v3503_v60 = vor.u32 %v3699_v56, %v3502_v55  ;;  %v3494_v62 = vld [vmem:[%s4774_s23 + $0x50] sm:$0xf]  ;;  %s8177_s1 = sld [smem:[#allocation20_spill]] }
  0x98   : > { %v3507_v61 = vor.u32 %v3698_v58, %v3504_v59  ;;  %v3697_v63 = vld [vmem:[%s4774_s23 + $0x54] sm:$0xf0]  ;;  %v3696_v0 = vld [vmem:[%s4774_s23 + $0x54] sm:$0xf]  ;;  %v3496_v2 = vld [vmem:[%s4774_s23 + $0x58] sm:$0xf0] }
  0x99   : > { %3817 = vmatpush.bf16.msra.mxu2 %v3423_v23  ;;  %769 = vmatpush.bf16.msra.mxu0 %v3423_v23  ;;  %v3495_v1 = vor.u32 %v3697_v63, %v3494_v62  ;;  %v3499_v3 = vor.u32 %v3696_v0, %v3496_v2  ;;  %v4846_v4 = vld [vmem:[%s4758_s0 + $0x48] sm:$0xff]  ;;  %v3486_v5 = vld [vmem:[%s4774_s23 + $0x40] sm:$0xf]  ;;  %v3694_v7 = vld [vmem:[%s4774_s23 + $0x44] sm:$0xf] }
  0x9a   : > { %3825 = vmatpush.bf16.msra.mxu3 %v3427_v24  ;;  %858 = vmatpush.bf16.msra.mxu1 %v3427_v24  ;;  %v3695_v6 = vld [vmem:[%s4774_s23 + $0x44] sm:$0xf0]  ;;  %v3488_v9 = vld [vmem:[%s4774_s23 + $0x48] sm:$0xf0]  ;;  %v4855_v11 = vld [vmem:[%s4758_s0 + $0x50] sm:$0xff] }
  0x9b   : > { %v3487_v8 = vor.u32 %v3695_v6, %v3486_v5  ;;  %v3491_v10 = vor.u32 %v3694_v7, %v3488_v9  ;;  %v3478_v12 = vld [vmem:[%s4774_s23 + $0x30] sm:$0xf]  ;;  %v3693_v13 = vld [vmem:[%s4774_s23 + $0x34] sm:$0xf0]  ;;  %v3692_v14 = vld [vmem:[%s4774_s23 + $0x34] sm:$0xf] }
  0x9c   : > { %v3479_v15 = vor.u32 %v3693_v13, %v3478_v12  ;;  %v3480_v16 = vld [vmem:[%s4774_s23 + $0x38] sm:$0xf0]  ;;  %v3654_v17 = vld [vmem:[%s4758_s0] sm:$0xff]  ;;  %v3691_v21 = vld [vmem:[%s4774_s23 + $0x24] sm:$0xf0] }
  0x9d   : > { %3818 = vmatpush.bf16.msra.mxu2 %v3415_v29  ;;  %770 = vmatpush.bf16.msra.mxu0 %v3415_v29  ;;  %v3483_v18 = vor.u32 %v3692_v14, %v3480_v16  ;;  %v4865_v19 = vld [vmem:[%s4758_s0 + $0x58] sm:$0xff]  ;;  %v3470_v20 = vld [vmem:[%s4774_s23 + $0x20] sm:$0xf]  ;;  %v3690_v22 = vld [vmem:[%s4774_s23 + $0x24] sm:$0xf]  ;;  %p3644_p10 = scmp.ne.s32.totalorder %s8177_s1, 1 }
  0x9e   : > { %3826 = vmatpush.bf16.msra.mxu3 %v3419_v30  ;;  %859 = vmatpush.bf16.msra.mxu1 %v3419_v30  ;;  %v3471_v23 = vor.u32 %v3691_v21, %v3470_v20  ;;  %v3472_v24 = vld [vmem:[%s4774_s23 + $0x28] sm:$0xf0]  ;;  %v4875_v27 = vld [vmem:[%s4758_s0 + $0x60] sm:$0xff]  ;;  %v3462_v28 = vld [vmem:[%s4774_s23 + $0x10] sm:$0xf] }
  0x9f   : > { %v3655_v25 = vld [vmem:[%s4758_s0 + $0x8] sm:$0xff]  ;;  %v3475_v26 = vor.u32 %v3690_v22, %v3472_v24  ;;  %v3689_v29 = vld [vmem:[%s4774_s23 + $0x14] sm:$0xf0]  ;;  %v3688_v30 = vld [vmem:[%s4774_s23 + $0x14] sm:$0xf] }
  0xa0   : > { %v3463_v31 = vor.u32 %v3689_v29, %v3462_v28  ;;  %v3464_v32 = vld [vmem:[%s4774_s23 + $0x18] sm:$0xf0]  ;;  %v3656_v33 = vld [vmem:[%s4758_s0 + $0x10] sm:$0xff]  ;;  %v3687_v37 = vld [vmem:[%s4774_s23 + $0x4] sm:$0xf0] }
  0xa1   : > { %3819 = vmatpush.bf16.msra.mxu2 %v3407_v35  ;;  %771 = vmatpush.bf16.msra.mxu0 %v3407_v35  ;;  %v3467_v34 = vor.u32 %v3688_v30, %v3464_v32  ;;  %v3667_v35 = vld [vmem:[%s4758_s0 + $0x68] sm:$0xff]  ;;  %v3686_v38 = vld [vmem:[%s4774_s23 + $0x4] sm:$0xf]  ;;  %v3668_v43 = vld [vmem:[%s4758_s0 + $0x70] sm:$0xff] }
  0xa2   : > { %3827 = vmatpush.bf16.msra.mxu3 %v3411_v36  ;;  %860 = vmatpush.bf16.msra.mxu1 %v3411_v36  ;;  %v3454_v36 = vld [vmem:[%s4774_s23] sm:$0xf]  ;;  %v3456_v40 = vld [vmem:[%s4774_s23 + $0x8] sm:$0xf0]  ;;  %v3669_v45 = vld [vmem:[%s4758_s0 + $0x78] sm:$0xff] }
  0xa3   : > { %v3455_v39 = vor.u32 %v3687_v37, %v3454_v36  ;;  %v3658_v44 = vld [vmem:[%s4758_s0 + $0x20] sm:$0xff]  ;;  %v3659_v46 = vld [vmem:[%s4758_s0 + $0x28] sm:$0xff]  ;;  %v3660_v47 = vld [vmem:[%s4758_s0 + $0x30] sm:$0xff] }
  0xa4   : > { %v3709_v48 = vld [vmem:[%s4788_s2 + $0x38] sm:$0xff]  ;;  %v3706_v2 = vld [vmem:[%s4788_s2 + $0x20] sm:$0xff] }
  0xa5   : > { %3820 = vmatpush.bf16.msra.mxu2 %v3399_v41  ;;  %772 = vmatpush.bf16.msra.mxu0 %v3399_v41  ;;  %v3657_v41 = vld [vmem:[%s4758_s0 + $0x18] sm:$0xff]  ;;  %v584_v12 = vld [vmem:[%s490_s24] sm:$0x3] }
  0xa6   : > { %3828 = vmatpush.bf16.msra.mxu3 %v3403_v42  ;;  %861 = vmatpush.bf16.msra.mxu1 %v3403_v42  ;;  %v3459_v42 = vor.u32 %v3686_v38, %v3456_v40  ;;  %v3717_v49 = vld [vmem:[%s4788_s2 + $0x78] sm:$0xff]  ;;  %v4929_v13 = vperm.slane %v584_v12, 0  ;;  %v4935_v16 = vperm.slane %v584_v12, 1 }
  0xa7   : > { %v3713_v20 = vld [vmem:[%s4788_s2 + $0x58] sm:$0xff] }
  0xa9   : > { %3821 = vmatpush.bf16.msra.mxu2 %v3391_v51  ;;  %773 = vmatpush.bf16.msra.mxu0 %v3391_v51 }
  0xaa   : > { %3829 = vmatpush.bf16.msra.mxu3 %v3395_v52  ;;  %862 = vmatpush.bf16.msra.mxu1 %v3395_v52  ;;  %v3661_v52 = vld [vmem:[%s4758_s0 + $0x38] sm:$0xff] }
  0xac   : > { %814 = vmatmul.bf16.vlgmr.msra.gmra.mxu2 %v4835_v57  ;;  %774 = vmatmul.bf16.vlgmr.msra.gmra.mxu0 %v3654_v17 }
  0xad   : > { %1046 = vmatpush.bf16.msrb.mxu2 %v3511_v53  ;;  %903 = vmatmul.bf16.vlgmr.msra.gmra.mxu3 %v4835_v57  ;;  %v3708_v53 = vld [vmem:[%s4788_s2 + $0x30] sm:$0xff] }
  0xae   : > { %1135 = vmatpush.bf16.msrb.mxu3 %v3515_v54  ;;  %863 = vmatmul.bf16.vlgmr.msra.gmra.mxu1 %v3654_v17  ;;  %v3716_v54 = vld [vmem:[%s4788_s2 + $0x70] sm:$0xff] }
  0xaf   : > { %2760 = vmatpush.bf16.msrb.mxu0 %v3709_v48  ;;  %2849 = vmatpush.bf16.msrb.mxu1 %v3717_v49 }
  0xb1   : > { %1047 = vmatpush.bf16.msrb.mxu2 %v3503_v60  ;;  %v3707_v60 = vld [vmem:[%s4788_s2 + $0x28] sm:$0xff] }
  0xb2   : > { %1136 = vmatpush.bf16.msrb.mxu3 %v3507_v61  ;;  %v3715_v61 = vld [vmem:[%s4788_s2 + $0x68] sm:$0xff] }
  0xb3   : > { %2761 = vmatpush.bf16.msrb.mxu0 %v3708_v53  ;;  %2850 = vmatpush.bf16.msrb.mxu1 %v3716_v54 }
  0xb5   : > { %1048 = vmatpush.bf16.msrb.mxu2 %v3495_v1 }
  0xb6   : > { %1137 = vmatpush.bf16.msrb.mxu3 %v3499_v3  ;;  %v3714_v3 = vld [vmem:[%s4788_s2 + $0x60] sm:$0xff] }
  0xb7   : > { %2762 = vmatpush.bf16.msrb.mxu0 %v3707_v60  ;;  %2851 = vmatpush.bf16.msrb.mxu1 %v3715_v61 }
  0xb9   : > { %1049 = vmatpush.bf16.msrb.mxu2 %v3487_v8 }
  0xba   : > { %1138 = vmatpush.bf16.msrb.mxu3 %v3491_v10 }
  0xbb   : > { %2763 = vmatpush.bf16.msrb.mxu0 %v3706_v2  ;;  %2852 = vmatpush.bf16.msrb.mxu1 %v3714_v3 }
  0xbc   : > { %819 = vmatmul.bf16.gmra.mxu2 %v4846_v4  ;;  %779 = vmatmul.bf16.gmra.mxu0 %v3655_v25 }
  0xbd   : > { %908 = vmatmul.bf16.gmra.mxu3 %v4846_v4  ;;  %1050 = vmatpush.bf16.msrb.mxu2 %v3479_v15 }
  0xbe   : > { %1139 = vmatpush.bf16.msrb.mxu3 %v3483_v18  ;;  %868 = vmatmul.bf16.gmra.mxu1 %v3655_v25  ;;  %v3705_v18 = vld [vmem:[%s4788_s2 + $0x18] sm:$0xff] }
  0xbf   : > { %2764 = vmatpush.bf16.msrb.mxu0 %v3705_v18  ;;  %2853 = vmatpush.bf16.msrb.mxu1 %v3713_v20  ;;  %v3704_v20 = vld [vmem:[%s4788_s2 + $0x10] sm:$0xff] }
  0xc1   : > { %1051 = vmatpush.bf16.msrb.mxu2 %v3471_v23 }
  0xc2   : > { %1140 = vmatpush.bf16.msrb.mxu3 %v3475_v26 }
  0xc3   : > { %2765 = vmatpush.bf16.msrb.mxu0 %v3704_v20 }
  0xc5   : > { %1052 = vmatpush.bf16.msrb.mxu2 %v3463_v31 }
  0xc6   : > { %1141 = vmatpush.bf16.msrb.mxu3 %v3467_v34 }
  0xc9   : > { %1053 = vmatpush.bf16.msrb.mxu2 %v3455_v39 }
  0xca   : > { %1142 = vmatpush.bf16.msrb.mxu3 %v3459_v42 }
  0xcc   : > { %824 = vmatmul.bf16.gmra.mxu2 %v4855_v11  ;;  %784 = vmatmul.bf16.gmra.mxu0 %v3656_v33 }
  0xcd   : > { %913 = vmatmul.bf16.gmra.mxu3 %v4855_v11 }
  0xce   : > { %873 = vmatmul.bf16.gmra.mxu1 %v3656_v33 }
  0xdc   : > { %829 = vmatmul.bf16.gmra.mxu2 %v4865_v19  ;;  %789 = vmatmul.bf16.gmra.mxu0 %v3657_v41 }
  0xdd   : > { %918 = vmatmul.bf16.gmra.mxu3 %v4865_v19 }
  0xde   : > { %878 = vmatmul.bf16.gmra.mxu1 %v3657_v41 }
  0xec   : > { %834 = vmatmul.bf16.gmra.mxu2 %v4875_v27  ;;  %794 = vmatmul.bf16.gmra.mxu0 %v3658_v44 }
  0xed   : > { %923 = vmatmul.bf16.gmra.mxu3 %v4875_v27 }
  0xee   : > { %883 = vmatmul.bf16.gmra.mxu1 %v3658_v44 }
  0xfc   : > { %839 = vmatmul.bf16.gmra.mxu2 %v3667_v35  ;;  %799 = vmatmul.bf16.gmra.mxu0 %v3659_v46 }
  0xfd   : > { %928 = vmatmul.bf16.gmra.mxu3 %v3667_v35 }
  0xfe   : > { %888 = vmatmul.bf16.gmra.mxu1 %v3659_v46 }
 0x10c   : > { %844 = vmatmul.bf16.gmra.mxu2 %v3668_v43  ;;  %804 = vmatmul.bf16.gmra.mxu0 %v3660_v47 }
 0x10d   : > { %933 = vmatmul.bf16.gmra.mxu3 %v3668_v43 }
 0x10e   : > { %893 = vmatmul.bf16.gmra.mxu1 %v3660_v47 }
 0x11c   : > { %849 = vmatmul.bf16.gmra.mxu2 %v3669_v45  ;;  %809 = vmatmul.bf16.gmra.mxu0 %v3661_v52 }
 0x11d   : > { %938 = vmatmul.bf16.gmra.mxu3 %v3669_v45 }
 0x11e   : > { %898 = vmatmul.bf16.gmra.mxu1 %v3661_v52 }
 0x12c   : > { %1054 = vmatmul.bf16.vlgmr.msrb.gmra.mxu2 %v3654_v17 }
 0x12d   : > { %1143 = vmatmul.bf16.vlgmr.msrb.gmra.mxu3 %v3654_v17 }
 0x12f   : > { %v815_v50 = vpop.f32.mrf.mxu2 }
 0x130   : > { %v904_v51 = vpop.f32.mrf.mxu3  ;;  %v4938_v17 = vadd.f32 %v815_v50, %v4929_v13 }
 0x131   : > { %v4943_v21 = vadd.f32 %v904_v51, %v4935_v16 }
 0x132   : > { %v3548_v22 = vmul.f32 -1.442695, %v4938_v17 }
 0x133   : > { %v3549_v23 = vmul.f32 -1.442695, %v4943_v21 }
 0x134   : > { %3960 = vpow2.f32 %v3548_v22  ;;  %v3712_v22 = vld [vmem:[%s4788_s2 + $0x50] sm:$0xff] }
 0x135   : > { %3962 = vpow2.f32 %v3549_v23  ;;  %2854 = vmatpush.bf16.msrb.mxu1 %v3712_v22 }
 0x137   : > { %v817_v55 = vpop.f32.mrf.mxu2 }
 0x138   : > { %v906_v56 = vpop.f32.mrf.mxu3  ;;  %v4952_v26 = vadd.f32 %v817_v55, %v4929_v13 }
 0x139   : > { %v4955_v28 = vadd.f32 %v906_v56, %v4935_v16 }
 0x13a   : > { %v3550_v29 = vmul.f32 -1.442695, %v4952_v26  ;;  %v3961_v30 = vpop.eup %3960 }
 0x13b   : > { %v3551_v31 = vmul.f32 -1.442695, %v4955_v28  ;;  %v4962_v34 = vadd.f32 1.0, %v3961_v30 }
 0x13c   : > { %1059 = vmatmul.bf16.gmra.mxu2 %v3655_v25  ;;  %3964 = vpow2.f32 %v3550_v29 }
 0x13d   : > { %1148 = vmatmul.bf16.gmra.mxu3 %v3655_v25  ;;  %3966 = vpow2.f32 %v3551_v31  ;;  %v1971_v23 = vand.u32 2147483648, %v4962_v34  ;;  %vm1965_vm0 = vweird.f32 %v4962_v34 }
 0x13e   : > { %3968 = vrcp.f32 %v4962_v34 }
 0x13f   : > { %v820_v58 = vpop.f32.mrf.mxu2 }
 0x140   : > { %v909_v59 = vpop.f32.mrf.mxu3  ;;  %v4960_v32 = vadd.f32 %v820_v58, %v4929_v13 }
 0x141   : > { %v4965_v35 = vadd.f32 %v909_v59, %v4935_v16 }
 0x142   : > { %v3552_v38 = vmul.f32 -1.442695, %v4960_v32 }
 0x143   : > { %v3553_v40 = vmul.f32 -1.442695, %v4965_v35 }
 0x144   : > { %3970 = vpow2.f32 %v3552_v38 }
 0x147   : > { %v4902_v62 = vpop.f32.mrf.mxu2 }
 0x148   : > { %v4904_v63 = vpop.f32.mrf.mxu3 }
 0x149   : > { %v4995_v49 = vadd.f32 %v4904_v63, %v4935_v16 }
 0x14b   : > { %v3555_v58 = vmul.f32 -1.442695, %v4995_v49 }
 0x14c   : > { %1064 = vmatmul.bf16.gmra.mxu2 %v3656_v33 }
 0x14d   : > { %1153 = vmatmul.bf16.gmra.mxu3 %v3656_v33  ;;  %v3963_v33 = vpop.eup %3962 }
 0x14e   : > { %v4974_v39 = vadd.f32 1.0, %v3963_v33 }
 0x14f   : > { %v4906_v0 = vpop.f32.mrf.mxu2 }
 0x150   : > { %v4908_v1 = vpop.f32.mrf.mxu3  ;;  %3972 = vrcp.f32 %v4974_v39  ;;  %v5008_v55 = vadd.f32 %v4906_v0, %v4929_v13  ;;  %vm1980_vm1 = vweird.f32 %v4974_v39 }
 0x151   : > { %3974 = vpow2.f32 %v3553_v40  ;;  %v5023_v63 = vadd.f32 %v4908_v1, %v4935_v16  ;;  %v1984_v40 = vand.u32 2147483647, %v4974_v39 }
 0x153   : > { %v3557_v31 = vmul.f32 -1.442695, %v5023_v63  ;;  %vm5074_vm6 = vcmp.eq.f32.partialorder %v1984_v40, 8.507059e+37 }
 0x157   : > { %v4912_v5 = vpop.f32.mrf.mxu2 }
 0x158   : > { %v4914_v6 = vpop.f32.mrf.mxu3 }
 0x15c   : > { %1069 = vmatmul.bf16.gmra.mxu2 %v3657_v41 }
 0x15d   : > { %1158 = vmatmul.bf16.gmra.mxu3 %v3657_v41  ;;  %v3965_v41 = vpop.eup %3964 }
 0x15e   : > { %v3967_v42 = vpop.eup %3966  ;;  %v4979_v43 = vadd.f32 1.0, %v3965_v41 }
 0x15f   : > { %v4916_v7 = vpop.f32.mrf.mxu2  ;;  %v4985_v45 = vpop.eup %3968 }
 0x160   : > { %v4918_v8 = vpop.f32.mrf.mxu3  ;;  %v3971_v48 = vpop.eup %3970  ;;  %v1961_v51 = vmul.f32 %v4985_v45, %v4962_v34  ;;  %3976 = vrcp.f32 %v4979_v43  ;;  %vm1966_vm2 = vweird.f32 %v4985_v45  ;;  %v1999_v22 = vand.u32 2147483647, %v4979_v43 }
 0x161   : > { %v4997_v50 = vpop.eup %3972  ;;  %v5004_v54 = vadd.f32 1.0, %v3971_v48  ;;  %v1986_v48 = vand.u32 2147483648, %v4974_v39  ;;  %vm5068_vm4 = vmor %vm1965_vm0, %vm1966_vm2  ;;  %vm1995_vm8 = vweird.f32 %v4979_v43 }
 0x162   : > { %v3975_v53 = vpop.eup %3974  ;;  %v1976_v56 = vmul.f32 %v4997_v50, %v4974_v39  ;;  %v1962_v59 = vsub.f32 1.0, %v1961_v51  ;;  %vm1981_vm5 = vweird.f32 %v4997_v50  ;;  %vm5107_vm9 = vcmp.eq.f32.partialorder %v1999_v22, 8.507059e+37 }
 0x163   : > { %v5013_v60 = vadd.f32 1.0, %v3975_v53  ;;  %vm5098_vm7 = vmor %vm1980_vm1, %vm1981_vm5  ;;  %vm2025_vm15 = vweird.f32 %v5004_v54 }
 0x164   : > { %v1977_v2 = vsub.f32 1.0, %v1976_v56  ;;  %v1963_v18 = vmul.f32 %v4985_v45, %v1962_v59 }
 0x166   : > { %v5018_v61 = vpop.eup %3976  ;;  %v1978_v38 = vmul.f32 %v4997_v50, %v1977_v2  ;;  %v1964_v41 = vadd.f32 %v4985_v45, %v1963_v18 }
 0x167   : > { %v4920_v9 = vpop.f32.mrf.mxu2  ;;  %v1991_v1 = vmul.f32 %v5018_v61, %v4979_v43  ;;  %vm1996_vm11 = vweird.f32 %v5018_v61 }
 0x168   : > { %v4922_v10 = vpop.f32.mrf.mxu3  ;;  %v1979_v20 = vadd.f32 %v4997_v50, %v1978_v38  ;;  %v864_v38 = vpop.f32.mrf.mxu1  ;;  %vm5147_vm14 = vmor %vm1995_vm8, %vm1996_vm11 }
 0x169   : > { %v1992_v53 = vsub.f32 1.0, %v1991_v1 }
 0x16c   : > { %1074 = vmatmul.bf16.gmra.mxu2 %v3658_v44 }
 0x16d   : > { %1163 = vmatmul.bf16.gmra.mxu3 %v3658_v44  ;;  %v4983_v44 = vadd.f32 %v4902_v62, %v4929_v13  ;;  %v3556_v62 = vmul.f32 -1.442695, %v5008_v55 }
 0x16f   : > { %v4931_v14 = vpop.f32.mrf.mxu2 }
 0x170   : > { %v4933_v15 = vpop.f32.mrf.mxu3 }
 0x177   : > { %v4947_v24 = vpop.f32.mrf.mxu2 }
 0x178   : > { %7826 = vst [vmem:[#allocation30_spill] sm:$0xff] %v4947_v24  ;;  %v4949_v25 = vpop.f32.mrf.mxu3 }
 0x179   : > { %7827 = vst [vmem:[#allocation31_spill] sm:$0xff] %v4949_v25 }
 0x17c   : > { %1079 = vmatmul.bf16.gmra.mxu2 %v3659_v46 }
 0x17d   : > { %1168 = vmatmul.bf16.gmra.mxu3 %v3659_v46 }
 0x17f   : > { %v4967_v36 = vpop.f32.mrf.mxu2 }
 0x180   : > { %7828 = vst [vmem:[#allocation32_spill] sm:$0xff] %v4967_v36  ;;  %v4969_v37 = vpop.f32.mrf.mxu3 }
 0x181   : > { %7829 = vst [vmem:[#allocation33_spill] sm:$0xff] %v4969_v37 }
 0x187   : > { %v4989_v46 = vpop.f32.mrf.mxu2 }
 0x188   : > { %7830 = vst [vmem:[#allocation34_spill] sm:$0xff] %v4989_v46 }
 0x18c   : > { %1084 = vmatmul.bf16.gmra.mxu2 %v3660_v47 }
 0x18d   : > { %1173 = vmatmul.bf16.gmra.mxu3 %v3660_v47  ;;  %v4991_v47 = vpop.f32.mrf.mxu3 }
 0x18e   : > { %7831 = vst [vmem:[#allocation35_spill] sm:$0xff] %v4991_v47 }
 0x18f   : > { %v5027_v3 = vpop.f32.mrf.mxu2 }
 0x190   : > { %7832 = vst [vmem:[#allocation36_spill] sm:$0xff] %v5027_v3 }
 0x195   : > { %v5029_v12 = vpop.f32.mrf.mxu3 }
 0x196   : > { %7833 = vst [vmem:[#allocation37_spill] sm:$0xff] %v5029_v12  ;;  %v1993_v12 = vmul.f32 %v5018_v61, %v1992_v53  ;;  %v1983_v53 = vsel %vm5098_vm7, %v4997_v50, %v1979_v20 }
 0x197   : > { %v5090_v47 = vpop.f32.mrf.mxu2 }
 0x198   : > { %7841 = vst [vmem:[#allocation39_spill] sm:$0xff] %v5090_v47  ;;  %v1994_v50 = vadd.f32 %v5018_v61, %v1993_v12 }
 0x19c   : > { %1089 = vmatmul.bf16.gmra.mxu2 %v3661_v52 }
 0x19d   : > { %1178 = vmatmul.bf16.gmra.mxu3 %v3661_v52  ;;  %v3554_v52 = vmul.f32 -1.442695, %v4983_v44  ;;  %v5092_v46 = vpop.f32.mrf.mxu3 }
 0x19e   : > { %7842 = vst [vmem:[#allocation40_spill] sm:$0xff] %v5092_v46 }
 0x1ac   : > { %1094 = vmatmul.bf16.gmra.mxu2 %v4835_v57 }
 0x1ad   : > { %1183 = vmatmul.bf16.gmra.mxu3 %v4835_v57  ;;  %v4987_v57 = vadd.f32 1.0, %v3967_v42 }
 0x1af   : > { %3978 = vrcp.f32 %v4987_v57  ;;  %vm2010_vm10 = vweird.f32 %v4987_v57  ;;  %v2016_v39 = vand.u32 2147483648, %v4987_v57 }
 0x1b0   : > { %3980 = vpow2.f32 %v3554_v52  ;;  %v1972_v52 = vor.u32 1.1754944e-38, %v1971_v23  ;;  %v775_v23 = vpop.f32.mrf.mxu0 }
 0x1b1   : > { %3982 = vrcp.f32 %v5004_v54 }
 0x1b2   : > { %3984 = vpow2.f32 %v3555_v58  ;;  %v5059_v58 = vadd.f32 %v4912_v5, %v4929_v13 }
 0x1b3   : > { %3986 = vrcp.f32 %v5013_v60 }
 0x1b4   : > { %3988 = vpow2.f32 %v3556_v62  ;;  %7836 = vst [vmem:[#allocation38_spill] sm:$0xff] %v5059_v58  ;;  %v2001_v62 = vand.u32 2147483648, %v4979_v43  ;;  %v3558_v3 = vmul.f32 -1.442695, %v5059_v58 }
 0x1b5   : > { %v5025_v0 = vpop.eup %3978  ;;  %3990 = vpow2.f32 %v3557_v31 }
 0x1b6   : > { %v3981_v29 = vpop.eup %3980  ;;  %v2006_v30 = vmul.f32 %v5025_v0, %v4987_v57  ;;  %vm2011_vm13 = vweird.f32 %v5025_v0 }
 0x1b7   : > { %v5042_v33 = vpop.eup %3982  ;;  %v5055_v56 = vadd.f32 1.0, %v3981_v29  ;;  %v1987_v29 = vor.u32 1.1754944e-38, %v1986_v48  ;;  %vm5164_vm0 = vmor %vm2010_vm10, %vm2011_vm13 }
 0x1b8   : > { %v3985_v51 = vpop.eup %3984  ;;  %v2007_v2 = vsub.f32 1.0, %v2006_v30  ;;  %v2021_v18 = vmul.f32 %v5042_v33, %v5004_v54  ;;  %v2014_v30 = vand.u32 2147483647, %v4987_v57  ;;  %vm2026_vm2 = vweird.f32 %v5042_v33 }
 0x1b9   : > { %v5061_v59 = vpop.eup %3986  ;;  %v5083_v31 = vadd.f32 1.0, %v3985_v51  ;;  %3992 = vrcp.f32 %v5055_v56  ;;  %v1988_v42 = vsel %vm5074_vm6, %v1987_v29, %v1983_v53  ;;  %v2031_v29 = vand.u32 2147483648, %v5004_v54 }
 0x1ba   : > { %v3989_v1 = vpop.eup %3988  ;;  %v2036_v40 = vmul.f32 %v5061_v59, %v5013_v60  ;;  %v2008_v48 = vmul.f32 %v5025_v0, %v2007_v2  ;;  %v2022_v51 = vsub.f32 1.0, %v2021_v18  ;;  %vm5118_vm12 = vcmp.eq.f32.partialorder %v2014_v30, 8.507059e+37 }
 0x1bb   : > { %v5113_v46 = vadd.f32 1.0, %v3989_v1  ;;  %v3991_v47 = vpop.eup %3990  ;;  %3994 = vrcp.f32 %v5083_v31  ;;  %v2029_v18 = vand.u32 2147483647, %v5004_v54  ;;  %v2044_v53 = vand.u32 2147483647, %v5013_v60 }
 0x1bc   : > { %1099 = vmatmul.bf16.gmra.mxu2 %v4846_v4  ;;  %v2037_v20 = vsub.f32 1.0, %v2036_v40  ;;  %3996 = vpow2.f32 %v3558_v3  ;;  %v2023_v22 = vmul.f32 %v5042_v33, %v2022_v51  ;;  %v5135_v12 = vadd.f32 1.0, %v3991_v47  ;;  %v5173_v40 = vpop.f32.mrf.mxu0 }
 0x1bd   : > { %1188 = vmatmul.bf16.gmra.mxu3 %v4846_v4  ;;  %v1969_v4 = vand.u32 2147483647, %v4962_v34  ;;  %v1968_v34 = vsel %vm5068_vm4, %v4985_v45, %v1964_v41  ;;  %v2002_v41 = vor.u32 1.1754944e-38, %v2001_v62  ;;  %3998 = vrcp.f32 %v5113_v46  ;;  %vm5206_vm4 = vmor %vm2025_vm15, %vm2026_vm2 }
 0x1be   : > { %v5138_v3 = vadd.f32 %v775_v23, %v4929_v13  ;;  %v5154_v47 = vadd.f32 %v864_v38, %v4935_v16  ;;  %v5157_v23 = vmul.f32 %v1988_v42, %v4943_v21  ;;  %vm5168_vm1 = vcmp.eq.f32.partialorder %v2029_v18, 8.507059e+37 }
 0x1bf   : > { %vm5050_vm3 = vcmp.eq.f32.partialorder %v1969_v4, 8.507059e+37  ;;  %v5132_v1 = vpop.eup %3992  ;;  %v2038_v38 = vmul.f32 %v5061_v59, %v2037_v20  ;;  %v2024_v57 = vadd.f32 %v5042_v33, %v2023_v22  ;;  %4000 = vrcp.f32 %v5135_v12 }
 0x1c0   : > { %v1973_v62 = vsel %vm5050_vm3, %v1972_v52, %v1968_v34  ;;  %v2009_v52 = vadd.f32 %v5025_v0, %v2008_v48  ;;  %v2017_v34 = vor.u32 1.1754944e-38, %v2016_v39  ;;  %7852 = vst [vmem:[#allocation42_spill] sm:$0xff] %v5157_v23  ;;  %v2051_v45 = vmul.f32 %v5132_v1, %v5055_v56  ;;  %v5184_v48 = vpop.f32.mrf.mxu1 }
 0x1c1   : > { %v5175_v21 = vpop.eup %3994  ;;  %v2046_v39 = vand.u32 2147483648, %v5013_v60  ;;  %v2032_v20 = vor.u32 1.1754944e-38, %v2031_v29  ;;  %vm2040_vm3 = vweird.f32 %v5013_v60  ;;  %v3517_v42 = vmul.f32 -1.442695, %v5154_v47 }
 0x1c2   : > { %v3997_v51 = vpop.eup %3996  ;;  %vm2041_vm5 = vweird.f32 %v5061_v59  ;;  %v5214_v4 = vadd.f32 %v4914_v6, %v4935_v16  ;;  %v2028_v2 = vsel %vm5206_vm4, %v5042_v33, %v2024_v57  ;;  %v2066_v54 = vmul.f32 %v5175_v21, %v5083_v31 }
 0x1c3   : > { %v5221_v29 = vadd.f32 1.0, %v3997_v51  ;;  %vm5223_vm6 = vcmp.eq.f32.partialorder %v2044_v53, 8.507059e+37  ;;  %v2047_v43 = vor.u32 1.1754944e-38, %v2046_v39  ;;  %vm5233_vm7 = vmor %vm2040_vm3, %vm2041_vm5  ;;  %vm2055_vm8 = vweird.f32 %v5055_v56 }
 0x1c4   : > { %7861 = vst [vmem:[#allocation45_spill] sm:$0xff] %v5214_v4  ;;  %v3559_v53 = vmul.f32 -1.442695, %v5214_v4  ;;  %v5258_v30 = vadd.f32 %v4916_v7, %v4929_v13  ;;  %vm2070_vm10 = vweird.f32 %v5083_v31  ;;  %v2074_v5 = vand.u32 2147483647, %v5083_v31 }
 0x1c5   : > { %vm2056_vm11 = vweird.f32 %v5132_v1  ;;  %vm2071_vm15 = vweird.f32 %v5175_v21  ;;  %vm2100_vm2 = vweird.f32 %v5135_v12 }
 0x1c6   : > { %7868 = vst [vmem:[#allocation48_spill] sm:$0xff] %v5258_v30  ;;  %vm5302_vm13 = vcmp.eq.f32.partialorder %v2074_v5, 8.507059e+37  ;;  %vm5356_vm3 = vmor %vm2070_vm10, %vm2071_vm15 }
 0x1cc   : > { %1104 = vmatmul.bf16.gmra.mxu2 %v4855_v11 }
 0x1cd   : > { %1193 = vmatmul.bf16.gmra.mxu3 %v4855_v11  ;;  %v5141_v11 = vmul.f32 %v1973_v62, %v4938_v17  ;;  %v1998_v17 = vsel %vm5147_vm14, %v5018_v61, %v1994_v50  ;;  %v2013_v61 = vsel %vm5164_vm0, %v5025_v0, %v2009_v52  ;;  %v3516_v62 = vmul.f32 -1.442695, %v5138_v3  ;;  %v5190_v50 = vpop.f32.mrf.mxu2  ;;  %v5192_v0 = vpop.f32.mrf.mxu3  ;;  %vm5317_vm14 = vmor %vm2055_vm8, %vm2056_vm11 }
 0x1ce   : > { %7857 = vst [vmem:[#allocation43_spill] sm:$0xff] %v5190_v50  ;;  %v2003_v18 = vsel %vm5107_vm9, %v2002_v41, %v1998_v17  ;;  %v5198_v52 = vpop.eup %3998  ;;  %v2018_v22 = vsel %vm5118_vm12, %v2017_v34, %v2013_v61  ;;  %v2039_v41 = vadd.f32 %v5061_v59, %v2038_v38  ;;  %v2052_v34 = vsub.f32 1.0, %v2051_v45 }
 0x1cf   : > { %7849 = vst [vmem:[#allocation41_spill] sm:$0xff] %v5141_v11  ;;  %v2061_v38 = vand.u32 2147483648, %v5055_v56  ;;  %4002 = vpow2.f32 %v3516_v62  ;;  %v5229_v6 = vmul.f32 %v2003_v18, %v4952_v26  ;;  %v2059_v61 = vand.u32 2147483647, %v5055_v56  ;;  %v5240_v45 = vpop.eup %4000 }
 0x1d0   : > { %7858 = vst [vmem:[#allocation44_spill] sm:$0xff] %v5192_v0  ;;  %v2081_v57 = vmul.f32 %v5198_v52, %v5113_v46  ;;  %4004 = vpow2.f32 %v3517_v42  ;;  %v5243_v51 = vmul.f32 %v2018_v22, %v4955_v28  ;;  %v2033_v26 = vsel %vm5168_vm1, %v2032_v20, %v2028_v2  ;;  %v780_v20 = vpop.f32.mrf.mxu0 }
 0x1d1   : > { %7864 = vst [vmem:[#allocation46_spill] sm:$0xff] %v5229_v6  ;;  %v2043_v60 = vsel %vm5233_vm7, %v5061_v59, %v2039_v41  ;;  %v2053_v39 = vmul.f32 %v5132_v1, %v2052_v34  ;;  %v2067_v62 = vsub.f32 1.0, %v2066_v54  ;;  %v2076_v18 = vand.u32 2147483648, %v5083_v31  ;;  %v869_v34 = vpop.f32.mrf.mxu1 }
 0x1d2   : > { %7867 = vst [vmem:[#allocation47_spill] sm:$0xff] %v5243_v51  ;;  %4006 = vrcp.f32 %v5221_v29  ;;  %v2062_v28 = vor.u32 1.1754944e-38, %v2061_v38  ;;  %v2091_v42 = vand.u32 2147483648, %v5113_v46  ;;  %v2048_v59 = vsel %vm5223_vm6, %v2047_v43, %v2043_v60  ;;  %v3703_v60 = vld [vmem:[%s4788_s2 + $0x8] sm:$0xff] }
 0x1d3   : > { %vm5262_vm9 = vcmp.eq.f32.partialorder %v2059_v61, 8.507059e+37  ;;  %v2082_v41 = vsub.f32 1.0, %v2081_v57  ;;  %v2096_v2 = vmul.f32 %v5240_v45, %v5135_v12  ;;  %v5271_v54 = vmul.f32 %v2033_v26, %v4960_v32  ;;  %2766 = vmatpush.bf16.msrb.mxu0 %v3703_v60 }
 0x1d4   : > { %v2089_v17 = vand.u32 2147483647, %v5113_v46  ;;  %4008 = vpow2.f32 %v3559_v53  ;;  %v2054_v61 = vadd.f32 %v5132_v1, %v2053_v39  ;;  %v2068_v57 = vmul.f32 %v5175_v21, %v2067_v62  ;;  %v3711_v53 = vld [vmem:[%s4788_s2 + $0x48] sm:$0xff] }
 0x1d5   : > { %v4003_v7 = vpop.eup %4002  ;;  %7871 = vst [vmem:[#allocation49_spill] sm:$0xff] %v5271_v54  ;;  %v5275_v43 = vpop.f32.mrf.mxu2  ;;  %v2077_v32 = vor.u32 1.1754944e-38, %v2076_v18  ;;  %vm2085_vm12 = vweird.f32 %v5113_v46  ;;  %v5286_v26 = vadd.f32 %v5173_v40, %v4929_v13  ;;  %v5298_v39 = vadd.f32 %v5184_v48, %v4935_v16  ;;  %2855 = vmatpush.bf16.msrb.mxu1 %v3711_v53 }
 0x1d6   : > { %7872 = vst [vmem:[#allocation50_spill] sm:$0xff] %v5275_v43  ;;  %v5277_v38 = vpop.f32.mrf.mxu3  ;;  %v4005_v33 = vpop.eup %4004  ;;  %v5293_v43 = vor.u32 1.1754944e-38, %v2091_v42  ;;  %v2083_v40 = vmul.f32 %v5198_v52, %v2082_v41  ;;  %v2097_v0 = vsub.f32 1.0, %v2096_v2  ;;  %v5311_v42 = vadd.f32 1.0, %v4003_v7 }
 0x1d7   : > { %7873 = vst [vmem:[#allocation51_spill] sm:$0xff] %v5277_v38  ;;  %v5291_v38 = vmul.f32 %v2048_v59, %v4965_v35  ;;  %v5309_v35 = vadd.f32 %v4918_v8, %v4935_v16  ;;  %vm2086_vm0 = vweird.f32 %v5198_v52  ;;  %v5325_v8 = vadd.f32 %v4920_v9, %v4929_v13 }
 0x1d8   : > { %v5300_v62 = vpop.eup %4006  ;;  %v5327_v59 = vadd.f32 1.0, %v4005_v33  ;;  %v2058_v5 = vsel %vm5317_vm14, %v5132_v1, %v2054_v61  ;;  %v2069_v56 = vadd.f32 %v5175_v21, %v2068_v57  ;;  %vm5333_vm1 = vcmp.eq.f32.partialorder %v2089_v17, 8.507059e+37  ;;  %vm5375_vm4 = vmor %vm2085_vm12, %vm2086_vm0 }
 0x1d9   : > { %7874 = vst [vmem:[#allocation52_spill] sm:$0xff] %v5291_v38  ;;  %v2104_v2 = vand.u32 2147483647, %v5135_v12  ;;  %v3518_v7 = vmul.f32 -1.442695, %v5286_v26  ;;  %v2111_v33 = vmul.f32 %v5300_v62, %v5221_v29  ;;  %v5344_v1 = vadd.f32 %v780_v20, %v4929_v13 }
 0x1da   : > { %7877 = vst [vmem:[#allocation53_spill] sm:$0xff] %v5309_v35  ;;  %v4009_v9 = vpop.eup %4008  ;;  %v3519_v60 = vmul.f32 -1.442695, %v5298_v39  ;;  %v2084_v17 = vadd.f32 %v5198_v52, %v2083_v40  ;;  %v2098_v61 = vmul.f32 %v5240_v45, %v2097_v0  ;;  %v3561_v57 = vmul.f32 -1.442695, %v5309_v35  ;;  %v782_v0 = vpop.f32.mrf.mxu0 }
 0x1db   : > { %7880 = vst [vmem:[#allocation54_spill] sm:$0xff] %v5325_v8  ;;  %v2063_v53 = vsel %vm5262_vm9, %v2062_v28, %v2058_v5  ;;  %v2106_v20 = vand.u32 2147483648, %v5135_v12  ;;  %v3562_v40 = vmul.f32 -1.442695, %v5325_v8  ;;  %v2073_v22 = vsel %vm5356_vm3, %v5175_v21, %v2069_v56  ;;  %v5381_v56 = vpop.f32.mrf.mxu1 }
 0x1dc   : > { %1109 = vmatmul.bf16.gmra.mxu2 %v4865_v19  ;;  %v5366_v28 = vadd.f32 1.0, %v4009_v9  ;;  %v5369_v31 = vadd.f32 %v869_v34, %v4935_v16  ;;  %vm2101_vm5 = vweird.f32 %v5240_v45  ;;  %v2112_v5 = vsub.f32 1.0, %v2111_v33 }
 0x1dd   : > { %1198 = vmatmul.bf16.gmra.mxu3 %v4865_v19  ;;  %v3560_v19 = vmul.f32 -1.442695, %v5258_v30  ;;  %v3520_v21 = vmul.f32 -1.442695, %v5344_v1  ;;  %v2088_v34 = vsel %vm5375_vm4, %v5198_v52, %v2084_v17  ;;  %v2119_v46 = vand.u32 2147483647, %v5221_v29  ;;  %vm5415_vm7 = vmor %vm2100_vm2, %vm2101_vm5 }
 0x1de   : > { %7885 = vst [vmem:[#allocation55_spill] sm:$0xff] %v5366_v28  ;;  %v2121_v33 = vand.u32 2147483648, %v5221_v29  ;;  %vm5397_vm6 = vcmp.eq.f32.partialorder %v2104_v2, 8.507059e+37  ;;  %v2107_v17 = vor.u32 1.1754944e-38, %v2106_v20  ;;  %vm2115_vm8 = vweird.f32 %v5221_v29 }
 0x1df   : > { %4010 = vpow2.f32 %v3560_v19  ;;  %v2078_v19 = vsel %vm5302_vm13, %v2077_v32, %v2073_v22  ;;  %v5406_v32 = vmul.f32 %v2063_v53, %v4983_v44  ;;  %vm5429_vm9 = vcmp.eq.f32.partialorder %v2119_v46, 8.507059e+37 }
 0x1e0   : > { %4012 = vrcp.f32 %v5311_v42  ;;  %v2122_v53 = vor.u32 1.1754944e-38, %v2121_v33  ;;  %v2136_v22 = vand.u32 2147483648, %v5366_v28  ;;  %vm2116_vm10 = vweird.f32 %v5300_v62 }
 0x1e1   : > { %4014 = vrcp.f32 %v5327_v59  ;;  %7891 = vst [vmem:[#allocation57_spill] sm:$0xff] %v5406_v32  ;;  %vm5479_vm11 = vmor %vm2115_vm8, %vm2116_vm10  ;;  %vm1485_vm12 = vweird.f32 %v5311_v42  ;;  %vm1500_vm14 = vweird.f32 %v5327_v59  ;;  %v1506_v30 = vand.u32 2147483648, %v5327_v59 }
 0x1e2   : > { %4016 = vpow2.f32 %v3518_v7  ;;  %v2099_v7 = vadd.f32 %v5240_v45, %v2098_v61  ;;  %v3521_v61 = vmul.f32 -1.442695, %v5369_v31 }
 0x1e3   : > { %4018 = vpow2.f32 %v3519_v60  ;;  %v5393_v60 = vadd.f32 %v4922_v10, %v4935_v16  ;;  %v2093_v10 = vsel %vm5333_vm1, %v5293_v43, %v2088_v34  ;;  %v1507_v36 = vor.u32 1.1754944e-38, %v1506_v30 }
 0x1e4   : > { %4020 = vpow2.f32 %v3561_v57  ;;  %v2113_v57 = vmul.f32 %v5300_v62, %v2112_v5  ;;  %v2103_v44 = vsel %vm5415_vm7, %v5240_v45, %v2099_v7  ;;  %v5439_v45 = vmul.f32 %v2093_v10, %v5008_v55 }
 0x1e5   : > { %v4011_v9 = vpop.eup %4010  ;;  %4022 = vpow2.f32 %v3562_v40  ;;  %7888 = vst [vmem:[#allocation56_spill] sm:$0xff] %v5393_v60  ;;  %v5421_v40 = vmul.f32 %v2078_v19, %v4995_v49  ;;  %v3563_v48 = vmul.f32 -1.442695, %v5393_v60  ;;  %v5436_v49 = vadd.f32 %v782_v0, %v4929_v13 }
 0x1e6   : > { %v5395_v50 = vpop.eup %4012  ;;  %4024 = vrcp.f32 %v5366_v28  ;;  %v5427_v43 = vadd.f32 1.0, %v4011_v9  ;;  %7898 = vst [vmem:[#allocation60_spill] sm:$0xff] %v5439_v45  ;;  %v2108_v7 = vsel %vm5397_vm6, %v2107_v17, %v2103_v44  ;;  %v2114_v46 = vadd.f32 %v5300_v62, %v2113_v57  ;;  %v5453_v9 = vpop.f32.mrf.mxu0  ;;  %v3710_v44 = vld [vmem:[%s4788_s2 + $0x40] sm:$0xff] }
 0x1e7   : > { %v5403_v18 = vpop.eup %4014  ;;  %4026 = vpow2.f32 %v3520_v21  ;;  %7894 = vst [vmem:[#allocation58_spill] sm:$0xff] %v5421_v40  ;;  %v5444_v21 = vadd.f32 %v4931_v14, %v4929_v13  ;;  %v1481_v0 = vmul.f32 %v5395_v50, %v5311_v42  ;;  %v3522_v2 = vmul.f32 -1.442695, %v5436_v49  ;;  %v5468_v57 = vpop.f32.mrf.mxu1  ;;  %2856 = vmatpush.bf16.msrb.mxu1 %v3710_v44 }
 0x1e8   : > { %v4017_v20 = vpop.eup %4016  ;;  %7895 = vst [vmem:[#allocation59_spill] sm:$0xff] %v5427_v43  ;;  %4028 = vpow2.f32 %v3521_v61  ;;  %v1496_v33 = vmul.f32 %v5403_v18, %v5327_v59  ;;  %v5463_v61 = vor.u32 1.1754944e-38, %v2136_v22  ;;  %v5473_v14 = vmul.f32 %v2108_v7, %v5023_v63 }
 0x1e9   : > { %v4019_v12 = vpop.eup %4018  ;;  %7899 = vst [vmem:[#allocation61_spill] sm:$0xff] %v5444_v21  ;;  %v5451_v55 = vadd.f32 1.0, %v4017_v20  ;;  %4030 = vrcp.f32 %v5427_v43  ;;  %v3702_v20 = vld [vmem:[%s4788_s2] sm:$0xff]  ;;  %v2118_v60 = vsel %vm5479_vm11, %v5300_v62, %v2114_v46  ;;  %v1482_v7 = vsub.f32 1.0, %v1481_v0  ;;  %v5502_v62 = vpop.f32.mrf.mxu3 }
 0x1ea   : > { %v4021_v5 = vpop.eup %4020  ;;  %v5461_v52 = vadd.f32 1.0, %v4019_v12  ;;  %7901 = vst [vmem:[#allocation63_spill] sm:$0xff] %v5463_v61  ;;  %4032 = vpow2.f32 %v3563_v48  ;;  %v2151_v48 = vand.u32 2147483648, %v5427_v43  ;;  %2767 = vmatpush.bf16.msrb.mxu0 %v3702_v20  ;;  %v5500_v12 = vpop.f32.mrf.mxu2  ;;  %v5506_v0 = vmul.f32 -1.442695, %v5444_v21 }
 0x1eb   : > { %v4023_v34 = vpop.eup %4022  ;;  %v5465_v10 = vadd.f32 1.0, %v4021_v5  ;;  %7903 = vst [vmem:[#allocation65_spill] sm:$0xff] %v5473_v14  ;;  %4034 = vrcp.f32 %v5451_v55  ;;  %v1497_v14 = vsub.f32 1.0, %v1496_v33  ;;  %v5510_v33 = vadd.f32 %v4933_v15, %v4935_v16 }
 0x1ec   : > { %v5455_v19 = vpop.eup %4024  ;;  %v5485_v5 = vadd.f32 1.0, %v4023_v34  ;;  %4036 = vrcp.f32 %v5461_v52  ;;  %v5498_v34 = vadd.f32 %v5381_v56, %v4935_v16  ;;  %7907 = vst [vmem:[#allocation67_spill] sm:$0xff] %v5506_v0  ;;  %v5516_v56 = vsel %vm5429_vm9, %v2122_v53, %v2118_v60 }
 0x1ed   : > { %7900 = vst [vmem:[#allocation62_spill] sm:$0xff] %v5455_v19  ;;  %v4027_v17 = vpop.eup %4026  ;;  %v2126_v63 = vmul.f32 %v5455_v19, %v5366_v28  ;;  %v2166_v46 = vand.u32 2147483648, %v5465_v10  ;;  %4038 = vpow2.f32 %v3522_v2  ;;  %v5518_v20 = vor.u32 1.1754944e-38, %v2151_v48 }
 0x1ee   : > { %7902 = vst [vmem:[#allocation64_spill] sm:$0xff] %v5465_v10  ;;  %v4029_v29 = vpop.eup %4028  ;;  %v5494_v22 = vadd.f32 1.0, %v4027_v17  ;;  %4040 = vrcp.f32 %v5465_v10  ;;  %v1483_v15 = vmul.f32 %v5395_v50, %v1482_v7  ;;  %v1498_v41 = vmul.f32 %v5403_v18, %v1497_v14  ;;  %v787_v7 = vpop.f32.mrf.mxu0 }
 0x1ef   : > { %7906 = vst [vmem:[#allocation66_spill] sm:$0xff] %v5485_v5  ;;  %v5512_v17 = vpop.eup %4030  ;;  %v2127_v21 = vsub.f32 1.0, %v2126_v63  ;;  %4042 = vrcp.f32 %v5485_v5  ;;  %v5524_v8 = vadd.f32 1.0, %v4029_v29  ;;  %v3523_v60 = vmul.f32 -1.442695, %v5498_v34  ;;  %v876_v4 = vpop.f32.mrf.mxu1 }
 0x1f0   : > { %7908 = vst [vmem:[#allocation68_spill] sm:$0xff] %v5510_v33  ;;  %v4033_v45 = vpop.eup %4032  ;;  %4044 = vrcp.f32 %v5494_v22  ;;  %v5534_v48 = vmul.f32 %v5512_v17, %v5427_v43  ;;  %v5536_v63 = vor.u32 1.1754944e-38, %v2166_v46  ;;  %vm1486_vm13 = vweird.f32 %v5395_v50 }
 0x1f1   : > { %7909 = vst [vmem:[#allocation69_spill] sm:$0xff] %v5512_v17  ;;  %v5530_v53 = vpop.eup %4034  ;;  %v1489_v14 = vand.u32 2147483647, %v5311_v42  ;;  %v1491_v2 = vand.u32 2147483648, %v5311_v42  ;;  %vm1501_vm15 = vweird.f32 %v5403_v18  ;;  %v1484_v35 = vadd.f32 %v5395_v50, %v1483_v15  ;;  %vm5554_vm0 = vmor %vm1485_vm12, %vm1486_vm13  ;;  %v5592_v54 = vpop.f32.mrf.mxu3  ;;  %1203 = vmatmul.bf16.gmra.mxu3 %v4875_v27 }
 0x1f2   : > { %7910 = vst [vmem:[#allocation70_spill] sm:$0xff] %v5516_v56  ;;  %v5540_v29 = vpop.eup %4036  ;;  %v1504_v46 = vand.u32 2147483647, %v5327_v59  ;;  %4046 = vrcp.f32 %v5524_v8  ;;  %v1511_v15 = vmul.f32 %v5530_v53, %v5451_v55  ;;  %v2128_v37 = vmul.f32 %v5455_v19, %v2127_v21  ;;  %vm5573_vm1 = vmor %vm1500_vm14, %vm1501_vm15  ;;  %v5590_v59 = vpop.f32.mrf.mxu2  ;;  %1114 = vmatmul.bf16.gmra.mxu2 %v4875_v27 }
 0x1f3   : > { %7911 = vst [vmem:[#allocation71_spill] sm:$0xff] %v5518_v20  ;;  %v4039_v44 = vpop.eup %4038  ;;  %4048 = vpow2.f32 %v3523_v60  ;;  %v5563_v20 = vadd.f32 %v5453_v9, %v4929_v13  ;;  %v1526_v60 = vmul.f32 %v5540_v29, %v5461_v52  ;;  %v5581_v9 = vadd.f32 %v5468_v57, %v4935_v16 }
 0x1f4   : > { %7912 = vst [vmem:[#allocation72_spill] sm:$0xff] %v5534_v48  ;;  %v5550_v56 = vpop.eup %4040  ;;  %v5586_v42 = vadd.f32 1.0, %v4033_v45  ;;  %v1492_v32 = vor.u32 1.1754944e-38, %v1491_v2  ;;  %v5588_v38 = vadd.f32 1.0, %v4039_v44  ;;  %v1488_v57 = vsel %vm5554_vm0, %v5395_v50, %v1484_v35 }
 0x1f5   : > { %7913 = vst [vmem:[#allocation73_spill] sm:$0xff] %v5536_v63  ;;  %v1499_v63 = vadd.f32 %v5403_v18, %v1498_v41  ;;  %v5565_v61 = vpop.eup %4042  ;;  %vm1490_vm2 = vcmp.eq.f32.partialorder %v1489_v14, 8.507059e+37  ;;  %v5600_v45 = vmul.f32 -1.442695, %v5510_v33  ;;  %vm1505_vm3 = vcmp.eq.f32.partialorder %v1504_v46, 8.507059e+37 }
 0x1f6   : > { %7914 = vst [vmem:[#allocation74_spill] sm:$0xff] %v5550_v56  ;;  %v5583_v40 = vpop.eup %4044  ;;  %v1512_v2 = vsub.f32 1.0, %v1511_v15  ;;  %v3524_v21 = vmul.f32 -1.442695, %v5563_v20  ;;  %v5609_v27 = vadd.f32 %v5455_v19, %v2128_v37  ;;  %v1527_v58 = vsub.f32 1.0, %v1526_v60  ;;  %v790_v41 = vpop.f32.mrf.mxu0 }
 0x1f7   : > { %7917 = vst [vmem:[#allocation75_spill] sm:$0xff] %v5565_v61  ;;  %v1503_v44 = vsel %vm5573_vm1, %v5403_v18, %v1499_v63  ;;  %v1541_v50 = vmul.f32 %v5583_v40, %v5494_v22  ;;  %v3525_v30 = vmul.f32 -1.442695, %v5581_v9  ;;  %v5616_v14 = vmul.f32 %v5550_v56, %v5465_v10  ;;  %v879_v33 = vpop.f32.mrf.mxu1 }
 0x1f8   : > { %7920 = vst [vmem:[#allocation76_spill] sm:$0xff] %v5586_v42  ;;  %v5606_v43 = vpop.eup %4046  ;;  %v5618_v18 = vsel %vm1490_vm2, %v1492_v32, %v1488_v57  ;;  %4050 = vrcp.f32 %v5588_v38  ;;  %v5622_v63 = vadd.f32 %v787_v7, %v4929_v13  ;;  %v5624_v37 = vsel %vm1505_vm3, %v1507_v36, %v1503_v44 }
 0x1f9   : > { %7921 = vst [vmem:[#allocation77_spill] sm:$0xff] %v5600_v45  ;;  %v4049_v35 = vpop.eup %4048  ;;  %vm1515_vm4 = vweird.f32 %v5451_v55  ;;  %v1519_v46 = vand.u32 2147483647, %v5451_v55  ;;  %v5629_v15 = vadd.f32 %v876_v4, %v4935_v16  ;;  %v1513_v60 = vmul.f32 %v5530_v53, %v1512_v2  ;;  %v5646_v48 = vpop.f32.mrf.mxu3 }
 0x1fa   : > { %7922 = vst [vmem:[#allocation78_spill] sm:$0xff] %v5609_v27  ;;  %v1521_v32 = vand.u32 2147483648, %v5451_v55  ;;  %v1556_v57 = vmul.f32 %v5606_v43, %v5524_v8  ;;  %4052 = vpow2.f32 %v3524_v21  ;;  %v1528_v7 = vmul.f32 %v5540_v29, %v1527_v58  ;;  %v5644_v10 = vpop.f32.mrf.mxu2 }
 0x1fb   : > { %7923 = vst [vmem:[#allocation79_spill] sm:$0xff] %v5616_v14  ;;  %v1542_v36 = vsub.f32 1.0, %v1541_v50  ;;  %v5636_v44 = vadd.f32 1.0, %v4049_v35  ;;  %4054 = vpow2.f32 %v3525_v30  ;;  %vm1516_vm5 = vweird.f32 %v5530_v53 }
 0x1fc   : > { %v1534_v4 = vand.u32 2147483647, %v5461_v52  ;;  %v3526_v27 = vmul.f32 -1.442695, %v5622_v63  ;;  %v5642_v2 = vadd.f32 %v790_v41, %v4929_v13  ;;  %vm1530_vm6 = vweird.f32 %v5461_v52  ;;  %vm5666_vm9 = vmor %vm1515_vm4, %vm1516_vm5 }
 0x1fd   : > { %vm1531_vm7 = vweird.f32 %v5540_v29  ;;  %v3527_v21 = vmul.f32 -1.442695, %v5629_v15  ;;  %v5652_v58 = vadd.f32 %v879_v33, %v4935_v16  ;;  %v1514_v30 = vadd.f32 %v5530_v53, %v1513_v60 }
 0x1fe   : > { %7924 = vst [vmem:[#allocation80_spill] sm:$0xff] %v5642_v2  ;;  %v5654_v50 = vpop.eup %4050  ;;  %vm5657_vm8 = vcmp.eq.f32.partialorder %v1519_v46, 8.507059e+37  ;;  %v1536_v41 = vand.u32 2147483648, %v5461_v52  ;;  %v1557_v56 = vsub.f32 1.0, %v1556_v57  ;;  %v1522_v33 = vor.u32 1.1754944e-38, %v1521_v32  ;;  %vm5675_vm10 = vmor %vm1530_vm6, %vm1531_vm7  ;;  %v792_v45 = vpop.f32.mrf.mxu0 }
 0x1ff   : > { %7925 = vst [vmem:[#allocation81_spill] sm:$0xff] %v5652_v58  ;;  %v1529_v17 = vadd.f32 %v5540_v29, %v1528_v7  ;;  %v1543_v60 = vmul.f32 %v5583_v40, %v1542_v36  ;;  %4056 = vrcp.f32 %v5636_v44  ;;  %vm5679_vm11 = vcmp.eq.f32.partialorder %v1534_v4, 8.507059e+37  ;;  %v881_v24 = vpop.f32.mrf.mxu1 }
 0x200   : > { %v4053_v46 = vpop.eup %4052  ;;  %vm1545_vm12 = vweird.f32 %v5494_v22  ;;  %4058 = vpow2.f32 %v3526_v27  ;;  %v3528_v32 = vmul.f32 -1.442695, %v5642_v2  ;;  %vm1546_vm13 = vweird.f32 %v5583_v40 }
 0x201   : > { %v4055_v7 = vpop.eup %4054  ;;  %v1571_v36 = vmul.f32 %v5654_v50, %v5588_v38  ;;  %4060 = vpow2.f32 %v3527_v21  ;;  %v3529_v52 = vmul.f32 -1.442695, %v5652_v58  ;;  %v1518_v4 = vsel %vm5666_vm9, %v5530_v53, %v1514_v30  ;;  %vm5703_vm14 = vmor %vm1545_vm12, %vm1546_vm13  ;;  %v5713_v53 = vpop.f32.mrf.mxu3 }
 0x202   : > { %v1537_v19 = vor.u32 1.1754944e-38, %v1536_v41  ;;  %v1551_v51 = vand.u32 2147483648, %v5494_v22  ;;  %v1558_v27 = vmul.f32 %v5606_v43, %v1557_v56  ;;  %v1533_v6 = vsel %vm5675_vm10, %v5540_v29, %v1529_v17  ;;  %v5711_v17 = vpop.f32.mrf.mxu2  ;;  %v4216_v29 = vld [vmem:[%s4758_s0 + $0x68] sm:$0xff] }
 0x203   : > { %v1544_v23 = vadd.f32 %v5583_v40, %v1543_v60  ;;  %v1549_v21 = vand.u32 2147483647, %v5494_v22  ;;  %v5699_v11 = vadd.f32 1.0, %v4053_v46  ;;  %vm1560_vm15 = vweird.f32 %v5524_v8  ;;  %1119 = vmatmul.bf16.gmra.mxu2 %v4216_v29  ;;  %1208 = vmatmul.bf16.gmra.mxu3 %v4216_v29 }
 0x204   : > { %vm1561_vm0 = vweird.f32 %v5606_v43  ;;  %v5709_v56 = vadd.f32 1.0, %v4055_v7  ;;  %4062 = vpow2.f32 %v3528_v32  ;;  %v1523_v22 = vsel %vm5657_vm8, %v1522_v33, %v1518_v4 }
 0x205   : > { %v5716_v30 = vpop.eup %4056  ;;  %v1564_v41 = vand.u32 2147483647, %v5524_v8  ;;  %v1572_v60 = vsub.f32 1.0, %v1571_v36  ;;  %4064 = vpow2.f32 %v3529_v52  ;;  %v1538_v57 = vsel %vm5679_vm11, %v1537_v19, %v1533_v6  ;;  %vm5736_vm2 = vmor %vm1560_vm15, %vm1561_vm0 }
 0x206   : > { %v4059_v46 = vpop.eup %4058  ;;  %v1552_v32 = vor.u32 1.1754944e-38, %v1551_v51  ;;  %v1559_v7 = vadd.f32 %v5606_v43, %v1558_v27  ;;  %v1566_v25 = vand.u32 2147483648, %v5524_v8  ;;  %v5727_v0 = vmul.f32 %v5618_v18, %v5138_v3  ;;  %v960_v27 = vld [vmem:[%s418_s21] sm:$0x3] }
 0x207   : > { %v4061_v29 = vpop.eup %4060  ;;  %v1548_v35 = vsel %vm5703_vm14, %v5583_v40, %v1544_v23  ;;  %vm1550_vm1 = vcmp.eq.f32.partialorder %v1549_v21, 8.507059e+37  ;;  %4066 = vrcp.f32 %v5699_v11  ;;  %v5743_v51 = vmul.f32 %v5624_v37, %v5154_v47 }
 0x208   : > { %v5746_v3 = vmul.f32 %v1523_v22, %v5286_v26  ;;  %v1586_v23 = vmul.f32 %v5716_v30, %v5636_v44  ;;  %4068 = vrcp.f32 %v5709_v56  ;;  %v5752_v8 = vmul.f32 %v1538_v57, %v5298_v39  ;;  %v795_v57 = vpop.f32.mrf.mxu0 }
 0x209   : > { %vm5754_vm3 = vcmp.eq.f32.partialorder %v1564_v41, 8.507059e+37  ;;  %v1573_v19 = vmul.f32 %v5654_v50, %v1572_v60  ;;  %v5759_v47 = vadd.f32 1.0, %v4059_v46  ;;  %v5761_v26 = vsel %vm1550_vm1, %v1552_v32, %v1548_v35 }
 0x20a   : > { %v4063_v18 = vpop.eup %4062  ;;  %v1563_v37 = vsel %vm5736_vm2, %v5606_v43, %v1559_v7  ;;  %v1567_v33 = vor.u32 1.1754944e-38, %v1566_v25  ;;  %v5766_v55 = vadd.f32 1.0, %v4061_v29  ;;  %vm1575_vm4 = vweird.f32 %v5588_v38  ;;  %v5888_v14 = vpop.f32.mrf.mxu2 }
 0x20b   : > { %v4065_v39 = vpop.eup %4064  ;;  %v1579_v36 = vand.u32 2147483647, %v5588_v38  ;;  %v1581_v52 = vand.u32 2147483648, %v5588_v38  ;;  %v5772_v4 = vadd.f32 %v792_v45, %v4929_v13  ;;  %vm1576_vm5 = vweird.f32 %v5654_v50  ;;  %v884_v38 = vpop.f32.mrf.mxu1 }
 0x20c   : > { %v1587_v21 = vsub.f32 1.0, %v1586_v23  ;;  %v1594_v43 = vand.u32 2147483647, %v5636_v44  ;;  %v1596_v25 = vand.u32 2147483648, %v5636_v44  ;;  %v1574_v22 = vadd.f32 %v5654_v50, %v1573_v19  ;;  %vm5805_vm6 = vmor %vm1575_vm4, %vm1576_vm5 }
 0x20d   : > { %7940 = vst [vmem:[#allocation82_spill] sm:$0xff] %v5772_v4  ;;  %v5779_v28 = vpop.eup %4066  ;;  %4070 = vrcp.f32 %v5759_v47  ;;  %v5783_v41 = vadd.f32 1.0, %v4063_v18  ;;  %v5786_v45 = vadd.f32 %v881_v24, %v4935_v16  ;;  %v5791_v46 = vadd.f32 1.0, %v4065_v39 }
 0x20e   : > { %v5788_v60 = vpop.eup %4068  ;;  %4072 = vrcp.f32 %v5766_v55  ;;  %v5793_v32 = vperm.slane %v960_v27, 0  ;;  %v5795_v7 = vperm.slane %v960_v27, 1  ;;  %v5799_v29 = vsel %vm5754_vm3, %v1567_v33, %v1563_v37 }
 0x20f   : > { %7941 = vst [vmem:[#allocation83_spill] sm:$0xff] %v5786_v45  ;;  %vm5809_vm7 = vcmp.eq.f32.partialorder %v1579_v36, 8.507059e+37  ;;  %v1582_v6 = vor.u32 1.1754944e-38, %v1581_v52  ;;  %v3530_v23 = vmul.f32 -1.442695, %v5772_v4  ;;  %v1588_v19 = vmul.f32 %v5716_v30, %v1587_v21 }
 0x210   : > { %vm1590_vm8 = vweird.f32 %v5636_v44  ;;  %v1597_v40 = vor.u32 1.1754944e-38, %v1596_v25  ;;  %v1601_v18 = vmul.f32 %v5779_v28, %v5699_v11  ;;  %vm1591_vm9 = vweird.f32 %v5716_v30 }
 0x211   : > { %vm5819_vm10 = vcmp.eq.f32.partialorder %v1594_v43, 8.507059e+37  ;;  %v1616_v33 = vmul.f32 %v5788_v60, %v5709_v56  ;;  %4074 = vrcp.f32 %v5783_v41  ;;  %v3531_v39 = vmul.f32 -1.442695, %v5786_v45  ;;  %vm5857_vm12 = vmor %vm1590_vm8, %vm1591_vm9 }
 0x212   : > { %v1578_v36 = vsel %vm5805_vm6, %v5654_v50, %v1574_v22  ;;  %4076 = vrcp.f32 %v5791_v46  ;;  %v1056_v52 = vadd.f32 %v5500_v12, %v5793_v32  ;;  %v1145_v27 = vadd.f32 %v5502_v62, %v5795_v7 }
 0x213   : > { %v5835_v21 = vpop.eup %4070  ;;  %vm1605_vm11 = vweird.f32 %v5699_v11  ;;  %4078 = vpow2.f32 %v3530_v23  ;;  %v5839_v43 = vadd.f32 %v795_v57, %v4929_v13  ;;  %v1058_v25 = vadd.f32 %v5590_v59, %v5793_v32 }
 0x214   : > { %v5843_v50 = vpop.eup %4072  ;;  %v1589_v22 = vadd.f32 %v5716_v30, %v1588_v19  ;;  %v1602_v24 = vsub.f32 1.0, %v1601_v18  ;;  %v1609_v12 = vand.u32 2147483647, %v5699_v11  ;;  %v1147_v62 = vadd.f32 %v5592_v54, %v5795_v7 }
 0x215   : > { %7948 = vst [vmem:[#allocation84_spill] sm:$0xff] %v5839_v43  ;;  %v1617_v61 = vsub.f32 1.0, %v1616_v33  ;;  %4080 = vpow2.f32 %v3531_v39  ;;  %v5850_v23 = vadd.f32 %v884_v38, %v4935_v16  ;;  %v2506_v57 = vmul.f32 %v5746_v3, %v1058_v25 }
 0x216   : > { %v1631_v19 = vmul.f32 %v5835_v21, %v5759_v47  ;;  %v2504_v54 = vmul.f32 %v5727_v0, %v1056_v52  ;;  %v2505_v18 = vmul.f32 %v5743_v51, %v1145_v27  ;;  %v2507_v38 = vmul.f32 %v5752_v8, %v1147_v62  ;;  %v5880_v8 = vpop.f32.mrf.mxu0 }
 0x217   : > { %7949 = vst [vmem:[#allocation85_spill] sm:$0xff] %v5850_v23  ;;  %v5866_v33 = vpop.eup %4074  ;;  %v5870_v3 = vsel %vm5809_vm7, %v1582_v6, %v1578_v36  ;;  %v1611_v44 = vand.u32 2147483648, %v5699_v11  ;;  %v1646_v39 = vmul.f32 %v5843_v50, %v5766_v55  ;;  %v3532_v25 = vmul.f32 -1.442695, %v5839_v43 }
 0x218   : > { %v5876_v5 = vpop.eup %4076  ;;  %v1603_v0 = vmul.f32 %v5779_v28, %v1602_v24  ;;  %v1624_v51 = vand.u32 2147483647, %v5709_v56  ;;  %v2600_v52 = vpack.c.bf16 %v2506_v57, %v2504_v54  ;;  %v2601_v27 = vpack.c.bf16 %v2507_v38, %v2505_v18  ;;  %v5890_v24 = vpop.f32.mrf.mxu3 }
 0x219   : > { %v4079_v35 = vpop.eup %4078  ;;  %v1593_v6 = vsel %vm5857_vm12, %v5716_v30, %v1589_v22  ;;  %v1618_v36 = vmul.f32 %v5788_v60, %v1617_v61  ;;  %v1626_v62 = vand.u32 2147483648, %v5709_v56  ;;  %v3533_v42 = vmul.f32 -1.442695, %v5850_v23  ;;  %v5895_v54 = vpop.f32.mrf.mxu1 }
 0x21a   : > { %vm1606_vm13 = vweird.f32 %v5779_v28  ;;  %vm1620_vm14 = vweird.f32 %v5709_v56  ;;  %vm1621_vm15 = vweird.f32 %v5788_v60  ;;  %v1632_v57 = vsub.f32 1.0, %v1631_v19  ;;  %2768 = vmatmul.bf16.vlgmr.msrb.gmra.mxu0 %v2600_v52  ;;  %2857 = vmatmul.bf16.vlgmr.msrb.gmra.mxu1 %v2601_v27 }
 0x21b   : > { %v4081_v61 = vpop.eup %4080  ;;  %v1647_v30 = vsub.f32 1.0, %v1646_v39  ;;  %v1661_v22 = vmul.f32 %v5866_v33, %v5783_v41  ;;  %v1676_v59 = vmul.f32 %v5876_v5, %v5791_v46  ;;  %4082 = vpow2.f32 %v3532_v25  ;;  %vm5916_vm0 = vmor %vm1605_vm11, %vm1606_vm13 }
 0x21c   : > { %v5903_v18 = vsel %vm5819_vm10, %v1597_v40, %v1593_v6  ;;  %v5906_v38 = vadd.f32 %v5779_v28, %v1603_v0  ;;  %v5908_v19 = vor.u32 1.1754944e-38, %v1611_v44  ;;  %v5910_v52 = vadd.f32 1.0, %v4079_v35  ;;  %vm5936_vm3 = vmor %vm1620_vm14, %vm1621_vm15 }
 0x21d   : > { %vm5920_vm1 = vcmp.eq.f32.partialorder %v1609_v12, 8.507059e+37  ;;  %v5925_v40 = vadd.f32 %v5788_v60, %v1618_v36  ;;  %vm5927_vm2 = vcmp.eq.f32.partialorder %v1624_v51, 8.507059e+37  ;;  %v1627_v44 = vor.u32 1.1754944e-38, %v1626_v62 }
 0x21e   : > { %v1639_v0 = vand.u32 2147483647, %v5759_v47  ;;  %4084 = vpow2.f32 %v3533_v42  ;;  %v1633_v12 = vmul.f32 %v5835_v21, %v1632_v57  ;;  %v1641_v27 = vand.u32 2147483648, %v5759_v47 }
 0x21f   : > { %v1654_v51 = vand.u32 2147483647, %v5766_v55  ;;  %v5943_v35 = vadd.f32 1.0, %v4081_v61  ;;  %v1648_v6 = vmul.f32 %v5843_v50, %v1647_v30  ;;  %v1656_v42 = vand.u32 2147483648, %v5766_v55 }
 0x220   : > { %v1662_v36 = vsub.f32 1.0, %v1661_v22  ;;  %v1677_v62 = vsub.f32 1.0, %v1676_v59  ;;  %v1608_v56 = vsel %vm5916_vm0, %v5779_v28, %v5906_v38  ;;  %vm1635_vm4 = vweird.f32 %v5759_v47  ;;  %v5964_v28 = vpop.f32.mrf.mxu2  ;;  %v5966_v22 = vpop.f32.mrf.mxu3  ;;  %v4217_v59 = vld [vmem:[%s4758_s0 + $0x70] sm:$0xff] }
 0x221   : > { %vm1636_vm5 = vweird.f32 %v5835_v21  ;;  %4086 = vrcp.f32 %v5910_v52  ;;  %v4083_v57 = vpop.eup %4082  ;;  %v1623_v61 = vsel %vm5936_vm3, %v5788_v60, %v5925_v40  ;;  %vm5958_vm6 = vcmp.eq.f32.partialorder %v1639_v0, 8.507059e+37  ;;  %1124 = vmatmul.bf16.gmra.mxu2 %v4217_v59  ;;  %1213 = vmatmul.bf16.gmra.mxu3 %v4217_v59  ;;  %v5975_v40 = vpop.f32.mrf.mxu0 }
 0x222   : > { %vm1650_vm7 = vweird.f32 %v5766_v55  ;;  %vm1651_vm8 = vweird.f32 %v5843_v50  ;;  %v1634_v38 = vadd.f32 %v5835_v21, %v1633_v12  ;;  %v1642_v39 = vor.u32 1.1754944e-38, %v1641_v27  ;;  %vm5981_vm10 = vmor %vm1635_vm4, %vm1636_vm5 }
 0x223   : > { %vm5970_vm9 = vcmp.eq.f32.partialorder %v1654_v51, 8.507059e+37  ;;  %4088 = vrcp.f32 %v5943_v35  ;;  %v1649_v12 = vadd.f32 %v5843_v50, %v1648_v6  ;;  %v1657_v27 = vor.u32 1.1754944e-38, %v1656_v42  ;;  %vm5992_vm11 = vmor %vm1650_vm7, %vm1651_vm8  ;;  %v6001_v42 = vpop.f32.mrf.mxu1 }
 0x224   : > { %v4085_v0 = vpop.eup %4084  ;;  %v1663_v51 = vmul.f32 %v5866_v33, %v1662_v36  ;;  %v1678_v59 = vmul.f32 %v5876_v5, %v1677_v62  ;;  %vm1665_vm12 = vweird.f32 %v5783_v41  ;;  %vm1666_vm13 = vweird.f32 %v5866_v33 }
 0x225   : > { %v1669_v47 = vand.u32 2147483647, %v5783_v41  ;;  %v5999_v6 = vadd.f32 1.0, %v4083_v57  ;;  %v1671_v36 = vand.u32 2147483648, %v5783_v41  ;;  %vm1680_vm14 = vweird.f32 %v5791_v46  ;;  %vm6027_vm0 = vmor %vm1665_vm12, %vm1666_vm13 }
 0x226   : > { %vm1681_vm15 = vweird.f32 %v5876_v5  ;;  %v6008_v55 = vadd.f32 %v5880_v8, %v4929_v13  ;;  %v1638_v43 = vsel %vm5981_vm10, %v5835_v21, %v1634_v38  ;;  %v1684_v57 = vand.u32 2147483647, %v5791_v46 }
 0x227   : > { %v6010_v62 = vpop.eup %4086  ;;  %v1686_v45 = vand.u32 2147483648, %v5791_v46  ;;  %v6017_v4 = vadd.f32 1.0, %v4085_v0  ;;  %v1653_v58 = vsel %vm5992_vm11, %v5843_v50, %v1649_v12  ;;  %v1664_v2 = vadd.f32 %v5866_v33, %v1663_v51  ;;  %vm6051_vm4 = vmor %vm1680_vm14, %vm1681_vm15 }
 0x228   : > { %v1679_v21 = vadd.f32 %v5876_v5, %v1678_v59  ;;  %v6034_v38 = vadd.f32 %v5895_v54, %v4935_v16  ;;  %v1613_v50 = vsel %vm5920_vm1, %v5908_v19, %v1608_v56  ;;  %v1628_v23 = vsel %vm5927_vm2, %v1627_v44, %v1623_v61  ;;  %v6061_v56 = vpop.f32.mrf.mxu2  ;;  %v6063_v61 = vpop.f32.mrf.mxu3 }
 0x229   : > { %v6036_v0 = vpop.eup %4088  ;;  %vm6043_vm3 = vcmp.eq.f32.partialorder %v1669_v47, 8.507059e+37  ;;  %4090 = vrcp.f32 %v5999_v6  ;;  %v1643_v19 = vsel %vm5958_vm6, %v1642_v39, %v1638_v43  ;;  %v1672_v25 = vor.u32 1.1754944e-38, %v1671_v36 }
 0x22a   : > { %v1691_v37 = vmul.f32 %v6010_v62, %v5910_v52  ;;  %v3534_v44 = vmul.f32 -1.442695, %v6008_v55  ;;  %v1658_v46 = vsel %vm5970_vm9, %v1657_v27, %v1653_v58  ;;  %vm6067_vm1 = vcmp.eq.f32.partialorder %v1684_v57, 8.507059e+37 }
 0x22b   : > { %v1687_v12 = vor.u32 1.1754944e-38, %v1686_v45  ;;  %4092 = vrcp.f32 %v6017_v4  ;;  %v1668_v43 = vsel %vm6027_vm0, %v5866_v33, %v1664_v2  ;;  %v1683_v30 = vsel %vm6051_vm4, %v5876_v5, %v1679_v21  ;;  %v802_v33 = vpop.f32.mrf.mxu0 }
 0x22c   : > { %v1706_v39 = vmul.f32 %v6036_v0, %v5943_v35  ;;  %v3535_v58 = vmul.f32 -1.442695, %v6034_v38  ;;  %v2444_v60 = vmul.f32 %v5761_v26, %v5344_v1  ;;  %v2445_v45 = vmul.f32 %v5799_v29, %v5369_v31 }
 0x22d   : > { %v2446_v27 = vmul.f32 %v5870_v3, %v5436_v49  ;;  %v2447_v2 = vmul.f32 %v5903_v18, %v5498_v34  ;;  %v6090_v5 = vmul.f32 %v1613_v50, %v5563_v20  ;;  %v6093_v51 = vmul.f32 %v1628_v23, %v5581_v9  ;;  %v891_v20 = vpop.f32.mrf.mxu1 }
 0x22e   : > { %v1692_v59 = vsub.f32 1.0, %v1691_v37  ;;  %4094 = vpow2.f32 %v3534_v44  ;;  %v6098_v1 = vmul.f32 %v1643_v19, %v5622_v63  ;;  %v6101_v31 = vmul.f32 %v1658_v46, %v5629_v15 }
 0x22f   : > { %v6095_v47 = vpop.eup %4090  ;;  %v6105_v49 = vsel %vm6043_vm3, %v1672_v25, %v1668_v43  ;;  %v6109_v34 = vsel %vm6067_vm1, %v1687_v12, %v1683_v30  ;;  %vm1695_vm2 = vweird.f32 %v5910_v52  ;;  %v1707_v9 = vsub.f32 1.0, %v1706_v39 }
 0x230   : > { %4096 = vpow2.f32 %v3535_v58  ;;  %v6114_v63 = vadd.f32 %v5975_v40, %v4929_v13  ;;  %v1061_v26 = vadd.f32 %v5644_v10, %v5793_v32  ;;  %v1150_v29 = vadd.f32 %v5646_v48, %v5795_v7  ;;  %v6131_v21 = vpop.f32.mrf.mxu2  ;;  %v6133_v10 = vpop.f32.mrf.mxu3  ;;  %v4218_v48 = vld [vmem:[%s4758_s0 + $0x78] sm:$0xff] }
 0x231   : > { %v6116_v15 = vpop.eup %4092  ;;  %v1063_v3 = vadd.f32 %v5711_v17, %v5793_v32  ;;  %v1152_v18 = vadd.f32 %v5713_v53, %v5795_v7  ;;  %v1693_v36 = vmul.f32 %v6010_v62, %v1692_v59  ;;  %v1699_v57 = vand.u32 2147483647, %v5910_v52  ;;  %1129 = vmatmul.bf16.gmra.mxu2 %v4218_v48  ;;  %1218 = vmatmul.bf16.gmra.mxu3 %v4218_v48 }
 0x232   : > { %v1701_v40 = vand.u32 2147483648, %v5910_v52  ;;  %v1721_v8 = vmul.f32 %v6095_v47, %v5999_v6  ;;  %vm1696_vm5 = vweird.f32 %v6010_v62  ;;  %vm1710_vm6 = vweird.f32 %v5943_v35 }
 0x233   : > { %v1714_v17 = vand.u32 2147483647, %v5943_v35  ;;  %v1716_v53 = vand.u32 2147483648, %v5943_v35  ;;  %v1708_v23 = vmul.f32 %v6036_v0, %v1707_v9  ;;  %v1736_v41 = vmul.f32 %v6116_v15, %v6017_v4  ;;  %vm6162_vm8 = vmor %vm1695_vm2, %vm1696_vm5 }
 0x234   : > { %v4095_v50 = vpop.eup %4094  ;;  %v3536_v54 = vmul.f32 -1.442695, %v6114_v63  ;;  %v6146_v19 = vadd.f32 %v6001_v42, %v4935_v16  ;;  %v2508_v25 = vmul.f32 %v2444_v60, %v1061_v26  ;;  %v2509_v37 = vmul.f32 %v2445_v45, %v1150_v29  ;;  %v805_v42 = vpop.f32.mrf.mxu0 }
 0x235   : > { %v2510_v44 = vmul.f32 %v2446_v27, %v1063_v3  ;;  %v2511_v46 = vmul.f32 %v2447_v2, %v1152_v18  ;;  %v1694_v12 = vadd.f32 %v6010_v62, %v1693_v36  ;;  %vm1711_vm7 = vweird.f32 %v6036_v0  ;;  %v6184_v3 = vpop.f32.mrf.mxu1 }
 0x236   : > { %v4097_v11 = vpop.eup %4096  ;;  %v1722_v43 = vsub.f32 1.0, %v1721_v8  ;;  %v6151_v30 = vadd.f32 %v802_v33, %v4929_v13  ;;  %v6153_v39 = vadd.f32 1.0, %v4095_v50  ;;  %v6156_v58 = vadd.f32 %v891_v20, %v4935_v16  ;;  %vm6174_vm10 = vmor %vm1710_vm6, %vm1711_vm7 }
 0x237   : > { %v2602_v59 = vpack.c.bf16 %v2510_v44, %v2508_v25  ;;  %v2603_v60 = vpack.c.bf16 %v2511_v46, %v2509_v37  ;;  %vm6166_vm9 = vcmp.eq.f32.partialorder %v1699_v57, 8.507059e+37  ;;  %v1709_v2 = vadd.f32 %v6036_v0, %v1708_v23  ;;  %v7984_v46 = vld [vmem:[#allocation80_spill] sm:$0xff] }
 0x238   : > { %4098 = vpow2.f32 %v3536_v54  ;;  %v3537_v33 = vmul.f32 -1.442695, %v6146_v19  ;;  %v1702_v20 = vor.u32 1.1754944e-38, %v1701_v40  ;;  %vm6178_vm11 = vcmp.eq.f32.partialorder %v1714_v17, 8.507059e+37  ;;  %v6189_v57 = vpop.f32.mrf.mxu2  ;;  %v6191_v40 = vpop.f32.mrf.mxu3 }
 0x239   : > { %v1737_v26 = vsub.f32 1.0, %v1736_v41  ;;  %v6182_v29 = vadd.f32 1.0, %v4097_v11  ;;  %2773 = vmatmul.bf16.gmra.mxu0 %v2602_v59  ;;  %2862 = vmatmul.bf16.gmra.mxu1 %v2603_v60  ;;  %v1717_v18 = vor.u32 1.1754944e-38, %v1716_v53  ;;  %v1723_v36 = vmul.f32 %v6095_v47, %v1722_v43  ;;  %v7985_v11 = vld [vmem:[#allocation81_spill] sm:$0xff] }
 0x23a   : > { %vm1725_vm12 = vweird.f32 %v5999_v6  ;;  %v3538_v35 = vmul.f32 -1.442695, %v6151_v30  ;;  %v1698_v8 = vsel %vm6162_vm8, %v6010_v62, %v1694_v12  ;;  %v1729_v48 = vand.u32 2147483647, %v5999_v6 }
 0x23b   : > { %4100 = vrcp.f32 %v6153_v39  ;;  %v3539_v17 = vmul.f32 -1.442695, %v6156_v58  ;;  %v1713_v53 = vsel %vm6174_vm10, %v6036_v0, %v1709_v2  ;;  %v1731_v50 = vand.u32 2147483648, %v5999_v6 }
 0x23c   : > { %vm1740_vm13 = vweird.f32 %v6017_v4  ;;  %4102 = vpow2.f32 %v3537_v33  ;;  %vm1726_vm14 = vweird.f32 %v6095_v47  ;;  %v1738_v23 = vmul.f32 %v6116_v15, %v1737_v26  ;;  %v807_v60 = vpop.f32.mrf.mxu0 }
 0x23d   : > { %4104 = vrcp.f32 %v6182_v29  ;;  %v1068_v62 = vadd.f32 %v5964_v28, %v5793_v32  ;;  %v1724_v54 = vadd.f32 %v6095_v47, %v1723_v36  ;;  %v1744_v25 = vand.u32 2147483647, %v6017_v4  ;;  %vm6230_vm0 = vmor %vm1725_vm12, %vm1726_vm14 }
 0x23e   : > { %v4099_v41 = vpop.eup %4098  ;;  %4106 = vpow2.f32 %v3538_v35  ;;  %v1157_v0 = vadd.f32 %v5966_v22, %v5795_v7  ;;  %vm1741_vm15 = vweird.f32 %v6116_v15  ;;  %v1066_v37 = vadd.f32 %v5888_v14, %v5793_v32  ;;  %v896_v35 = vpop.f32.mrf.mxu1 }
 0x23f   : > { %4108 = vpow2.f32 %v3539_v17  ;;  %v1155_v44 = vadd.f32 %v5890_v24, %v5795_v7  ;;  %v6220_v28 = vmul.f32 %v6105_v49, %v7984_v46  ;;  %v6224_v12 = vmul.f32 %v6109_v34, %v7985_v11  ;;  %vm6256_vm4 = vmor %vm1740_vm13, %vm1741_vm15 }
 0x240   : > { %v1746_v14 = vand.u32 2147483648, %v6017_v4  ;;  %v6236_v24 = vadd.f32 %v805_v42, %v4929_v13  ;;  %v1703_v49 = vsel %vm6166_vm9, %v1702_v20, %v1698_v8  ;;  %v1739_v34 = vadd.f32 %v6116_v15, %v1738_v23  ;;  %v6263_v9 = vpop.f32.mrf.mxu3 }
 0x241   : > { %v6238_v43 = vpop.eup %4100  ;;  %v6243_v59 = vadd.f32 1.0, %v4099_v41  ;;  %v2514_v6 = vmul.f32 %v6098_v1, %v1068_v62  ;;  %v1718_v2 = vsel %vm6178_vm11, %v1717_v18, %v1713_v53  ;;  %vm6248_vm3 = vcmp.eq.f32.partialorder %v1729_v48, 8.507059e+37  ;;  %v6261_v1 = vpop.f32.mrf.mxu2 }
 0x242   : > { %v4103_v45 = vpop.eup %4102  ;;  %v1732_v42 = vor.u32 1.1754944e-38, %v1731_v50  ;;  %v2515_v20 = vmul.f32 %v6101_v31, %v1157_v0  ;;  %v1728_v26 = vsel %vm6230_vm0, %v6095_v47, %v1724_v54  ;;  %vm6270_vm1 = vcmp.eq.f32.partialorder %v1744_v25, 8.507059e+37  ;;  %v7994_v25 = vld [vmem:[#allocation82_spill] sm:$0xff] }
 0x243   : > { %v6265_v52 = vpop.eup %4104  ;;  %v2512_v4 = vmul.f32 %v6090_v5, %v1066_v37  ;;  %v2513_v36 = vmul.f32 %v6093_v51, %v1155_v44  ;;  %v1747_v8 = vor.u32 1.1754944e-38, %v1746_v14  ;;  %v1751_v48 = vmul.f32 %v6238_v43, %v6153_v39  ;;  %v7995_v37 = vld [vmem:[#allocation83_spill] sm:$0xff] }
 0x244   : > { %v4107_v31 = vpop.eup %4106  ;;  %v1761_v17 = vand.u32 2147483648, %v6153_v39  ;;  %v3540_v53 = vmul.f32 -1.442695, %v6236_v24  ;;  %v1743_v47 = vsel %vm6256_vm4, %v6116_v15, %v1739_v34  ;;  %4110 = vrcp.f32 %v6243_v59  ;;  %v7996_v34 = vld [vmem:[#allocation84_spill] sm:$0xff] }
 0x245   : > { %v4109_v50 = vpop.eup %4108  ;;  %v2604_v5 = vpack.c.bf16 %v2514_v6, %v2512_v4  ;;  %v2605_v23 = vpack.c.bf16 %v2515_v20, %v2513_v36  ;;  %v1733_v51 = vsel %vm6248_vm3, %v1732_v42, %v1728_v26  ;;  %v1766_v62 = vmul.f32 %v6265_v52, %v6182_v29  ;;  %v7997_v26 = vld [vmem:[#allocation85_spill] sm:$0xff] }
 0x246   : > { %v6288_v41 = vadd.f32 1.0, %v4103_v45  ;;  %v6292_v54 = vadd.f32 %v6184_v3, %v4935_v16  ;;  %v2454_v0 = vmul.f32 %v1703_v49, %v7994_v25  ;;  %v2455_v15 = vmul.f32 %v1718_v2, %v7995_v37 }
 0x247   : > { %v1759_v44 = vand.u32 2147483647, %v6153_v39  ;;  %v6297_v46 = vadd.f32 1.0, %v4107_v31  ;;  %v1748_v11 = vsel %vm6270_vm1, %v1747_v8, %v1743_v47  ;;  %v1752_v22 = vsub.f32 1.0, %v1751_v48  ;;  %v6337_v8 = vpop.f32.mrf.mxu0 }
 0x248   : > { %v6301_v14 = vadd.f32 1.0, %v4109_v50  ;;  %4112 = vpow2.f32 %v3540_v53  ;;  %v6304_v6 = vmul.f32 %v1733_v51, %v7996_v34  ;;  %vm1755_vm2 = vweird.f32 %v6153_v39  ;;  %v6319_v27 = vpop.f32.mrf.mxu3 }
 0x249   : > { %v6307_v3 = vor.u32 1.1754944e-38, %v1761_v17  ;;  %v6310_v49 = vadd.f32 %v807_v60, %v4929_v13  ;;  %2778 = vmatmul.bf16.gmra.mxu0 %v2604_v5  ;;  %2867 = vmatmul.bf16.gmra.mxu1 %v2605_v23  ;;  %v1767_v45 = vsub.f32 1.0, %v1766_v62  ;;  %4114 = vrcp.f32 %v6288_v41  ;;  %v6317_v42 = vpop.f32.mrf.mxu2  ;;  %v6341_v17 = vpop.f32.mrf.mxu1 }
 0x24a   : > { %v3541_v2 = vmul.f32 -1.442695, %v6292_v54  ;;  %v6315_v33 = vadd.f32 %v896_v35, %v4935_v16  ;;  %v6321_v20 = vpop.eup %4110  ;;  %v6324_v18 = vmul.f32 %v1748_v11, %v7997_v26  ;;  %vm1770_vm5 = vweird.f32 %v6182_v29 }
 0x24b   : > { %v1774_v60 = vand.u32 2147483647, %v6182_v29  ;;  %4116 = vrcp.f32 %v6297_v46  ;;  %v1753_v4 = vmul.f32 %v6238_v43, %v1752_v22  ;;  %vm6330_vm6 = vcmp.eq.f32.partialorder %v1759_v44, 8.507059e+37 }
 0x24c   : > { %v1776_v35 = vand.u32 2147483648, %v6182_v29  ;;  %v1791_v31 = vand.u32 2147483648, %v6243_v59  ;;  %4118 = vrcp.f32 %v6301_v14  ;;  %vm1756_vm7 = vweird.f32 %v6238_v43 }
 0x24d   : > { %v3542_v48 = vmul.f32 -1.442695, %v6310_v49  ;;  %v1073_v53 = vadd.f32 %v6131_v21, %v5793_v32  ;;  %v1162_v50 = vadd.f32 %v6133_v10, %v5795_v7  ;;  %v1768_v5 = vmul.f32 %v6265_v52, %v1767_v45  ;;  %vm6371_vm10 = vmor %vm1755_vm2, %vm1756_vm7 }
 0x24e   : > { %v4113_v47 = vpop.eup %4112  ;;  %v1781_v23 = vmul.f32 %v6321_v20, %v6243_v59  ;;  %4120 = vpow2.f32 %v3541_v2  ;;  %v3543_v51 = vmul.f32 -1.442695, %v6315_v33  ;;  %v1806_v25 = vand.u32 2147483648, %v6288_v41 }
 0x24f   : > { %v1071_v37 = vadd.f32 %v6061_v56, %v5793_v32  ;;  %v1160_v21 = vadd.f32 %v6063_v61, %v5795_v7  ;;  %v6357_v10 = vpop.eup %4114  ;;  %v1754_v44 = vadd.f32 %v6238_v43, %v1753_v4  ;;  %vm1771_vm8 = vweird.f32 %v6265_v52 }
 0x250   : > { %vm6361_vm9 = vcmp.eq.f32.partialorder %v1774_v60, 8.507059e+37  ;;  %v1777_v22 = vor.u32 1.1754944e-38, %v1776_v35  ;;  %v6375_v61 = vadd.f32 1.0, %v4113_v47  ;;  %4122 = vpow2.f32 %v3542_v48  ;;  %v6384_v39 = vpop.f32.mrf.mxu3  ;;  %vm6390_vm11 = vmor %vm1770_vm5, %vm1771_vm8 }
 0x251   : > { %v6365_v34 = vpop.eup %4116  ;;  %v2518_v45 = vmul.f32 %v2454_v0, %v1073_v53  ;;  %v2519_v2 = vmul.f32 %v2455_v15, %v1162_v50  ;;  %v1769_v60 = vadd.f32 %v6265_v52, %v1768_v5  ;;  %v1782_v4 = vsub.f32 1.0, %v1781_v23  ;;  %v6382_v62 = vpop.f32.mrf.mxu2 }
 0x252   : > { %v6377_v26 = vpop.eup %4118  ;;  %v6380_v35 = vor.u32 1.1754944e-38, %v1791_v31  ;;  %4124 = vpow2.f32 %v3543_v51  ;;  %v1804_v0 = vand.u32 2147483647, %v6288_v41  ;;  %v6395_v15 = vor.u32 1.1754944e-38, %v1806_v25 }
 0x253   : > { %v2516_v31 = vmul.f32 %v6220_v28, %v1071_v37  ;;  %v2517_v53 = vmul.f32 %v6224_v12, %v1160_v21  ;;  %v1758_v47 = vsel %vm6371_vm10, %v6238_v43, %v1754_v44  ;;  %vm1785_vm12 = vweird.f32 %v6243_v59  ;;  %v812_v37 = vpop.f32.mrf.mxu0 }
 0x254   : > { %v4121_v50 = vpop.eup %4120  ;;  %vm1786_vm13 = vweird.f32 %v6321_v20  ;;  %v1796_v29 = vmul.f32 %v6357_v10, %v6288_v41  ;;  %v1811_v5 = vmul.f32 %v6365_v34, %v6297_v46  ;;  %vm1800_vm14 = vweird.f32 %v6288_v41 }
 0x255   : > { %v1826_v28 = vmul.f32 %v6377_v26, %v6301_v14  ;;  %4126 = vrcp.f32 %v6375_v61  ;;  %v2606_v12 = vpack.c.bf16 %v2518_v45, %v2516_v31  ;;  %v2607_v23 = vpack.c.bf16 %v2519_v2, %v2517_v53  ;;  %v901_v2 = vpop.f32.mrf.mxu1 }
 0x256   : > { %v1773_v43 = vsel %vm6390_vm11, %v6265_v52, %v1769_v60  ;;  %v1783_v51 = vmul.f32 %v6321_v20, %v1782_v4  ;;  %vm1815_vm15 = vweird.f32 %v6297_v46  ;;  %v1819_v25 = vand.u32 2147483647, %v6297_v46  ;;  %v4123_v21 = vpop.eup %4122 }
 0x257   : > { %v1763_v44 = vsel %vm6330_vm6, %v6307_v3, %v1758_v47  ;;  %v1821_v56 = vand.u32 2147483648, %v6297_v46  ;;  %vm1830_vm0 = vweird.f32 %v6301_v14  ;;  %v6423_v45 = vadd.f32 1.0, %v4121_v50  ;;  %vm6488_vm6 = vmor %vm1785_vm12, %vm1786_vm13 }
 0x258   : > { %v4125_v52 = vpop.eup %4124  ;;  %v1797_v60 = vsub.f32 1.0, %v1796_v29  ;;  %v1812_v4 = vsub.f32 1.0, %v1811_v5  ;;  %v6428_v31 = vadd.f32 %v6337_v8, %v4929_v13  ;;  %v1778_v36 = vsel %vm6361_vm9, %v1777_v22, %v1773_v43  ;;  %v6447_v22 = vpop.f32.mrf.mxu3 }
 0x259   : > { %vm1801_vm3 = vweird.f32 %v6357_v10  ;;  %v1827_v3 = vsub.f32 1.0, %v1826_v28  ;;  %v6434_v53 = vadd.f32 %v812_v37, %v4929_v13  ;;  %2783 = vmatmul.bf16.gmra.mxu0 %v2606_v12  ;;  %2872 = vmatmul.bf16.gmra.mxu1 %v2607_v23  ;;  %v2458_v50 = vmul.f32 %v1763_v44, %v6008_v55  ;;  %v6445_v11 = vpop.f32.mrf.mxu2 }
 0x25a   : > { %8006 = vst [vmem:[#allocation80_spill] sm:$0xff] %v6428_v31  ;;  %v6438_v47 = vadd.f32 %v6321_v20, %v1783_v51  ;;  %v6440_v29 = vadd.f32 1.0, %v4123_v21  ;;  %v6443_v8 = vadd.f32 %v901_v2, %v4935_v16  ;;  %v8008_v28 = vand.u32 2147483647, %v6243_v59  ;;  %vm6503_vm7 = vmor %vm1800_vm14, %vm1801_vm3 }
 0x25b   : > { %v6449_v5 = vpop.eup %4126  ;;  %vm1816_vm1 = vweird.f32 %v6365_v34  ;;  %4128 = vrcp.f32 %v6423_v45  ;;  %v6459_v55 = vadd.f32 1.0, %v4125_v52  ;;  %v6463_v23 = vadd.f32 %v6341_v17, %v4935_v16 }
 0x25c   : > { %8007 = vst [vmem:[#allocation81_spill] sm:$0xff] %v6443_v8  ;;  %vm6453_vm4 = vcmp.eq.f32.partialorder %v8008_v28, 8.507059e+37  ;;  %v2459_v43 = vmul.f32 %v1778_v36, %v6034_v38  ;;  %v1798_v51 = vmul.f32 %v6357_v10, %v1797_v60  ;;  %vm6467_vm2 = vcmp.eq.f32.partialorder %v1804_v0, 8.507059e+37  ;;  %vm6515_vm8 = vmor %vm1815_vm15, %vm1816_vm1 }
 0x25d   : > { %8011 = vst [vmem:[#allocation82_spill] sm:$0xff] %v6463_v23  ;;  %v1813_v21 = vmul.f32 %v6365_v34, %v1812_v4  ;;  %v3544_v44 = vmul.f32 -1.442695, %v6428_v31  ;;  %v1828_v2 = vmul.f32 %v6377_v26, %v1827_v3  ;;  %vm1831_vm5 = vweird.f32 %v6377_v26 }
 0x25e   : > { %v3546_v52 = vmul.f32 -1.442695, %v6434_v53  ;;  %v1078_v17 = vadd.f32 %v6261_v1, %v5793_v32  ;;  %v1841_v38 = vmul.f32 %v6449_v5, %v6375_v61  ;;  %4130 = vrcp.f32 %v6440_v29  ;;  %vm6528_vm10 = vmor %vm1830_vm0, %vm1831_vm5 }
 0x25f   : > { %v3547_v0 = vmul.f32 -1.442695, %v6443_v8  ;;  %v1167_v60 = vadd.f32 %v6263_v9, %v5795_v7  ;;  %4132 = vrcp.f32 %v6459_v55  ;;  %v3545_v1 = vmul.f32 -1.442695, %v6463_v23 }
 0x260   : > { %v1076_v36 = vadd.f32 %v6189_v57, %v5793_v32  ;;  %v1165_v3 = vadd.f32 %v6191_v40, %v5795_v7  ;;  %v1799_v9 = vadd.f32 %v6357_v10, %v1798_v51  ;;  %v1814_v28 = vadd.f32 %v6365_v34, %v1813_v21 }
 0x261   : > { %v1836_v48 = vand.u32 2147483648, %v6301_v14  ;;  %4134 = vpow2.f32 %v3544_v44  ;;  %v6509_v23 = vpop.eup %4128  ;;  %v1829_v40 = vadd.f32 %v6377_v26, %v1828_v2  ;;  %v2522_v41 = vmul.f32 %v2458_v50, %v1078_v17  ;;  %v6532_v8 = vpop.f32.mrf.mxu2 }
 0x262   : > { %4136 = vpow2.f32 %v3546_v52  ;;  %v2523_v51 = vmul.f32 %v2459_v43, %v1167_v60  ;;  %vm6520_vm9 = vcmp.eq.f32.partialorder %v1819_v25, 8.507059e+37  ;;  %v1822_v44 = vor.u32 1.1754944e-38, %v1821_v56  ;;  %v6534_v2 = vpop.f32.mrf.mxu3 }
 0x263   : > { %v1842_v31 = vsub.f32 1.0, %v1841_v38  ;;  %4138 = vpow2.f32 %v3547_v0  ;;  %v1788_v25 = vsel %vm6488_vm6, %v6321_v20, %v6438_v47  ;;  %v2520_v56 = vmul.f32 %v6304_v6, %v1076_v36 }
 0x264   : > { %4140 = vpow2.f32 %v3545_v1  ;;  %v2521_v50 = vmul.f32 %v6324_v18, %v1165_v3  ;;  %v6542_v43 = vpop.eup %4130  ;;  %v1803_v52 = vsel %vm6503_vm7, %v6357_v10, %v1799_v9  ;;  %v1818_v17 = vsel %vm6515_vm8, %v6365_v34, %v1814_v28  ;;  %v8025_v28 = vld [vmem:[#allocation79_spill] sm:$0xff] }
 0x265   : > { %v1837_v38 = vor.u32 1.1754944e-38, %v1836_v48  ;;  %v1856_v0 = vmul.f32 %v6509_v23, %v6423_v45  ;;  %v6552_v20 = vpop.eup %4132  ;;  %v1833_v6 = vsel %vm6528_vm10, %v6377_v26, %v1829_v40  ;;  %v8024_v18 = vand.u32 2147483647, %v6301_v14 }
 0x266   : > { %v2608_v47 = vpack.c.bf16 %v2522_v41, %v2520_v56  ;;  %v2609_v60 = vpack.c.bf16 %v2523_v51, %v2521_v50  ;;  %v1793_v34 = vsel %vm6453_vm4, %v6380_v35, %v1788_v25  ;;  %v1843_v48 = vmul.f32 %v6449_v5, %v1842_v31 }
 0x267   : > { %vm1835_vm11 = vcmp.eq.f32.partialorder %v8024_v18, 8.507059e+37  ;;  %v4135_v10 = vpop.eup %4134  ;;  %vm1845_vm12 = vweird.f32 %v6375_v61  ;;  %v1851_v4 = vand.u32 2147483648, %v6375_v61  ;;  %v1808_v26 = vsel %vm6467_vm2, %v6395_v15, %v1803_v52  ;;  %v8026_v15 = vld [vmem:[#allocation76_spill] sm:$0xff] }
 0x268   : > { %v4137_v1 = vpop.eup %4136  ;;  %v1823_v14 = vsel %vm6520_vm9, %v1822_v44, %v1818_v17  ;;  %vm1846_vm13 = vweird.f32 %v6449_v5  ;;  %v1849_v36 = vand.u32 2147483647, %v6375_v61  ;;  %v1838_v35 = vsel %vm1835_vm11, %v1837_v38, %v1833_v6 }
 0x269   : > { %v4139_v12 = vpop.eup %4138  ;;  %v1857_v3 = vsub.f32 1.0, %v1856_v0  ;;  %v1871_v31 = vmul.f32 %v6542_v43, %v6440_v29  ;;  %v1886_v9 = vmul.f32 %v6552_v20, %v6459_v55  ;;  %v2157_v37 = vsub.f32 1.0, %v8025_v28  ;;  %2788 = vmatmul.bf16.gmra.mxu0 %v2608_v47  ;;  %2877 = vmatmul.bf16.gmra.mxu1 %v2609_v60  ;;  %v6589_v46 = vpop.f32.mrf.mxu2  ;;  %vm6599_vm14 = vmor %vm1845_vm12, %vm1846_vm13 }
 0x26a   : > { %v4141_v59 = vpop.eup %4140  ;;  %4142 = vrcp.f32 %v8026_v15  ;;  %v2460_v57 = vmul.f32 %v1793_v34, %v6114_v63  ;;  %v6579_v40 = vadd.f32 1.0, %v4135_v10  ;;  %v2461_v41 = vmul.f32 %v1808_v26, %v6146_v19  ;;  %v6591_v25 = vpop.f32.mrf.mxu3  ;;  %v8036_v19 = vld [vmem:[#allocation75_spill] sm:$0xff] }
 0x26b   : > { %v6583_v51 = vadd.f32 %v6449_v5, %v1843_v48  ;;  %v6585_v21 = vor.u32 1.1754944e-38, %v1851_v4  ;;  %v6587_v44 = vadd.f32 1.0, %v4137_v1  ;;  %v2462_v56 = vmul.f32 %v1823_v14, %v6151_v30 }
 0x26c   : > { %v2463_v63 = vmul.f32 %v1838_v35, %v6156_v58  ;;  %vm6603_vm15 = vcmp.eq.f32.partialorder %v1849_v36, 8.507059e+37  ;;  %v1866_v52 = vand.u32 2147483648, %v6423_v45  ;;  %v6608_v17 = vadd.f32 1.0, %v4139_v12 }
 0x26d   : > { %v1858_v30 = vmul.f32 %v6509_v23, %v1857_v3  ;;  %v1872_v38 = vsub.f32 1.0, %v1871_v31  ;;  %v1887_v58 = vsub.f32 1.0, %v1886_v9  ;;  %v6611_v0 = vadd.f32 1.0, %v4141_v59 }
 0x26e   : > { %vm1860_vm0 = vweird.f32 %v6423_v45  ;;  %4144 = vrcp.f32 %v6579_v40  ;;  %v1083_v61 = vadd.f32 %v6382_v62, %v5793_v32  ;;  %v1172_v6 = vadd.f32 %v6384_v39, %v5795_v7 }
 0x26f   : > { %v1848_v18 = vsel %vm6599_vm14, %v6449_v5, %v6583_v51  ;;  %vm1861_vm3 = vweird.f32 %v6509_v23  ;;  %v1864_v47 = vand.u32 2147483647, %v6423_v45  ;;  %4146 = vrcp.f32 %v6587_v44 }
 0x270   : > { %v6626_v60 = vpop.eup %4142  ;;  %v1867_v10 = vor.u32 1.1754944e-38, %v1866_v52  ;;  %4148 = vrcp.f32 %v6608_v17  ;;  %v1081_v62 = vadd.f32 %v6317_v42, %v5793_v32  ;;  %v1170_v39 = vadd.f32 %v6319_v27, %v5795_v7  ;;  %vm6639_vm4 = vmor %vm1860_vm0, %vm1861_vm3 }
 0x271   : > { %v1859_v34 = vadd.f32 %v6509_v23, %v1858_v30  ;;  %v1873_v5 = vmul.f32 %v6542_v43, %v1872_v38  ;;  %v1888_v48 = vmul.f32 %v6552_v20, %v1887_v58  ;;  %4150 = vrcp.f32 %v6611_v0  ;;  %v6649_v14 = vpop.f32.mrf.mxu2 }
 0x272   : > { %vm1875_vm1 = vweird.f32 %v6440_v29  ;;  %vm1876_vm2 = vweird.f32 %v6542_v43  ;;  %v2526_v42 = vmul.f32 %v2462_v56, %v1083_v61  ;;  %v2527_v27 = vmul.f32 %v2463_v63, %v1172_v6  ;;  %v6651_v45 = vpop.f32.mrf.mxu3  ;;  %v8035_v63 = vld [vmem:[#allocation66_spill] sm:$0xff] }
 0x273   : > { %v1879_v1 = vand.u32 2147483647, %v6440_v29  ;;  %v1881_v26 = vand.u32 2147483648, %v6440_v29  ;;  %vm1890_vm5 = vweird.f32 %v6459_v55  ;;  %vm1891_vm6 = vweird.f32 %v6552_v20  ;;  %vm6667_vm8 = vmor %vm1875_vm1, %vm1876_vm2  ;;  %v8040_v61 = vld [vmem:[#allocation30_spill] sm:$0xff] }
 0x274   : > { %v6653_v36 = vpop.eup %4144  ;;  %v1894_v12 = vand.u32 2147483647, %v6459_v55  ;;  %v1896_v35 = vand.u32 2147483648, %v6459_v55  ;;  %v2524_v3 = vmul.f32 %v2460_v57, %v1081_v62  ;;  %v2525_v31 = vmul.f32 %v2461_v41, %v1170_v39  ;;  %vm6683_vm9 = vmor %vm1890_vm5, %vm1891_vm6 }
 0x275   : > { %v6657_v9 = vpop.eup %4146  ;;  %v1863_v59 = vsel %vm6639_vm4, %v6509_v23, %v1859_v34  ;;  %vm1865_vm7 = vcmp.eq.f32.partialorder %v1864_v47, 8.507059e+37  ;;  %v1874_v51 = vadd.f32 %v6542_v43, %v1873_v5  ;;  %v1889_v57 = vadd.f32 %v6552_v20, %v1888_v48  ;;  %v8037_v23 = vld [vmem:[#allocation67_spill] sm:$0xff] }
 0x276   : > { %v6672_v41 = vpop.eup %4148  ;;  %v6676_v52 = vmul.f32 %v8036_v19, %v8035_v63  ;;  %4152 = vpow2.f32 %v8037_v23  ;;  %v2610_v30 = vpack.c.bf16 %v2526_v42, %v2524_v3  ;;  %v2611_v38 = vpack.c.bf16 %v2527_v27, %v2525_v31  ;;  %v8041_v47 = vld [vmem:[#allocation31_spill] sm:$0xff]  ;;  %v8046_v27 = vld [vmem:[#allocation77_spill] sm:$0xff] }
 0x277   : > { %v6687_v58 = vpop.eup %4150  ;;  %v6691_v6 = vadd.f32 %v8040_v61, %v4929_v13  ;;  %v6695_v62 = vadd.f32 %v8041_v47, %v4935_v16  ;;  %v1853_v55 = vsel %vm6603_vm15, %v6585_v21, %v1848_v18  ;;  %vm6700_vm10 = vcmp.eq.f32.partialorder %v1879_v1, 8.507059e+37 }
 0x278   : > { %v1868_v34 = vsel %vm1865_vm7, %v1867_v10, %v1863_v59  ;;  %v1882_v5 = vor.u32 1.1754944e-38, %v1881_v26  ;;  %vm6704_vm11 = vcmp.eq.f32.partialorder %v1894_v12, 8.507059e+37  ;;  %v1897_v4 = vor.u32 1.1754944e-38, %v1896_v35 }
 0x279   : > { %v1878_v42 = vsel %vm6667_vm8, %v6542_v43, %v1874_v51  ;;  %v1893_v50 = vsel %vm6683_vm9, %v6552_v20, %v1889_v57  ;;  %v1931_v21 = vmul.f32 %v6657_v9, %v6587_v44  ;;  %v1946_v18 = vmul.f32 %v6672_v41, %v6608_v17  ;;  %2793 = vmatmul.bf16.gmra.mxu0 %v2610_v30  ;;  %v1095_v3 = vpop.f32.mrf.mxu2 }
 0x27a   : > { %v2172_v10 = vsub.f32 1.0, %v6676_v52  ;;  %4154 = vpow2.f32 %v8046_v27  ;;  %v1901_v1 = vmul.f32 %v6653_v36, %v6579_v40  ;;  %v1916_v43 = vmul.f32 %v6687_v58, %v6611_v0  ;;  %2882 = vmatmul.bf16.gmra.mxu1 %v2611_v38  ;;  %v1184_v31 = vpop.f32.mrf.mxu3 }
 0x27b   : > { %v6725_v20 = vmul.f32 -1.442695, %v6691_v6  ;;  %v6728_v26 = vmul.f32 -1.442695, %v6695_v62  ;;  %v2464_v12 = vmul.f32 %v1853_v55, %v6236_v24  ;;  %v1911_v35 = vand.u32 2147483648, %v6579_v40 }
 0x27c   : > { %v6732_v59 = vpop.eup %4152  ;;  %v2465_v51 = vmul.f32 %v1868_v34, %v6292_v54  ;;  %v1883_v56 = vsel %vm6700_vm10, %v1882_v5, %v1878_v42  ;;  %v1898_v57 = vsel %vm6704_vm11, %v1897_v4, %v1893_v50  ;;  %vm1905_vm12 = vweird.f32 %v6579_v40 }
 0x27d   : > { %v1926_v23 = vand.u32 2147483648, %v6611_v0  ;;  %vm1920_vm13 = vweird.f32 %v6611_v0  ;;  %v1932_v24 = vsub.f32 1.0, %v1931_v21  ;;  %v1947_v29 = vsub.f32 1.0, %v1946_v18 }
 0x27e   : > { %v1088_v30 = vadd.f32 %v6532_v8, %v5793_v32  ;;  %v1177_v54 = vadd.f32 %v6534_v2, %v5795_v7  ;;  %v1902_v38 = vsub.f32 1.0, %v1901_v1  ;;  %vm1906_vm14 = vweird.f32 %v6653_v36 }
 0x27f   : > { %v1917_v61 = vsub.f32 1.0, %v1916_v43  ;;  %vm1921_vm15 = vweird.f32 %v6687_v58  ;;  %v2466_v47 = vmul.f32 %v1883_v56, %v6310_v49  ;;  %v2467_v55 = vmul.f32 %v1898_v57, %v6315_v33  ;;  %vm6803_vm6 = vmor %vm1905_vm12, %vm1906_vm14 }
 0x280   : > { %v1086_v39 = vadd.f32 %v6445_v11, %v5793_v32  ;;  %v1175_v34 = vadd.f32 %v6447_v22, %v5795_v7  ;;  %v6754_v8 = vpop.eup %4154  ;;  %vm1935_vm0 = vweird.f32 %v6587_v44  ;;  %v1939_v2 = vand.u32 2147483647, %v6587_v44  ;;  %vm6814_vm7 = vmor %vm1920_vm13, %vm1921_vm15 }
 0x281   : > { %v1941_v5 = vand.u32 2147483648, %v6587_v44  ;;  %vm1950_vm3 = vweird.f32 %v6608_v17  ;;  %v1933_v49 = vmul.f32 %v6657_v9, %v1932_v24  ;;  %v1948_v33 = vmul.f32 %v6672_v41, %v1947_v29  ;;  %v1097_v27 = vpop.f32.mrf.mxu2  ;;  %v8053_v44 = vld [vmem:[#allocation46_spill] sm:$0xff] }
 0x282   : > { %v2530_v48 = vmul.f32 %v2466_v47, %v1088_v30  ;;  %v2531_v4 = vmul.f32 %v2467_v55, %v1177_v54  ;;  %v1903_v11 = vmul.f32 %v6653_v36, %v1902_v38  ;;  %vm1936_vm4 = vweird.f32 %v6657_v9  ;;  %v1186_v1 = vpop.f32.mrf.mxu3  ;;  %v8051_v54 = vld [vmem:[#allocation41_spill] sm:$0xff]  ;;  %v8073_v30 = vld [vmem:[#allocation59_spill] sm:$0xff] }
 0x283   : > { %v1096_v22 = vadd.f32 %v1095_v3, %v5793_v32  ;;  %v1185_v42 = vadd.f32 %v1184_v31, %v5795_v7  ;;  %v1918_v50 = vmul.f32 %v6687_v58, %v1917_v61  ;;  %vm1951_vm1 = vweird.f32 %v6672_v41  ;;  %vm6775_vm2 = vmor %vm1935_vm0, %vm1936_vm4  ;;  %v8052_v61 = vld [vmem:[#allocation42_spill] sm:$0xff] }
 0x284   : > { %v2528_v21 = vmul.f32 %v2464_v12, %v1086_v39  ;;  %v2529_v18 = vmul.f32 %v2465_v51, %v1175_v34  ;;  %v1954_v43 = vand.u32 2147483647, %v6608_v17  ;;  %v1956_v56 = vand.u32 2147483648, %v6608_v17  ;;  %vm6782_vm5 = vmor %vm1950_vm3, %vm1951_vm1  ;;  %v8054_v39 = vld [vmem:[#allocation47_spill] sm:$0xff]  ;;  %v8075_v17 = vld [vmem:[#allocation81_spill] sm:$0xff] }
 0x285   : > { %v1098_v57 = vadd.f32 %v1097_v27, %v5793_v32  ;;  %v1187_v24 = vadd.f32 %v1186_v1, %v5795_v7  ;;  %v1934_v3 = vadd.f32 %v6657_v9, %v1933_v49  ;;  %v1949_v12 = vadd.f32 %v6672_v41, %v1948_v33 }
 0x286   : > { %v2612_v51 = vpack.c.bf16 %v2530_v48, %v2528_v21  ;;  %v2613_v29 = vpack.c.bf16 %v2531_v4, %v2529_v18  ;;  %v6787_v38 = vmul.f32 %v8051_v54, %v1096_v22  ;;  %v6790_v47 = vmul.f32 %v8052_v61, %v1185_v42  ;;  %v8074_v61 = vld [vmem:[#allocation64_spill] sm:$0xff] }
 0x287   : > { %v6793_v55 = vmul.f32 %v8053_v44, %v1098_v57  ;;  %v6796_v34 = vmul.f32 %v8054_v39, %v1187_v24  ;;  %v1904_v49 = vadd.f32 %v6653_v36, %v1903_v11  ;;  %v1909_v33 = vand.u32 2147483647, %v6579_v40 }
 0x288   : > { %v1919_v48 = vadd.f32 %v6687_v58, %v1918_v50  ;;  %v1924_v4 = vand.u32 2147483647, %v6611_v0  ;;  %v1942_v22 = vor.u32 1.1754944e-38, %v1941_v5  ;;  %v1957_v42 = vor.u32 1.1754944e-38, %v1956_v56  ;;  %v8063_v56 = vld [vmem:[#allocation62_spill] sm:$0xff] }
 0x289   : > { %v2616_v21 = vpack.c.bf16 %v6793_v55, %v6787_v38  ;;  %v2617_v18 = vpack.c.bf16 %v6796_v34, %v6790_v47  ;;  %v1938_v50 = vsel %vm6775_vm2, %v6657_v9, %v1934_v3  ;;  %vm6825_vm8 = vcmp.eq.f32.partialorder %v1939_v2, 8.507059e+37  ;;  %2798 = vmatmul.bf16.gmra.mxu0 %v2612_v51  ;;  %v1100_v0 = vpop.f32.mrf.mxu2  ;;  %v8070_v3 = vld [vmem:[#allocation74_spill] sm:$0xff]  ;;  %v8130_v47 = vld [vmem:[#allocation39_spill] sm:$0xff] }
 0x28a   : > { %v1953_v1 = vsel %vm6782_vm5, %v6672_v41, %v1949_v12  ;;  %vm6832_vm9 = vcmp.eq.f32.partialorder %v1954_v43, 8.507059e+37  ;;  %vm2131_vm10 = vweird.f32 %v8063_v56  ;;  %v2186_v57 = vmul.f32 %v6626_v60, %v8026_v15  ;;  %2887 = vmatmul.bf16.gmra.mxu1 %v2613_v29  ;;  %v8064_v41 = vld [vmem:[#allocation69_spill] sm:$0xff]  ;;  %v8071_v12 = vld [vmem:[#allocation72_spill] sm:$0xff] }
 0x28b   : > { %4156 = vpow2.f32 %v6725_v20  ;;  %v1912_v9 = vor.u32 1.1754944e-38, %v1911_v35  ;;  %v1927_v2 = vor.u32 1.1754944e-38, %v1926_v23  ;;  %vm2146_vm11 = vweird.f32 %v8064_v41  ;;  %v1189_v35 = vpop.f32.mrf.mxu3  ;;  %v8069_v23 = vld [vmem:[#allocation55_spill] sm:$0xff] }
 0x28c   : > { %v1908_v43 = vsel %vm6803_vm6, %v6653_v36, %v1904_v49  ;;  %vm6848_vm12 = vcmp.eq.f32.partialorder %v1909_v33, 8.507059e+37  ;;  %v1923_v40 = vsel %vm6814_vm7, %v6687_v58, %v1919_v48  ;;  %vm6855_vm13 = vcmp.eq.f32.partialorder %v1924_v4, 8.507059e+37  ;;  %v8077_v4 = vld [vmem:[#allocation80_spill] sm:$0xff] }
 0x28d   : > { %vm2130_vm14 = vweird.f32 %v8069_v23  ;;  %vm2161_vm15 = vweird.f32 %v8070_v3  ;;  %v6862_v36 = vadd.f32 1.0, %v6732_v59  ;;  %4158 = vpow2.f32 %v6728_v26 }
 0x28e   : > { %v1943_v31 = vsel %vm6825_vm8, %v1942_v22, %v1938_v50  ;;  %v1958_v58 = vsel %vm6832_vm9, %v1957_v42, %v1953_v1  ;;  %v8072_v51 = vsub.f32 1.0, %v8071_v12  ;;  %vm2145_vm0 = vweird.f32 %v8073_v30  ;;  %vm6945_vm8 = vmor %vm2130_vm14, %vm2131_vm10 }
 0x28f   : > { %v2158_v54 = vmul.f32 %v8070_v3, %v2157_v37  ;;  %v1093_v59 = vadd.f32 %v6649_v14, %v5793_v32  ;;  %v1182_v26 = vadd.f32 %v6651_v45, %v5795_v7  ;;  %vm2160_vm3 = vweird.f32 %v8074_v61  ;;  %vm6958_vm9 = vmor %vm2145_vm0, %vm2146_vm11 }
 0x290   : > { %v2143_v29 = vmul.f32 %v8064_v41, %v8072_v51  ;;  %v2173_v44 = vmul.f32 %v8036_v19, %v2172_v10  ;;  %v2187_v39 = vsub.f32 1.0, %v2186_v57  ;;  %v1913_v49 = vsel %vm6848_vm12, %v1912_v9, %v1908_v43  ;;  %vm6985_vm10 = vmor %vm2160_vm3, %vm2161_vm15 }
 0x291   : > { %v1928_v28 = vsel %vm6855_vm13, %v1927_v2, %v1923_v40  ;;  %v2470_v37 = vmul.f32 %v1943_v31, %v6434_v53  ;;  %v2471_v14 = vmul.f32 %v1958_v58, %v8075_v17  ;;  %v1091_v45 = vadd.f32 %v6589_v46, %v5793_v32  ;;  %v4157_v52 = vpop.eup %4156  ;;  %v8076_v53 = vld [vmem:[#allocation32_spill] sm:$0xff]  ;;  %v8078_v46 = vld [vmem:[#allocation82_spill] sm:$0xff]  ;;  %v1102_v12 = vpop.f32.mrf.mxu2 }
 0x292   : > { %v1180_v33 = vadd.f32 %v6591_v25, %v5795_v7  ;;  %vm2175_vm4 = vweird.f32 %v8035_v63  ;;  %vm2176_vm1 = vweird.f32 %v8036_v19  ;;  %4160 = vrcp.f32 %v6862_v36 }
 0x293   : > { %v6898_v10 = vadd.f32 1.0, %v6754_v8  ;;  %v6902_v48 = vadd.f32 %v8076_v53, %v4929_v13  ;;  %v2468_v11 = vmul.f32 %v1913_v49, %v8077_v4  ;;  %v2469_v22 = vmul.f32 %v1928_v28, %v8078_v46  ;;  %v4159_v50 = vpop.eup %4158  ;;  %v8097_v53 = vld [vmem:[#allocation57_spill] sm:$0xff]  ;;  %vm7003_vm12 = vmor %vm2175_vm4, %vm2176_vm1 }
 0x294   : > { %v2534_v42 = vmul.f32 %v2470_v37, %v1093_v59  ;;  %v2535_v25 = vmul.f32 %v2471_v14, %v1182_v26  ;;  %v8079_v27 = vand.u32 2147483647, %v8069_v23  ;;  %v2144_v8 = vadd.f32 %v8064_v41, %v2143_v29  ;;  %v8095_v23 = vld [vmem:[#allocation49_spill] sm:$0xff]  ;;  %v8108_v14 = vld [vmem:[#allocation71_spill] sm:$0xff]  ;;  %v8116_v29 = vld [vmem:[#allocation48_spill] sm:$0xff] }
 0x295   : > { %v2159_v5 = vadd.f32 %v8070_v3, %v2158_v54  ;;  %v1101_v57 = vadd.f32 %v1100_v0, %v5793_v32  ;;  %v1190_v9 = vadd.f32 %v1189_v35, %v5795_v7  ;;  %v8082_v2 = vand.u32 2147483647, %v8073_v30  ;;  %v1191_v35 = vpop.f32.mrf.mxu3 }
 0x296   : > { %vm6908_vm2 = vcmp.eq.f32.partialorder %v8079_v27, 8.507059e+37  ;;  %v8085_v24 = vand.u32 2147483647, %v8074_v61  ;;  %v2174_v20 = vadd.f32 %v8036_v19, %v2173_v44  ;;  %v2188_v31 = vmul.f32 %v6626_v60, %v2187_v39  ;;  %v8107_v44 = vld [vmem:[#allocation34_spill] sm:$0xff] }
 0x297   : > { %vm6918_vm5 = vcmp.eq.f32.partialorder %v8082_v2, 8.507059e+37  ;;  %v2532_v58 = vmul.f32 %v2468_v11, %v1091_v45  ;;  %v2533_v0 = vmul.f32 %v2469_v22, %v1180_v33  ;;  %v8088_v51 = vand.u32 2147483647, %v8035_v63  ;;  %v8096_v33 = vld [vmem:[#allocation52_spill] sm:$0xff]  ;;  %v8098_v11 = vld [vmem:[#allocation58_spill] sm:$0xff] }
 0x298   : > { %vm6924_vm6 = vcmp.eq.f32.partialorder %v8085_v24, 8.507059e+37  ;;  %4162 = vrcp.f32 %v6898_v10  ;;  %v6937_v54 = vadd.f32 1.0, %v4157_v52  ;;  %v1103_v59 = vadd.f32 %v1102_v12, %v5793_v32  ;;  %v6952_v17 = vpop.eup %4160  ;;  %v8099_v22 = vld [vmem:[#allocation78_spill] sm:$0xff]  ;;  %v2568_v2 = vld [vmem:[#allocation2 + $0xb0] sm:$0xff]  ;;  %v2858_v24 = vpop.f32.mrf.mxu1 }
 0x299   : > { %vm6932_vm7 = vcmp.eq.f32.partialorder %v8088_v51, 8.507059e+37  ;;  %v1192_v26 = vadd.f32 %v1191_v35, %v5795_v7  ;;  %v6949_v39 = vadd.f32 1.0, %v4159_v50  ;;  %v3568_v49 = vmul.f32 -1.442695, %v6902_v48  ;;  %v8105_v35 = vld [vmem:[#allocation63_spill] sm:$0xff] }
 0x29a   : > { %v2614_v28 = vpack.c.bf16 %v2534_v42, %v2532_v58  ;;  %v2615_v37 = vpack.c.bf16 %v2535_v25, %v2533_v0  ;;  %v6963_v45 = vmul.f32 %v8095_v23, %v1101_v57  ;;  %v6966_v52 = vmul.f32 %v8096_v33, %v1190_v9  ;;  %v2769_v9 = vpop.f32.mrf.mxu0 }
 0x29b   : > { %v6969_v4 = vmul.f32 %v8097_v53, %v1103_v59  ;;  %v6972_v46 = vmul.f32 %v8098_v11, %v1192_v26  ;;  %v2133_v30 = vsel %vm6945_vm8, %v8063_v56, %v8099_v22  ;;  %v2148_v42 = vsel %vm6958_vm9, %v8064_v41, %v2144_v8 }
 0x29c   : > { %vm2191_vm11 = vweird.f32 %v6626_v60  ;;  %v2194_v50 = vand.u32 2147483647, %v8026_v15  ;;  %v2163_v56 = vsel %vm6985_vm10, %v8070_v3, %v2159_v5  ;;  %4164 = vrcp.f32 %v6937_v54  ;;  %v8104_v5 = vld [vmem:[#allocation33_spill] sm:$0xff]  ;;  %2803 = vmatmul.bf16.gmra.mxu0 %v2614_v28  ;;  %2892 = vmatmul.bf16.gmra.mxu1 %v2615_v37 }
 0x29d   : > { %v2618_v41 = vpack.c.bf16 %v6969_v4, %v6963_v45  ;;  %v2619_v61 = vpack.c.bf16 %v6972_v46, %v6966_v52  ;;  %v2189_v8 = vadd.f32 %v6626_v60, %v2188_v31  ;;  %v2201_v3 = vmul.f32 %v6952_v17, %v6862_v36  ;;  %v8109_v37 = vld [vmem:[#allocation73_spill] sm:$0xff]  ;;  %v8143_v52 = vld [vmem:[#allocation44_spill] sm:$0xff] }
 0x29e   : > { %4166 = vpow2.f32 %v3568_v49  ;;  %v7012_v57 = vadd.f32 %v8104_v5, %v4935_v16  ;;  %v7014_v58 = vpop.eup %4162  ;;  %v2178_v0 = vsel %vm7003_vm12, %v8036_v19, %v2174_v20  ;;  %v2196_v12 = vand.u32 2147483648, %v8026_v15  ;;  %v1105_v19 = vpop.f32.mrf.mxu2 }
 0x29f   : > { %4168 = vrcp.f32 %v6949_v39  ;;  %v2859_v31 = vadd.f32 %v2858_v24, %v2769_v9  ;;  %v2138_v51 = vsel %vm6908_vm2, %v8105_v35, %v2133_v30  ;;  %v8106_v59 = vand.u32 2147483648, %v8035_v63  ;;  %v1194_v20 = vpop.f32.mrf.mxu3  ;;  %v8113_v30 = vld [vmem:[#allocation38_spill] sm:$0xff]  ;;  %v8117_v24 = vld [vmem:[#allocation53_spill] sm:$0xff] }
 0x2a0   : > { %vm2190_vm13 = vweird.f32 %v8026_v15  ;;  %v7029_v49 = vadd.f32 %v8107_v44, %v4929_v13  ;;  %v2153_v28 = vsel %vm6918_vm5, %v8108_v14, %v2148_v42  ;;  %v2168_v1 = vsel %vm6924_vm6, %v8109_v37, %v2163_v56  ;;  %v8112_v15 = vld [vmem:[#allocation35_spill] sm:$0xff]  ;;  %v8114_v42 = vld [vmem:[#allocation70_spill] sm:$0xff]  ;;  %v8115_v56 = vld [vmem:[#allocation45_spill] sm:$0xff]  ;;  %v2860_v37 = vpop.f32.mrf.mxu1 }
 0x2a1   : > { %v2182_v26 = vor.u32 1.1754944e-38, %v8106_v59  ;;  %vm7039_vm14 = vmor %vm2190_vm13, %vm2191_vm11  ;;  %v7045_v23 = vadd.f32 %v8112_v15, %v4935_v16  ;;  %v2938_v33 = vadd.f32 %v2859_v31, %v2568_v2  ;;  %v2202_v40 = vsub.f32 1.0, %v2201_v3  ;;  %v8118_v31 = vld [vmem:[#allocation54_spill] sm:$0xff] }
 0x2a2   : > { %v2193_v43 = vsel %vm7039_vm14, %v6626_v60, %v2189_v8  ;;  %v3569_v11 = vmul.f32 -1.442695, %v7012_v57  ;;  %v7053_v22 = vpop.eup %4164  ;;  %v2482_v25 = vmul.f32 %v8114_v42, %v8113_v30  ;;  %v2483_v27 = vmul.f32 %v2138_v51, %v8115_v56  ;;  %v2771_v14 = vpop.f32.mrf.mxu0 }
 0x2a3   : > { %v2183_v53 = vsel %vm6932_vm7, %v2182_v26, %v2178_v0  ;;  %vm2195_vm15 = vcmp.eq.f32.partialorder %v2194_v50, 8.507059e+37  ;;  %v2197_v5 = vor.u32 1.1754944e-38, %v2196_v12  ;;  %2970 = vst [vmem:[#allocation2 + $0xb0] sm:$0xff] %v2938_v33  ;;  %v7059_v2 = vmul.f32 %v2153_v28, %v8116_v29  ;;  %v2569_v28 = vld [vmem:[#allocation2] sm:$0xff] }
 0x2a4   : > { %v4167_v9 = vpop.eup %4166  ;;  %v7062_v0 = vmul.f32 %v2168_v1, %v8117_v24  ;;  %v2216_v60 = vmul.f32 %v7014_v58, %v6898_v10  ;;  %v3570_v8 = vmul.f32 -1.442695, %v7029_v49  ;;  %v7070_v35 = vmul.f32 %v2183_v53, %v8118_v31  ;;  %v8119_v24 = vld [vmem:[#allocation60_spill] sm:$0xff] }
 0x2a5   : > { %v7067_v3 = vpop.eup %4168  ;;  %v2198_v50 = vsel %vm2195_vm15, %v2197_v5, %v2193_v43  ;;  %v2209_v12 = vand.u32 2147483647, %v6862_v36  ;;  %v3571_v51 = vmul.f32 -1.442695, %v7045_v23  ;;  %v2203_v59 = vmul.f32 %v6952_v17, %v2202_v40 }
 0x2a6   : > { %v2211_v26 = vand.u32 2147483648, %v6862_v36  ;;  %v2231_v44 = vmul.f32 %v7053_v22, %v6937_v54  ;;  %4170 = vpow2.f32 %v3569_v11  ;;  %v2224_v1 = vand.u32 2147483647, %v6898_v10  ;;  %v1107_v30 = vpop.f32.mrf.mxu2 }
 0x2a7   : > { %v2861_v63 = vadd.f32 %v2860_v37, %v2771_v14  ;;  %v1106_v15 = vadd.f32 %v1105_v19, %v5793_v32  ;;  %v1195_v33 = vadd.f32 %v1194_v20, %v5795_v7  ;;  %v2217_v53 = vsub.f32 1.0, %v2216_v60  ;;  %v1196_v42 = vpop.f32.mrf.mxu3  ;;  %v8120_v60 = vld [vmem:[#allocation65_spill] sm:$0xff] }
 0x2a8   : > { %v2246_v43 = vmul.f32 %v7067_v3, %v6949_v39  ;;  %v7083_v40 = vadd.f32 1.0, %v4167_v9  ;;  %4172 = vpow2.f32 %v3570_v8  ;;  %v1108_v56 = vadd.f32 %v1107_v30, %v5793_v32 }
 0x2a9   : > { %4174 = vpow2.f32 %v3571_v51  ;;  %v2939_v11 = vadd.f32 %v2861_v63, %v2569_v28  ;;  %v1197_v5 = vadd.f32 %v1196_v42, %v5795_v7  ;;  %v2204_v29 = vadd.f32 %v6952_v17, %v2203_v59  ;;  %v8121_v28 = vld [vmem:[#allocation56_spill] sm:$0xff] }
 0x2aa   : > { %vm2206_vm0 = vweird.f32 %v6952_v17  ;;  %v2226_v19 = vand.u32 2147483648, %v6898_v10  ;;  %v2232_v20 = vsub.f32 1.0, %v2231_v44  ;;  %v7091_v9 = vmul.f32 %v8119_v24, %v1106_v15 }
 0x2ab   : > { %2971 = vst [vmem:[#allocation2] sm:$0xff] %v2939_v11  ;;  %v7094_v8 = vmul.f32 %v8120_v60, %v1195_v33  ;;  %v7096_v31 = vmul.f32 %v2482_v25, %v1108_v56  ;;  %v7098_v51 = vmul.f32 %v2483_v27, %v1197_v5  ;;  %v7101_v37 = vmul.f32 %v2198_v50, %v8121_v28  ;;  %v8128_v56 = vld [vmem:[#allocation36_spill] sm:$0xff] }
 0x2ac   : > { %v4171_v14 = vpop.eup %4170  ;;  %vm2205_vm3 = vweird.f32 %v6862_v36  ;;  %v2247_v59 = vsub.f32 1.0, %v2246_v43  ;;  %4176 = vrcp.f32 %v7083_v40  ;;  %vm7109_vm1 = vcmp.eq.f32.partialorder %v2209_v12, 8.507059e+37  ;;  %2808 = vmatmul.bf16.gmra.mxu0 %v2616_v21  ;;  %2897 = vmatmul.bf16.gmra.mxu1 %v2617_v18 }
 0x2ad   : > { %vm7105_vm4 = vmor %vm2205_vm3, %vm2206_vm0  ;;  %v2218_v25 = vmul.f32 %v7014_v58, %v2217_v53  ;;  %v2620_v27 = vpack.c.bf16 %v7096_v31, %v7091_v9  ;;  %v2621_v50 = vpack.c.bf16 %v7098_v51, %v7094_v8  ;;  %v2212_v33 = vor.u32 1.1754944e-38, %v2211_v26  ;;  %v8129_v26 = vld [vmem:[#allocation37_spill] sm:$0xff] }
 0x2ae   : > { %v4173_v36 = vpop.eup %4172  ;;  %v2208_v15 = vsel %vm7105_vm4, %v6952_v17, %v2204_v29  ;;  %vm2220_vm2 = vweird.f32 %v6898_v10  ;;  %v2239_v12 = vand.u32 2147483647, %v6937_v54  ;;  %vm7123_vm5 = vcmp.eq.f32.partialorder %v2224_v1, 8.507059e+37  ;;  %v1110_v29 = vpop.f32.mrf.mxu2 }
 0x2af   : > { %v4175_v43 = vpop.eup %4174  ;;  %v2227_v53 = vor.u32 1.1754944e-38, %v2226_v19  ;;  %v2233_v42 = vmul.f32 %v7053_v22, %v2232_v20  ;;  %v7128_v11 = vadd.f32 1.0, %v4171_v14  ;;  %v7132_v5 = vadd.f32 %v8128_v56, %v4929_v13  ;;  %v1199_v19 = vpop.f32.mrf.mxu3  ;;  %v8133_v14 = vld [vmem:[#allocation40_spill] sm:$0xff]  ;;  %v8140_v20 = vld [vmem:[#allocation61_spill] sm:$0xff] }
 0x2b0   : > { %vm2221_vm6 = vweird.f32 %v7014_v58  ;;  %vm2235_vm7 = vweird.f32 %v6937_v54  ;;  %v2248_v17 = vmul.f32 %v7067_v3, %v2247_v59  ;;  %v7145_v1 = vadd.f32 %v8129_v26, %v4935_v16 }
 0x2b1   : > { %v2213_v38 = vsel %vm7109_vm1, %v2212_v33, %v2208_v15  ;;  %v2219_v55 = vadd.f32 %v7014_v58, %v2218_v25  ;;  %v7150_v21 = vadd.f32 1.0, %v4173_v36  ;;  %v7154_v34 = vadd.f32 %v8130_v47, %v4929_v13  ;;  %vm7177_vm10 = vmor %vm2220_vm2, %vm2221_vm6 }
 0x2b2   : > { %v7156_v18 = vpop.eup %4176  ;;  %vm7158_vm8 = vcmp.eq.f32.partialorder %v2239_v12, 8.507059e+37  ;;  %v2241_v24 = vand.u32 2147483648, %v6937_v54  ;;  %v7163_v60 = vadd.f32 1.0, %v4175_v43  ;;  %v7167_v28 = vadd.f32 %v8133_v14, %v4935_v16 }
 0x2b3   : > { %v2234_v59 = vadd.f32 %v7053_v22, %v2233_v42  ;;  %vm2236_vm9 = vweird.f32 %v7053_v22  ;;  %4178 = vrcp.f32 %v7128_v11  ;;  %v3572_v44 = vmul.f32 -1.442695, %v7132_v5 }
 0x2b4   : > { %v2249_v25 = vadd.f32 %v7067_v3, %v2248_v17  ;;  %vm2250_vm11 = vweird.f32 %v6949_v39  ;;  %vm2251_vm12 = vweird.f32 %v7067_v3  ;;  %v3573_v36 = vmul.f32 -1.442695, %v7145_v1  ;;  %vm7194_vm13 = vmor %vm2235_vm7, %vm2236_vm9 }
 0x2b5   : > { %v2223_v15 = vsel %vm7177_vm10, %v7014_v58, %v2219_v55  ;;  %v2261_v33 = vmul.f32 %v7156_v18, %v7083_v40  ;;  %4180 = vrcp.f32 %v7150_v21  ;;  %v3574_v10 = vmul.f32 -1.442695, %v7154_v34  ;;  %vm7205_vm14 = vmor %vm2250_vm11, %vm2251_vm12 }
 0x2b6   : > { %v2254_v43 = vand.u32 2147483647, %v6949_v39  ;;  %v2256_v42 = vand.u32 2147483648, %v6949_v39  ;;  %4182 = vrcp.f32 %v7163_v60  ;;  %v3575_v58 = vmul.f32 -1.442695, %v7167_v28  ;;  %v1112_v14 = vpop.f32.mrf.mxu2 }
 0x2b7   : > { %v2238_v56 = vsel %vm7194_vm13, %v7053_v22, %v2234_v59  ;;  %4184 = vpow2.f32 %v3572_v44  ;;  %v1111_v54 = vadd.f32 %v1110_v29, %v5793_v32  ;;  %v1200_v26 = vadd.f32 %v1199_v19, %v5795_v7  ;;  %v1201_v22 = vpop.f32.mrf.mxu3 }
 0x2b8   : > { %v2228_v39 = vsel %vm7123_vm5, %v2227_v53, %v2223_v15  ;;  %v2242_v55 = vor.u32 1.1754944e-38, %v2241_v24  ;;  %v2253_v47 = vsel %vm7205_vm14, %v7067_v3, %v2249_v25  ;;  %4186 = vpow2.f32 %v3573_v36 }
 0x2b9   : > { %v7216_v59 = vpop.eup %4178  ;;  %v2262_v63 = vsub.f32 1.0, %v2261_v33  ;;  %4188 = vpow2.f32 %v3574_v10  ;;  %v1113_v44 = vadd.f32 %v1112_v14, %v5793_v32  ;;  %v1202_v29 = vadd.f32 %v1201_v22, %v5795_v7 }
 0x2ba   : > { %v2243_v30 = vsel %vm7158_vm8, %v2242_v55, %v2238_v56  ;;  %vm2255_vm15 = vcmp.eq.f32.partialorder %v2254_v43, 8.507059e+37  ;;  %v2257_v53 = vor.u32 1.1754944e-38, %v2256_v42  ;;  %4190 = vpow2.f32 %v3575_v58  ;;  %v2774_v43 = vpop.f32.mrf.mxu0  ;;  %v2863_v42 = vpop.f32.mrf.mxu1 }
 0x2bb   : > { %v7222_v19 = vpop.eup %4180  ;;  %v7225_v3 = vmul.f32 %v7059_v2, %v1111_v54  ;;  %v7228_v24 = vmul.f32 %v7062_v0, %v1200_v26  ;;  %v7231_v25 = vmul.f32 %v7070_v35, %v1113_v44  ;;  %v7234_v36 = vmul.f32 %v7101_v37, %v1202_v29  ;;  %v2570_v0 = vld [vmem:[#allocation2 + $0xd8] sm:$0xff] }
 0x2bc   : > { %v7236_v15 = vpop.eup %4182  ;;  %v7239_v33 = vmul.f32 %v2213_v38, %v8140_v20  ;;  %v2258_v10 = vsel %vm2255_vm15, %v2257_v53, %v2253_v47  ;;  %v2271_v12 = vand.u32 2147483648, %v7083_v40  ;;  %v2276_v2 = vmul.f32 %v7216_v59, %v7128_v11  ;;  %v8141_v54 = vld [vmem:[#allocation68_spill] sm:$0xff]  ;;  %2813 = vmatmul.bf16.gmra.mxu0 %v2618_v41  ;;  %2902 = vmatmul.bf16.gmra.mxu1 %v2619_v61 }
 0x2bd   : > { %v4185_v58 = vpop.eup %4184  ;;  %v2263_v35 = vmul.f32 %v7156_v18, %v2262_v63  ;;  %v2864_v56 = vadd.f32 %v2863_v42, %v2774_v43  ;;  %v2622_v37 = vpack.c.bf16 %v7231_v25, %v7225_v3  ;;  %v7250_v26 = vmul.f32 %v2228_v39, %v8141_v54 }
 0x2be   : > { %v4187_v17 = vpop.eup %4186  ;;  %v7253_v55 = vmul.f32 %v2243_v30, %v6691_v6  ;;  %vm2265_vm0 = vweird.f32 %v7083_v40  ;;  %v2291_v47 = vmul.f32 %v7222_v19, %v7150_v21  ;;  %v7259_v22 = vmul.f32 %v2258_v10, %v6695_v62  ;;  %v8142_v62 = vld [vmem:[#allocation43_spill] sm:$0xff]  ;;  %v1115_v10 = vpop.f32.mrf.mxu2 }
 0x2bf   : > { %v4189_v14 = vpop.eup %4188  ;;  %v2269_v63 = vand.u32 2147483647, %v7083_v40  ;;  %v2286_v44 = vand.u32 2147483648, %v7128_v11  ;;  %v2940_v29 = vadd.f32 %v2864_v56, %v2570_v0  ;;  %v7269_v39 = vor.u32 1.1754944e-38, %v2271_v12  ;;  %v1204_v43 = vpop.f32.mrf.mxu3  ;;  %v8144_v12 = vld [vmem:[#allocation50_spill] sm:$0xff] }
 0x2c0   : > { %v4191_v6 = vpop.eup %4190  ;;  %v2277_v30 = vsub.f32 1.0, %v2276_v2  ;;  %v7271_v53 = vadd.f32 1.0, %v4185_v58  ;;  %v7275_v20 = vadd.f32 %v8142_v62, %v4929_v13  ;;  %v2264_v0 = vadd.f32 %v7156_v18, %v2263_v35 }
 0x2c1   : > { %vm2266_vm3 = vweird.f32 %v7156_v18  ;;  %v7279_v45 = vadd.f32 1.0, %v4187_v17  ;;  %v7283_v4 = vadd.f32 %v8143_v52, %v4935_v16  ;;  %2972 = vst [vmem:[#allocation2 + $0xd8] sm:$0xff] %v2940_v29  ;;  %vm2280_vm4 = vweird.f32 %v7128_v11 }
 0x2c2   : > { %v2292_v46 = vsub.f32 1.0, %v2291_v47  ;;  %v2306_v41 = vmul.f32 %v7236_v15, %v7163_v60  ;;  %v7288_v61 = vadd.f32 1.0, %v4189_v14  ;;  %v7292_v2 = vadd.f32 %v8144_v12, %v4929_v13  ;;  %vm7306_vm5 = vmor %vm2265_vm0, %vm2266_vm3  ;;  %v8149_v47 = vld [vmem:[#allocation51_spill] sm:$0xff]  ;;  %v2865_v29 = vpop.f32.mrf.mxu1 }
 0x2c3   : > { %vm7294_vm1 = vcmp.eq.f32.partialorder %v2269_v63, 8.507059e+37  ;;  %vm2281_vm2 = vweird.f32 %v7216_v59  ;;  %v2284_v58 = vand.u32 2147483647, %v7128_v11  ;;  %v7300_v35 = vor.u32 1.1754944e-38, %v2286_v44  ;;  %v2776_v63 = vpop.f32.mrf.mxu0  ;;  %v2571_v44 = vld [vmem:[#allocation2 + $0x18] sm:$0xff] }
 0x2c4   : > { %v7302_v56 = vadd.f32 1.0, %v4191_v6  ;;  %v2278_v13 = vmul.f32 %v7216_v59, %v2277_v30  ;;  %4192 = vrcp.f32 %v7271_v53  ;;  %v3576_v54 = vmul.f32 -1.442695, %v7275_v20  ;;  %vm7349_vm8 = vmor %vm2280_vm4, %vm2281_vm2 }
 0x2c5   : > { %v7315_v14 = vadd.f32 %v8149_v47, %v4935_v16  ;;  %v2268_v40 = vsel %vm7306_vm5, %v7156_v18, %v2264_v0  ;;  %4194 = vrcp.f32 %v7279_v45  ;;  %v3577_v6 = vmul.f32 -1.442695, %v7283_v4 }
 0x2c6   : > { %v2866_v30 = vadd.f32 %v2865_v29, %v2776_v63  ;;  %v2293_v62 = vmul.f32 %v7222_v19, %v2292_v46  ;;  %v2307_v52 = vsub.f32 1.0, %v2306_v41  ;;  %4196 = vrcp.f32 %v7288_v61  ;;  %v1117_v63 = vpop.f32.mrf.mxu2 }
 0x2c7   : > { %v3578_v16 = vmul.f32 -1.442695, %v7292_v2  ;;  %vm7325_vm6 = vcmp.eq.f32.partialorder %v2284_v58, 8.507059e+37  ;;  %4198 = vrcp.f32 %v7302_v56  ;;  %v1116_v18 = vadd.f32 %v1115_v10, %v5793_v32  ;;  %v1206_v29 = vpop.f32.mrf.mxu3 }
 0x2c8   : > { %v2941_v17 = vadd.f32 %v2866_v30, %v2571_v44  ;;  %v1205_v0 = vadd.f32 %v1204_v43, %v5795_v7  ;;  %v2279_v47 = vadd.f32 %v7216_v59, %v2278_v13  ;;  %v2299_v46 = vand.u32 2147483647, %v7150_v21 }
 0x2c9   : > { %4200 = vpow2.f32 %v3576_v54  ;;  %v3579_v41 = vmul.f32 -1.442695, %v7315_v14  ;;  %v2301_v58 = vand.u32 2147483648, %v7150_v21  ;;  %v1118_v38 = vadd.f32 %v1117_v63, %v5793_v32 }
 0x2ca   : > { %4202 = vpow2.f32 %v3577_v6  ;;  %2973 = vst [vmem:[#allocation2 + $0x18] sm:$0xff] %v2941_v17  ;;  %v1207_v44 = vadd.f32 %v1206_v29, %v5795_v7  ;;  %v7338_v10 = vpop.eup %4192  ;;  %v2294_v43 = vadd.f32 %v7222_v19, %v2293_v62  ;;  %vm2296_vm7 = vweird.f32 %v7222_v19 }
 0x2cb   : > { %v2308_v13 = vmul.f32 %v7236_v15, %v2307_v52  ;;  %4204 = vpow2.f32 %v3578_v16  ;;  %v7343_v54 = vpop.eup %4194  ;;  %v7354_v30 = vmul.f32 %v7239_v33, %v1116_v18  ;;  %v7357_v62 = vmul.f32 %v7250_v26, %v1205_v0  ;;  %v2779_v26 = vpop.f32.mrf.mxu0  ;;  %v2572_v18 = vld [vmem:[#allocation2 + $0x50] sm:$0xff] }
 0x2cc   : > { %v7360_v17 = vmul.f32 %v7253_v55, %v1118_v38  ;;  %v7363_v52 = vmul.f32 %v7259_v22, %v1207_v44  ;;  %v7365_v16 = vpop.eup %4196  ;;  %v2273_v11 = vsel %vm7294_vm1, %v7269_v39, %v2268_v40  ;;  %v2283_v33 = vsel %vm7349_vm8, %v7216_v59, %v2279_v47  ;;  %v2868_v38 = vpop.f32.mrf.mxu1  ;;  %2818 = vmatmul.bf16.gmra.mxu0 %v2620_v27 }
 0x2cd   : > { %vm2295_vm9 = vweird.f32 %v7150_v21  ;;  %4206 = vpow2.f32 %v3579_v41  ;;  %v7374_v55 = vpop.eup %4198  ;;  %vm7382_vm11 = vcmp.eq.f32.partialorder %v2299_v46, 8.507059e+37  ;;  %v2869_v42 = vadd.f32 %v2868_v38, %v2779_v26  ;;  %2907 = vmatmul.bf16.gmra.mxu1 %v2621_v50 }
 0x2ce   : > { %vm7378_vm10 = vmor %vm2295_vm9, %vm2296_vm7  ;;  %v2624_v21 = vpack.c.bf16 %v7360_v17, %v7354_v30  ;;  %v2625_v59 = vpack.c.bf16 %v7363_v52, %v7357_v62  ;;  %v2309_v47 = vadd.f32 %v7236_v15, %v2308_v13  ;;  %vm2311_vm12 = vweird.f32 %v7236_v15  ;;  %v1120_v26 = vpop.f32.mrf.mxu2 }
 0x2cf   : > { %v4201_v40 = vpop.eup %4200  ;;  %v2298_v0 = vsel %vm7378_vm10, %v7222_v19, %v2294_v43  ;;  %v2321_v46 = vmul.f32 %v7338_v10, %v7271_v53  ;;  %v2302_v63 = vor.u32 1.1754944e-38, %v2301_v58  ;;  %v2314_v29 = vand.u32 2147483647, %v7163_v60  ;;  %v1209_v9 = vpop.f32.mrf.mxu3 }
 0x2d0   : > { %v4203_v41 = vpop.eup %4202  ;;  %v2316_v44 = vand.u32 2147483648, %v7163_v60  ;;  %v2942_v6 = vadd.f32 %v2869_v42, %v2572_v18  ;;  %v2288_v43 = vsel %vm7325_vm6, %v7300_v35, %v2283_v33  ;;  %vm2310_vm13 = vweird.f32 %v7163_v60 }
 0x2d1   : > { %v4205_v19 = vpop.eup %4204  ;;  %v2336_v58 = vmul.f32 %v7343_v54, %v7279_v45  ;;  %v2351_v13 = vmul.f32 %v7365_v16, %v7288_v61  ;;  %v2303_v31 = vsel %vm7382_vm11, %v2302_v63, %v2298_v0  ;;  %vm7417_vm14 = vmor %vm2310_vm13, %vm2311_vm12  ;;  %v2366_v51 = vmul.f32 %v7374_v55, %v7302_v56 }
 0x2d2   : > { %2974 = vst [vmem:[#allocation2 + $0x50] sm:$0xff] %v2942_v6  ;;  %v2492_v50 = vmul.f32 %v2273_v11, %v6902_v48  ;;  %v2313_v60 = vsel %vm7417_vm14, %v7236_v15, %v2309_v47  ;;  %v2322_v35 = vsub.f32 1.0, %v2321_v46  ;;  %v7427_v12 = vadd.f32 1.0, %v4201_v40  ;;  %v2573_v11 = vld [vmem:[#allocation2 + $0x68] sm:$0xff] }
 0x2d3   : > { %v4207_v27 = vpop.eup %4206  ;;  %v2493_v33 = vmul.f32 %v2288_v43, %v7012_v57  ;;  %vm2315_vm15 = vcmp.eq.f32.partialorder %v2314_v29, 8.507059e+37  ;;  %v2317_v18 = vor.u32 1.1754944e-38, %v2316_v44  ;;  %v7430_v38 = vadd.f32 1.0, %v4203_v41  ;;  %v2781_v48 = vpop.f32.mrf.mxu0 }
 0x2d4   : > { %v2494_v22 = vmul.f32 %v2303_v31, %v7029_v49  ;;  %v2337_v39 = vsub.f32 1.0, %v2336_v58  ;;  %v2352_v42 = vsub.f32 1.0, %v2351_v13  ;;  %v7433_v0 = vadd.f32 1.0, %v4205_v19  ;;  %v2870_v63 = vpop.f32.mrf.mxu1 }
 0x2d5   : > { %v2318_v6 = vsel %vm2315_vm15, %v2317_v18, %v2313_v60  ;;  %v2367_v15 = vsub.f32 1.0, %v2366_v51  ;;  %v7435_v47 = vadd.f32 1.0, %v4207_v27  ;;  %v2871_v40 = vadd.f32 %v2870_v63, %v2781_v48  ;;  %v2574_v48 = vld [vmem:[#allocation2 + $0x30] sm:$0xff] }
 0x2d6   : > { %v2323_v57 = vmul.f32 %v7338_v10, %v2322_v35  ;;  %vm2325_vm0 = vweird.f32 %v7271_v53  ;;  %v2331_v46 = vand.u32 2147483648, %v7271_v53  ;;  %4208 = vrcp.f32 %v7427_v12  ;;  %v1122_v58 = vpop.f32.mrf.mxu2 }
 0x2d7   : > { %4210 = vrcp.f32 %v7430_v38  ;;  %v2943_v49 = vadd.f32 %v2871_v40, %v2573_v11  ;;  %v1121_v41 = vadd.f32 %v1120_v26, %v5793_v32  ;;  %v1210_v29 = vadd.f32 %v1209_v9, %v5795_v7  ;;  %v1211_v13 = vpop.f32.mrf.mxu3 }
 0x2d8   : > { %v2495_v44 = vmul.f32 %v2318_v6, %v7045_v23  ;;  %v2338_v19 = vmul.f32 %v7343_v54, %v2337_v39  ;;  %v2353_v43 = vmul.f32 %v7365_v16, %v2352_v42  ;;  %4212 = vrcp.f32 %v7433_v0 }
 0x2d9   : > { %v2368_v31 = vmul.f32 %v7374_v55, %v2367_v15  ;;  %4214 = vrcp.f32 %v7435_v47  ;;  %2975 = vst [vmem:[#allocation2 + $0x68] sm:$0xff] %v2943_v49  ;;  %v1123_v8 = vadd.f32 %v1122_v58, %v5793_v32  ;;  %v1212_v26 = vadd.f32 %v1211_v13, %v5795_v7 }
 0x2da   : > { %v2324_v9 = vadd.f32 %v7338_v10, %v2323_v57  ;;  %vm2326_vm3 = vweird.f32 %v7338_v10  ;;  %vm2340_vm4 = vweird.f32 %v7279_v45  ;;  %vm2341_vm1 = vweird.f32 %v7343_v54 }
 0x2db   : > { %v7456_v23 = vmul.f32 %v2492_v50, %v1121_v41  ;;  %v7458_v51 = vmul.f32 %v2493_v33, %v1210_v29  ;;  %v7460_v27 = vmul.f32 %v2494_v22, %v1123_v8  ;;  %v7462_v60 = vmul.f32 %v2495_v44, %v1212_v26  ;;  %v2784_v42 = vpop.f32.mrf.mxu0  ;;  %vm7476_vm6 = vmor %vm2325_vm0, %vm2326_vm3 }
 0x2dc   : > { %v7464_v35 = vpop.eup %4208  ;;  %v2339_v18 = vadd.f32 %v7343_v54, %v2338_v19  ;;  %v2354_v39 = vadd.f32 %v7365_v16, %v2353_v43  ;;  %vm2356_vm2 = vweird.f32 %v7365_v16  ;;  %vm2371_vm5 = vweird.f32 %v7374_v55  ;;  %v2873_v50 = vpop.f32.mrf.mxu1  ;;  %vm7492_vm7 = vmor %vm2340_vm4, %vm2341_vm1  ;;  %2823 = vmatmul.bf16.gmra.mxu0 %v2622_v37 }
 0x2dd   : > { %v7470_v11 = vpop.eup %4210  ;;  %v2369_v22 = vadd.f32 %v7374_v55, %v2368_v31  ;;  %v2874_v63 = vadd.f32 %v2873_v50, %v2784_v42  ;;  %v2626_v6 = vpack.c.bf16 %v7460_v27, %v7456_v23  ;;  %v2627_v15 = vpack.c.bf16 %v7462_v60, %v7458_v51  ;;  %v2581_v51 = vld [vmem:[#allocation2 + $0xf0] sm:$0xff] }
 0x2de   : > { %v7485_v40 = vpop.eup %4212  ;;  %v2329_v57 = vand.u32 2147483647, %v7271_v53  ;;  %v2332_v49 = vor.u32 1.1754944e-38, %v2331_v46  ;;  %v2346_v29 = vand.u32 2147483648, %v7279_v45  ;;  %vm2355_vm8 = vweird.f32 %v7288_v61  ;;  %v1125_v42 = vpop.f32.mrf.mxu2 }
 0x2df   : > { %v7498_v44 = vpop.eup %4214  ;;  %vm7502_vm9 = vmor %vm2355_vm8, %vm2356_vm2  ;;  %v2361_v53 = vand.u32 2147483648, %v7288_v61  ;;  %vm2370_vm10 = vweird.f32 %v7302_v56  ;;  %v2376_v46 = vand.u32 2147483648, %v7302_v56  ;;  %v2944_v43 = vadd.f32 %v2874_v63, %v2574_v48  ;;  %v1214_v48 = vpop.f32.mrf.mxu3 }
 0x2e0   : > { %v8166_v58 = vpack.c.bf16 %v7234_v36, %v7228_v24  ;;  %v2344_v13 = vand.u32 2147483647, %v7279_v45  ;;  %v2359_v31 = vand.u32 2147483647, %v7288_v61  ;;  %vm7519_vm11 = vmor %vm2370_vm10, %vm2371_vm5  ;;  %v2374_v26 = vand.u32 2147483647, %v7302_v56 }
 0x2e1   : > { %v2328_v3 = vsel %vm7476_vm6, %v7338_v10, %v2324_v9  ;;  %v2343_v24 = vsel %vm7492_vm7, %v7343_v54, %v2339_v18  ;;  %v2358_v25 = vsel %vm7502_vm9, %v7365_v16, %v2354_v39  ;;  %v2373_v36 = vsel %vm7519_vm11, %v7374_v55, %v2369_v22  ;;  %2976 = vst [vmem:[#allocation2 + $0x30] sm:$0xff] %v2944_v43  ;;  %v2575_v18 = vld [vmem:[#allocation2 + $0x48] sm:$0xff] }
 0x2e2   : > { %2912 = vmatmul.bf16.gmra.mxu1 %v8166_v58  ;;  %v2381_v37 = vmul.f32 %v7464_v35, %v7427_v12  ;;  %v2396_v45 = vmul.f32 %v7470_v11, %v7430_v38  ;;  %v2411_v61 = vmul.f32 %v7485_v40, %v7433_v0  ;;  %v2426_v56 = vmul.f32 %v7498_v44, %v7435_v47 }
 0x2e3   : > { %vm2330_vm12 = vcmp.eq.f32.partialorder %v2329_v57, 8.507059e+37  ;;  %v2347_v10 = vor.u32 1.1754944e-38, %v2346_v29  ;;  %v2362_v54 = vor.u32 1.1754944e-38, %v2361_v53  ;;  %v2377_v16 = vor.u32 1.1754944e-38, %v2376_v46  ;;  %v2786_v55 = vpop.f32.mrf.mxu0 }
 0x2e4   : > { %v2333_v9 = vsel %vm2330_vm12, %v2332_v49, %v2328_v3  ;;  %vm2345_vm13 = vcmp.eq.f32.partialorder %v2344_v13, 8.507059e+37  ;;  %vm2360_vm14 = vcmp.eq.f32.partialorder %v2359_v31, 8.507059e+37  ;;  %vm2375_vm15 = vcmp.eq.f32.partialorder %v2374_v26, 8.507059e+37  ;;  %v2875_v39 = vpop.f32.mrf.mxu1 }
 0x2e5   : > { %v2348_v50 = vsel %vm2345_vm13, %v2347_v10, %v2343_v24  ;;  %v2363_v33 = vsel %vm2360_vm14, %v2362_v54, %v2358_v25  ;;  %v2378_v22 = vsel %vm2375_vm15, %v2377_v16, %v2373_v36  ;;  %v2876_v63 = vadd.f32 %v2875_v39, %v2786_v55  ;;  %v2576_v10 = vld [vmem:[#allocation2 + $0x80] sm:$0xff] }
 0x2e6   : > { %v2382_v41 = vsub.f32 1.0, %v2381_v37  ;;  %v2397_v19 = vsub.f32 1.0, %v2396_v45  ;;  %v2412_v43 = vsub.f32 1.0, %v2411_v61  ;;  %v2427_v58 = vsub.f32 1.0, %v2426_v56  ;;  %v1127_v31 = vpop.f32.mrf.mxu2 }
 0x2e7   : > { %v2945_v8 = vadd.f32 %v2876_v63, %v2575_v18  ;;  %v1126_v57 = vadd.f32 %v1125_v42, %v5793_v32  ;;  %v1215_v29 = vadd.f32 %v1214_v48, %v5795_v7  ;;  %v2496_v49 = vmul.f32 %v2333_v9, %v7132_v5  ;;  %v1216_v26 = vpop.f32.mrf.mxu3 }
 0x2e8   : > { %v2497_v53 = vmul.f32 %v2348_v50, %v7145_v1  ;;  %v2498_v46 = vmul.f32 %v2363_v33, %v7154_v34  ;;  %v2499_v13 = vmul.f32 %v2378_v22, %v7167_v28  ;;  %vm2385_vm0 = vweird.f32 %v7427_v12 }
 0x2e9   : > { %v2389_v3 = vand.u32 2147483647, %v7427_v12  ;;  %2977 = vst [vmem:[#allocation2 + $0x48] sm:$0xff] %v2945_v8  ;;  %v1128_v24 = vadd.f32 %v1127_v31, %v5793_v32  ;;  %v1217_v42 = vadd.f32 %v1216_v26, %v5795_v7  ;;  %v2383_v48 = vmul.f32 %v7464_v35, %v2382_v41 }
 0x2ea   : > { %v2398_v5 = vmul.f32 %v7470_v11, %v2397_v19  ;;  %v2413_v1 = vmul.f32 %v7485_v40, %v2412_v43  ;;  %v2428_v34 = vmul.f32 %v7498_v44, %v2427_v58  ;;  %v7558_v28 = vmul.f32 %v2496_v49, %v1126_v57  ;;  %v2577_v49 = vld [vmem:[#allocation2 + $0x88] sm:$0xff] }
 0x2eb   : > { %v7560_v25 = vmul.f32 %v2497_v53, %v1215_v29  ;;  %v7562_v36 = vmul.f32 %v2498_v46, %v1128_v24  ;;  %v7564_v37 = vmul.f32 %v2499_v13, %v1217_v42  ;;  %vm2386_vm3 = vweird.f32 %v7464_v35  ;;  %v2789_v56 = vpop.f32.mrf.mxu0 }
 0x2ec   : > { %v2391_v45 = vand.u32 2147483648, %v7427_v12  ;;  %vm2400_vm4 = vweird.f32 %v7430_v38  ;;  %v2404_v61 = vand.u32 2147483647, %v7430_v38  ;;  %v2878_v54 = vpop.f32.mrf.mxu1  ;;  %vm2401_vm1 = vweird.f32 %v7470_v11  ;;  %vm7583_vm5 = vmor %vm2385_vm0, %vm2386_vm3  ;;  %2828 = vmatmul.bf16.gmra.mxu0 %v2624_v21 }
 0x2ed   : > { %v2879_v16 = vadd.f32 %v2878_v54, %v2789_v56  ;;  %v2628_v9 = vpack.c.bf16 %v7562_v36, %v7558_v28  ;;  %v2629_v55 = vpack.c.bf16 %v7564_v37, %v7560_v25  ;;  %v2384_v18 = vadd.f32 %v7464_v35, %v2383_v48  ;;  %vm7600_vm7 = vmor %vm2400_vm4, %vm2401_vm1  ;;  %v2583_v36 = vld [vmem:[#allocation2 + $0x78] sm:$0xff] }
 0x2ee   : > { %v2399_v39 = vadd.f32 %v7470_v11, %v2398_v5  ;;  %v2406_v50 = vand.u32 2147483648, %v7430_v38  ;;  %vm2416_vm2 = vweird.f32 %v7485_v40  ;;  %v2414_v22 = vadd.f32 %v7485_v40, %v2413_v1  ;;  %v1130_v17 = vpop.f32.mrf.mxu2 }
 0x2ef   : > { %v2429_v63 = vadd.f32 %v7498_v44, %v2428_v34  ;;  %vm2431_vm6 = vweird.f32 %v7498_v44  ;;  %v2946_v41 = vadd.f32 %v2879_v16, %v2576_v10  ;;  %vm2415_vm8 = vweird.f32 %v7433_v0  ;;  %v1219_v21 = vpop.f32.mrf.mxu3 }
 0x2f0   : > { %v2419_v19 = vand.u32 2147483647, %v7433_v0  ;;  %v2421_v43 = vand.u32 2147483648, %v7433_v0  ;;  %v2436_v30 = vand.u32 2147483648, %v7435_v47  ;;  %vm7610_vm9 = vmor %vm2415_vm8, %vm2416_vm2  ;;  %vm2430_vm10 = vweird.f32 %v7435_v47 }
 0x2f1   : > { %v2434_v52 = vand.u32 2147483647, %v7435_v47  ;;  %2978 = vst [vmem:[#allocation2 + $0x80] sm:$0xff] %v2946_v41  ;;  %vm2390_vm11 = vcmp.eq.f32.partialorder %v2389_v3, 8.507059e+37  ;;  %v2403_v38 = vsel %vm7600_vm7, %v7470_v11, %v2399_v39  ;;  %vm7624_vm12 = vmor %vm2430_vm10, %vm2431_vm6  ;;  %v2392_v58 = vor.u32 1.1754944e-38, %v2391_v45 }
 0x2f2   : > { %2917 = vmatmul.bf16.gmra.mxu1 %v2625_v59  ;;  %v2388_v59 = vsel %vm7583_vm5, %v7464_v35, %v2384_v18  ;;  %v2407_v8 = vor.u32 1.1754944e-38, %v2406_v50  ;;  %v2418_v47 = vsel %vm7610_vm9, %v7485_v40, %v2414_v22  ;;  %v2433_v35 = vsel %vm7624_vm12, %v7498_v44, %v2429_v63  ;;  %v2578_v50 = vld [vmem:[#allocation2 + $0xe8] sm:$0xff] }
 0x2f3   : > { %vm2405_vm13 = vcmp.eq.f32.partialorder %v2404_v61, 8.507059e+37  ;;  %vm2420_vm14 = vcmp.eq.f32.partialorder %v2419_v19, 8.507059e+37  ;;  %v2422_v57 = vor.u32 1.1754944e-38, %v2421_v43  ;;  %v2437_v11 = vor.u32 1.1754944e-38, %v2436_v30  ;;  %v2791_v29 = vpop.f32.mrf.mxu0  ;;  %v2580_v19 = vld [vmem:[#allocation2 + $0x60] sm:$0xff] }
 0x2f4   : > { %v2880_v53 = vpop.f32.mrf.mxu1  ;;  %v2393_v46 = vsel %vm2390_vm11, %v2392_v58, %v2388_v59  ;;  %v2408_v13 = vsel %vm2405_vm13, %v2407_v8, %v2403_v38  ;;  %vm2435_vm15 = vcmp.eq.f32.partialorder %v2434_v52, 8.507059e+37  ;;  %v1131_v40 = vadd.f32 %v1130_v17, %v5793_v32  ;;  %v2584_v38 = vld [vmem:[#allocation2 + $0x38] sm:$0xff] }
 0x2f5   : > { %v2881_v31 = vadd.f32 %v2880_v53, %v2791_v29  ;;  %v2423_v26 = vsel %vm2420_vm14, %v2422_v57, %v2418_v47  ;;  %v2438_v3 = vsel %vm2435_vm15, %v2437_v11, %v2433_v35  ;;  %v1220_v42 = vadd.f32 %v1219_v21, %v5795_v7  ;;  %v2582_v21 = vld [vmem:[#allocation2 + $0x8] sm:$0xff]  ;;  %v2585_v35 = vld [vmem:[#allocation2 + $0x58] sm:$0xff]  ;;  %v2586_v53 = vld [vmem:[#allocation2 + $0x40] sm:$0xff] }
 0x2f6   : > { %v2500_v44 = vmul.f32 %v2393_v46, %v7275_v20  ;;  %v2501_v48 = vmul.f32 %v2408_v13, %v7283_v4  ;;  %v1132_v5 = vpop.f32.mrf.mxu2  ;;  %v2502_v34 = vmul.f32 %v2423_v26, %v7292_v2  ;;  %v2503_v45 = vmul.f32 %v2438_v3, %v7315_v14  ;;  %v2587_v3 = vld [vmem:[#allocation2 + $0xc8] sm:$0xff] }
 0x2f7   : > { %v2947_v24 = vadd.f32 %v2881_v31, %v2577_v49  ;;  %v1221_v1 = vpop.f32.mrf.mxu3  ;;  %v1133_v61 = vadd.f32 %v1132_v5, %v5793_v32 }
 0x2f8   : > { %v1222_v56 = vadd.f32 %v1221_v1, %v5795_v7  ;;  %v2564_v10 = vmul.f32 %v2500_v44, %v1131_v40  ;;  %v2565_v54 = vmul.f32 %v2501_v48, %v1220_v42  ;;  %v2579_v7 = vld [vmem:[#allocation2 + $0xb8] sm:$0xff]  ;;  %v2588_v48 = vld [vmem:[#allocation2 + $0xe0] sm:$0xff] }
 0x2f9   : > { %2979 = vst [vmem:[#allocation2 + $0x88] sm:$0xff] %v2947_v24  ;;  %v2566_v16 = vmul.f32 %v2502_v34, %v1133_v61  ;;  %v2589_v61 = vld [vmem:[#allocation2 + $0x90] sm:$0xff] }
 0x2fa   : > { %v2567_v18 = vmul.f32 %v2503_v45, %v1222_v56 }
 0x2fb   : > { %v2794_v39 = vpop.f32.mrf.mxu0  ;;  %v2630_v4 = vpack.c.bf16 %v2566_v16, %v2564_v10 }
 0x2fc   : > { %v2883_v20 = vpop.f32.mrf.mxu1  ;;  %v2631_v22 = vpack.c.bf16 %v2567_v18, %v2565_v54  ;;  %2833 = vmatmul.bf16.gmra.mxu0 %v2626_v6  ;;  %v2590_v18 = vld [vmem:[#allocation2 + $0x70] sm:$0xff] }
 0x2fd   : > { %v2884_v33 = vadd.f32 %v2883_v20, %v2794_v39 }
 0x2ff   : > { %v2948_v63 = vadd.f32 %v2884_v33, %v2578_v50 }
 0x301   : > { %2980 = vst [vmem:[#allocation2 + $0xe8] sm:$0xff] %v2948_v63 }
 0x302   : > { %2922 = vmatmul.bf16.gmra.mxu1 %v2627_v15 }
 0x303   : > { %v2796_v32 = vpop.f32.mrf.mxu0 }
 0x304   : > { %v2885_v2 = vpop.f32.mrf.mxu1 }
 0x305   : > { %v2886_v14 = vadd.f32 %v2885_v2, %v2796_v32  ;;  %v2592_v2 = vld [vmem:[#allocation2 + $0xa8] sm:$0xff] }
 0x307   : > { %v2949_v41 = vadd.f32 %v2886_v14, %v2579_v7 }
 0x309   : > { %2981 = vst [vmem:[#allocation2 + $0xb8] sm:$0xff] %v2949_v41 }
 0x30b   : > { %v2799_v12 = vpop.f32.mrf.mxu0 }
 0x30c   : > { %v2888_v43 = vpop.f32.mrf.mxu1  ;;  %2838 = vmatmul.bf16.gmra.mxu0 %v2628_v9 }
 0x30d   : > { %v2889_v30 = vadd.f32 %v2888_v43, %v2799_v12  ;;  %v2593_v43 = vld [vmem:[#allocation2 + $0xd0] sm:$0xff] }
 0x30f   : > { %v2950_v17 = vadd.f32 %v2889_v30, %v2580_v19 }
 0x311   : > { %2982 = vst [vmem:[#allocation2 + $0x60] sm:$0xff] %v2950_v17 }
 0x312   : > { %2927 = vmatmul.bf16.gmra.mxu1 %v2629_v55 }
 0x313   : > { %v2801_v23 = vpop.f32.mrf.mxu0 }
 0x314   : > { %v2890_v27 = vpop.f32.mrf.mxu1 }
 0x315   : > { %v2891_v60 = vadd.f32 %v2890_v27, %v2801_v23  ;;  %v2594_v27 = vld [vmem:[#allocation2 + $0x10] sm:$0xff] }
 0x317   : > { %v2951_v6 = vadd.f32 %v2891_v60, %v2581_v51 }
 0x319   : > { %2983 = vst [vmem:[#allocation2 + $0xf0] sm:$0xff] %v2951_v6 }
 0x31b   : > { %v2804_v15 = vpop.f32.mrf.mxu0 }
 0x31c   : > { %v2893_v62 = vpop.f32.mrf.mxu1  ;;  %2843 = vmatmul.bf16.gmra.mxu0 %v2630_v4  ;;  %v2591_v4 = vld [vmem:[#allocation2 + $0xc0] sm:$0xff] }
 0x31d   : > { %v2894_v52 = vadd.f32 %v2893_v62, %v2804_v15  ;;  %v2595_v62 = vld [vmem:[#allocation2 + $0x28] sm:$0xff] }
 0x31f   : > { %v2952_v59 = vadd.f32 %v2894_v52, %v2582_v21 }
 0x321   : > { %2984 = vst [vmem:[#allocation2 + $0x8] sm:$0xff] %v2952_v59 }
 0x322   : > { %2932 = vmatmul.bf16.gmra.mxu1 %v2631_v22 }
 0x323   : > { %v2806_v28 = vpop.f32.mrf.mxu0 }
 0x324   : > { %v2895_v9 = vpop.f32.mrf.mxu1 }
 0x325   : > { %v2896_v25 = vadd.f32 %v2895_v9, %v2806_v28  ;;  %v2596_v9 = vld [vmem:[#allocation2 + $0xa0] sm:$0xff] }
 0x327   : > { %v2953_v37 = vadd.f32 %v2896_v25, %v2583_v36 }
 0x329   : > { %2985 = vst [vmem:[#allocation2 + $0x78] sm:$0xff] %v2953_v37 }
 0x32b   : > { %v2809_v55 = vpop.f32.mrf.mxu0 }
 0x32c   : > { %v2898_v0 = vpop.f32.mrf.mxu1 }
 0x32d   : > { %v2899_v58 = vadd.f32 %v2898_v0, %v2809_v55  ;;  %v2597_v0 = vld [vmem:[#allocation2 + $0xf8] sm:$0xff] }
 0x32f   : > { %v2954_v8 = vadd.f32 %v2899_v58, %v2584_v38 }
 0x331   : > { %2986 = vst [vmem:[#allocation2 + $0x38] sm:$0xff] %v2954_v8 }
 0x333   : > { %v2811_v47 = vpop.f32.mrf.mxu0 }
 0x334   : > { %v2900_v57 = vpop.f32.mrf.mxu1 }
 0x335   : > { %v2901_v11 = vadd.f32 %v2900_v57, %v2811_v47  ;;  %v2598_v57 = vld [vmem:[#allocation2 + $0x20] sm:$0xff] }
 0x337   : > { %v2955_v29 = vadd.f32 %v2901_v11, %v2585_v35 }
 0x339   : > { %2987 = vst [vmem:[#allocation2 + $0x58] sm:$0xff] %v2955_v29 }
 0x33b   : > { %v2814_v49 = vpop.f32.mrf.mxu0 }
 0x33c   : > { %v2903_v46 = vpop.f32.mrf.mxu1 }
 0x33d   : > { %v2904_v13 = vadd.f32 %v2903_v46, %v2814_v49  ;;  %v2599_v46 = vld [vmem:[#allocation2 + $0x98] sm:$0xff] }
 0x33f   : > { %v2956_v31 = vadd.f32 %v2904_v13, %v2586_v53 }
 0x341   : > { %2988 = vst [vmem:[#allocation2 + $0x40] sm:$0xff] %v2956_v31 }
 0x343   : > { %v2816_v26 = vpop.f32.mrf.mxu0 }
 0x344   : > { %v2905_v24 = vpop.f32.mrf.mxu1 }
 0x345   : > { %v2906_v40 = vadd.f32 %v2905_v24, %v2816_v26 }
 0x347   : > { %v2957_v42 = vadd.f32 %v2906_v40, %v2587_v3 }
 0x349   : > { %2989 = vst [vmem:[#allocation2 + $0xc8] sm:$0xff] %v2957_v42 }
 0x34b   : > { %v2819_v44 = vpop.f32.mrf.mxu0 }
 0x34c   : > { %v2908_v5 = vpop.f32.mrf.mxu1 }
 0x34d   : > { %v2909_v1 = vadd.f32 %v2908_v5, %v2819_v44 }
 0x34f   : > { %v2958_v34 = vadd.f32 %v2909_v1, %v2588_v48 }
 0x351   : > { %2990 = vst [vmem:[#allocation2 + $0xe0] sm:$0xff] %v2958_v34 }
 0x353   : > { %v2821_v45 = vpop.f32.mrf.mxu0 }
 0x354   : > { %v2910_v56 = vpop.f32.mrf.mxu1 }
 0x355   : > { %v2911_v10 = vadd.f32 %v2910_v56, %v2821_v45 }
 0x357   : > { %v2959_v54 = vadd.f32 %v2911_v10, %v2589_v61 }
 0x359   : > { %2991 = vst [vmem:[#allocation2 + $0x90] sm:$0xff] %v2959_v54 }
 0x35b   : > { %v2824_v16 = vpop.f32.mrf.mxu0 }
 0x35f   : > { %v2913_v39 = vpop.f32.mrf.mxu1 }
 0x360   : > { %v2914_v50 = vadd.f32 %v2913_v39, %v2824_v16 }
 0x362   : > { %v2960_v20 = vadd.f32 %v2914_v50, %v2590_v18 }
 0x363   : > { %v2826_v33 = vpop.f32.mrf.mxu0 }
 0x364   : > { %2992 = vst [vmem:[#allocation2 + $0x70] sm:$0xff] %v2960_v20 }
 0x367   : > { %v2915_v22 = vpop.f32.mrf.mxu1 }
 0x368   : > { %v2916_v63 = vadd.f32 %v2915_v22, %v2826_v33 }
 0x36a   : > { %v2961_v32 = vadd.f32 %v2916_v63, %v2591_v4 }
 0x36b   : > { %v2829_v7 = vpop.f32.mrf.mxu0 }
 0x36c   : > { %2993 = vst [vmem:[#allocation2 + $0xc0] sm:$0xff] %v2961_v32 }
 0x36f   : > { %v2918_v14 = vpop.f32.mrf.mxu1 }
 0x370   : > { %v2919_v41 = vadd.f32 %v2918_v14, %v2829_v7 }
 0x372   : > { %v2962_v12 = vadd.f32 %v2919_v41, %v2592_v2 }
 0x373   : > { %v2831_v19 = vpop.f32.mrf.mxu0 }
 0x374   : > { %2994 = vst [vmem:[#allocation2 + $0xa8] sm:$0xff] %v2962_v12 }
 0x377   : > { %v2920_v30 = vpop.f32.mrf.mxu1 }
 0x378   : > { %v2921_v17 = vadd.f32 %v2920_v30, %v2831_v19 }
 0x37a   : > { %v2963_v23 = vadd.f32 %v2921_v17, %v2593_v43 }
 0x37b   : > { %v2834_v51 = vpop.f32.mrf.mxu0 }
 0x37c   : > { %2995 = vst [vmem:[#allocation2 + $0xd0] sm:$0xff] %v2963_v23 }
 0x37f   : > { %v2923_v60 = vpop.f32.mrf.mxu1 }
 0x380   : > { %v2924_v6 = vadd.f32 %v2923_v60, %v2834_v51 }
 0x382   : > { %v2964_v15 = vadd.f32 %v2924_v6, %v2594_v27 }
 0x383   : > { %v2836_v21 = vpop.f32.mrf.mxu0 }
 0x384   : > { %2996 = vst [vmem:[#allocation2 + $0x10] sm:$0xff] %v2964_v15 }
 0x387   : > { %v2925_v52 = vpop.f32.mrf.mxu1 }
 0x388   : > { %v2926_v59 = vadd.f32 %v2925_v52, %v2836_v21 }
 0x38a   : > { %v2965_v28 = vadd.f32 %v2926_v59, %v2595_v62 }
 0x38b   : > { %v2839_v36 = vpop.f32.mrf.mxu0 }
 0x38c   : > { %2997 = vst [vmem:[#allocation2 + $0x28] sm:$0xff] %v2965_v28 }
 0x38f   : > { %v2928_v25 = vpop.f32.mrf.mxu1 }
 0x390   : > { %v2929_v37 = vadd.f32 %v2928_v25, %v2839_v36 }
 0x392   : > { %v2966_v55 = vadd.f32 %v2929_v37, %v2596_v9 }
 0x393   : > { %v2841_v38 = vpop.f32.mrf.mxu0 }
 0x394   : > { %2998 = vst [vmem:[#allocation2 + $0xa0] sm:$0xff] %v2966_v55 }
 0x397   : > { %v2930_v58 = vpop.f32.mrf.mxu1 }
 0x398   : > { %v2931_v8 = vadd.f32 %v2930_v58, %v2841_v38 }
 0x39a   : > { %v2967_v47 = vadd.f32 %v2931_v8, %v2597_v0 }
 0x39b   : > { %v2844_v35 = vpop.f32.mrf.mxu0 }
 0x39c   : > { %2999 = vst [vmem:[#allocation2 + $0xf8] sm:$0xff] %v2967_v47 }
 0x39f   : > { %v2933_v11 = vpop.f32.mrf.mxu1 }
 0x3a0   : > { %v2934_v29 = vadd.f32 %v2933_v11, %v2844_v35 }
 0x3a2   : > { %v2968_v49 = vadd.f32 %v2934_v29, %v2598_v57 }
 0x3a3   : > { %v2846_v53 = vpop.f32.mrf.mxu0 }
 0x3a4   : > { %3000 = vst [vmem:[#allocation2 + $0x20] sm:$0xff] %v2968_v49 }
 0x3a7   : > { %v2935_v13 = vpop.f32.mrf.mxu1 }
 0x3a8   : > { %v2936_v31 = vadd.f32 %v2935_v13, %v2846_v53  ;;  %3005 = sbr.rel (%p3644_p10) target bundleno = 960 (0x3c0), region = 76 }
 0x3aa   : > { %v2969_v26 = vadd.f32 %v2936_v31, %v2599_v46 }
 0x3ac   : > { %3001 = vst [vmem:[#allocation2 + $0x98] sm:$0xff] %v2969_v26 }
 0x3ad   : > { %v3006_v3 = vld [vmem:[#allocation2 + $0xb0] sm:$0xff]  ;;  %v3007_v24 = vld [vmem:[#allocation2] sm:$0xff]  ;;  %v3008_v40 = vld [vmem:[#allocation2 + $0xd8] sm:$0xff] }
 0x3ae   : > { %v3722_v42 = vpack.c.bf16 %v3007_v24, %v3006_v3  ;;  %v3009_v44 = vld [vmem:[#allocation2 + $0x18] sm:$0xff]  ;;  %v3010_v48 = vld [vmem:[#allocation2 + $0x50] sm:$0xff]  ;;  %v3011_v5 = vld [vmem:[#allocation2 + $0x68] sm:$0xff] }
 0x3af   : > { %v3727_v1 = vpack.c.bf16 %v3009_v44, %v3008_v40  ;;  %v3732_v34 = vpack.c.bf16 %v3011_v5, %v3010_v48  ;;  %v3012_v45 = vld [vmem:[#allocation2 + $0x30] sm:$0xff]  ;;  %v3013_v61 = vld [vmem:[#allocation2 + $0x48] sm:$0xff]  ;;  %v3014_v56 = vld [vmem:[#allocation2 + $0x80] sm:$0xff] }
 0x3b0   : > { %3723 = vst [vmem:[%s4790_s4] sm:$0xff] %v3722_v42   ;;  %v3737_v10 = vpack.c.bf16 %v3013_v61, %v3012_v45  ;;  %v3015_v54 = vld [vmem:[#allocation2 + $0x88] sm:$0xff]  ;;  %v3017_v18 = vld [vmem:[#allocation2 + $0xb8] sm:$0xff]  ;;  %v3018_v20 = vld [vmem:[#allocation2 + $0x60] sm:$0xff] }
 0x3b1   : > { %v3016_v16 = vld [vmem:[#allocation2 + $0xe8] sm:$0xff]  ;;  %3799 = vst [vmem:[%s4790_s4 + $0x8] sm:$0xff] %v3727_v1   ;;  %v3742_v39 = vpack.c.bf16 %v3015_v54, %v3014_v56  ;;  %v3019_v33 = vld [vmem:[#allocation2 + $0xf0] sm:$0xff]  ;;  %v3021_v63 = vld [vmem:[#allocation2 + $0x78] sm:$0xff] }
 0x3b2   : > { %v3747_v50 = vpack.c.bf16 %v3017_v18, %v3016_v16  ;;  %v3020_v4 = vld [vmem:[#allocation2 + $0x8] sm:$0xff]  ;;  %3800 = vst [vmem:[%s4790_s4 + $0x10] sm:$0xff] %v3732_v34   ;;  %v3752_v22 = vpack.c.bf16 %v3019_v33, %v3018_v20  ;;  %v3022_v32 = vld [vmem:[#allocation2 + $0x38] sm:$0xff]  ;;  %v3024_v14 = vld [vmem:[#allocation2 + $0x40] sm:$0xff] }
 0x3b3   : > { %v3023_v7 = vld [vmem:[#allocation2 + $0x58] sm:$0xff]  ;;  %3801 = vst [vmem:[%s4790_s4 + $0x18] sm:$0xff] %v3737_v10   ;;  %v3757_v2 = vpack.c.bf16 %v3021_v63, %v3020_v4  ;;  %v3025_v41 = vld [vmem:[#allocation2 + $0xc8] sm:$0xff]  ;;  %v3026_v12 = vld [vmem:[#allocation2 + $0xe0] sm:$0xff] }
 0x3b4   : > { %3802 = vst [vmem:[%s4790_s4 + $0x20] sm:$0xff] %v3742_v39   ;;  %v3762_v19 = vpack.c.bf16 %v3023_v7, %v3022_v32  ;;  %v3027_v43 = vld [vmem:[#allocation2 + $0x90] sm:$0xff]  ;;  %v3029_v17 = vld [vmem:[#allocation2 + $0xc0] sm:$0xff]  ;;  %v3767_v23 = vpack.c.bf16 %v3025_v41, %v3024_v14  ;;  %v3030_v51 = vld [vmem:[#allocation2 + $0xa8] sm:$0xff] }
 0x3b5   : > { %v3028_v30 = vld [vmem:[#allocation2 + $0x70] sm:$0xff]  ;;  %3803 = vst [vmem:[%s4790_s4 + $0x28] sm:$0xff] %v3747_v50   ;;  %v3772_v60 = vpack.c.bf16 %v3027_v43, %v3026_v12  ;;  %v3033_v15 = vld [vmem:[#allocation2 + $0x28] sm:$0xff]  ;;  %v3034_v62 = vld [vmem:[#allocation2 + $0xa0] sm:$0xff] }
 0x3b6   : > { %v3031_v27 = vld [vmem:[#allocation2 + $0xd0] sm:$0xff]  ;;  %3804 = vst [vmem:[%s4790_s4 + $0x30] sm:$0xff] %v3752_v22   ;;  %v3777_v21 = vpack.c.bf16 %v3029_v17, %v3028_v30  ;;  %v3035_v52 = vld [vmem:[#allocation2 + $0xf8] sm:$0xff]  ;;  %v3036_v28 = vld [vmem:[#allocation2 + $0x20] sm:$0xff] }
 0x3b7   : > { %v3032_v6 = vld [vmem:[#allocation2 + $0x10] sm:$0xff]  ;;  %3805 = vst [vmem:[%s4790_s4 + $0x38] sm:$0xff] %v3757_v2   ;;  %v3782_v59 = vpack.c.bf16 %v3031_v27, %v3030_v51  ;;  %v3037_v36 = vld [vmem:[#allocation2 + $0x98] sm:$0xff]  ;;  %v3792_v25 = vpack.c.bf16 %v3035_v52, %v3034_v62 }
 0x3b8   : > { %3806 = vst [vmem:[%s4790_s4 + $0x40] sm:$0xff] %v3762_v19   ;;  %v3787_v9 = vpack.c.bf16 %v3033_v15, %v3032_v6  ;;  %v3797_v37 = vpack.c.bf16 %v3037_v36, %v3036_v28 }
 0x3b9   : > { %3807 = vst [vmem:[%s4790_s4 + $0x48] sm:$0xff] %v3767_v23  }
 0x3ba   : > { %3808 = vst [vmem:[%s4790_s4 + $0x50] sm:$0xff] %v3772_v60  }
 0x3bb   : > { %3809 = vst [vmem:[%s4790_s4 + $0x58] sm:$0xff] %v3777_v21  }
 0x3bc   : > { %3810 = vst [vmem:[%s4790_s4 + $0x60] sm:$0xff] %v3782_v59  }
 0x3bd   : > { %3811 = vst [vmem:[%s4790_s4 + $0x68] sm:$0xff] %v3787_v9  }
 0x3be   : > { %3812 = vst [vmem:[%s4790_s4 + $0x70] sm:$0xff] %v3792_v25  }
 0x3bf   : > { %3813 = vst [vmem:[%s4790_s4 + $0x78] sm:$0xff] %v3797_v37  }
 0x3c0 PF: > { %s8178_s26 = sld [smem:[#allocation21_spill]]  ;;  %s3115_s23 = sshll.u32 %s4790_s4, 4  ;;  %s3116_s23 = int_to_ptr.vmem [resolvable:$true] %s3115_s23 }
 0x3c1   : > { %s8180_s10 = sld [smem:[#allocation92_spill]]  ;;  %s3103_s21 = scalar_lea.sflag [#allocation5], %s4754_s3 }
 0x3c6   : > { %s3718_s27 = sshll.u32 %s8178_s26, 7 }
 0x3c7   : > { %s8181_s15 = smov %s8180_s10  ;;  %s3114_s11 = scalar_lea.hbm %s8180_s10, %s3718_s27 }
 0x3c8   : > { %s3117_s17 = sshll.u32 %s3114_s11, 4  ;;  %s4389_s7 = scalar_lea.hbm %s8181_s15, 256  ;;  %s3118_s17 = int_to_ptr.hbm [resolvable:$true] %s3117_s17 }
 0x3c9   : > { %s4383_s12 = sshra.s32 %s3118_s17, 4  ;;  %s4384_s12 = int_to_ptr.hbm [resolvable:$true] %s4383_s12 }
 0x3ca   : > { %s4385_s8 = scalar_lea.hbm %s4384_s12, 128  ;;  %p4390_p4 = scmp.lt.s32.totalorder %s4384_s12, %s8181_s15 }
 0x3cb   : > { %p4386_p11 = scmp.ne.s32.totalorder %s4384_s12, %s4385_s8  ;;  %p4391_p0 = scmp.lt.s32.totalorder %s4389_s7, %s4385_s8 }
 0x3cd   : > { %p4387_p12 = pnand %p4386_p11, %p4716_p1  ;;  %p4392_p7 = por %p4391_p0, %p4390_p4 }
 0x3cf   : > { %p4388_p13 = pneg %p4387_p12 }
 0x3d1   : > { %p4393_p9 = pnand %p4392_p7, %p4388_p13 }
 0x3d3   : > { %4396 = shalt.err (!%p4393_p9)
}
 0x3d4   : > { %s4506_s3 = smov 64   ;;  %s4507_s4 = smov 4  }
 0x3d5   : > { %3840 = dma.vmem_to_hbm [thread:$0]  (%p4716_p1), %s3116_s23, 2048, %s3118_s17, %s3103_s21, %s4506_s3, %s4506_s3, %s4507_s4  }
 0x3d6 PF: > { %s8182_s20 = sld [smem:[#allocation23_spill]] }
 0x3d7   : > { %s8183_s6 = sld [smem:[#allocation18_spill]] }
 0x3dc   : > { %p3863_p2 = scmp.ge.s32.totalorder %s8182_s20, 2 }
 0x3dd   : > { %s3132_s18 = sand.u32 1, %s8183_s6  }
 0x3de   : > { %p3859_p3 = pnand %p3863_p2, %p4723_p6  ;;  %s3133_s16 = scalar_lea.sflag [#allocation5], %s3132_s18 }
 0x3e0   : > { %p3860_p5 = pneg %p3859_p3 }
 0x3e2   : > { %4454 = dma.done.wait (%p3860_p5), %s3133_s16, 2048  }
 0x3e3   : > { %4456 = vsyncadd (%p3860_p5), %s3133_s16, 4294965248  ;;  %s29_s11 = sadd.s32 1, %s8182_s20   ;;  %s8185_s19 = sld [smem:[#allocation17_spill]] }
 0x3e4   : > { %p26_p8 = scmp.ge.s32.totalorder %s29_s11, 6   ;;  %s8186_s26 = sld [smem:[#allocation26_spill]] }
 0x3e5   : > { %s8187_s1 = sld [smem:[#allocation19_spill]]  ;;  %s8192_s24 = smov %s4463_s25 }
 0x3e6   : > { %s8188_s29 = sld [smem:[#allocation27_spill]]  ;;  %s8194_s27 = smov %s4475_s28 }
 0x3e7   : > { %s8189_s8 = sld [smem:[#allocation22_spill]]  ;;  %s8196_s30 = smov %s4491_s9 }
 0x3e8   : > { %s8190_s0 = sld [smem:[#allocation24_spill]] }
 0x3e9   : > { %s8191_s10 = sld [smem:[#allocation25_spill]]  ;;  %s8193_s25 = smov %s8185_s19 }
 0x3ea   :  { %28 = sbr.rel (!%p26_p8) target bundleno = 21 (0x15), region = 152 }
 0x3eb   : > { %s8195_s28 = smov %s8187_s1 }
 0x3ee   : > { %s8197_s9 = smov %s8190_s0 }
 0x3ef   :  { %3139 = vsyncpa [#allocation4], 1 }
 0x3f0   :  { %3141 = vsyncpa [#allocation4 + $0x1], 1 }
 0x3f1   :  { %3142 = vsyncpa [#allocation7], 1 }
 0x3f2   :  { %3144 = vsyncpa [#allocation7 + $0x1], 1 }
 0x3f3   :  { %3145 = vsyncpa [#allocation10], 1 }
 0x3f4   :  { %3147 = vsyncpa [#allocation10 + $0x1], 1 }
 0x3f5   :  { %3148 = vsyncpa [#allocation5], 1 }
 0x3f6   :  { %3150 = vsyncpa [#allocation5 + $0x1], 1 }

</bundles_post_ra>
